<compile_context>
chip_gen: v7x
topology: tpu7x:2x2x1
jax: 0.10.0
libtpu: 0.0.40
codegen_flags: <defaults>
</compile_context>

<pallas_src>
import functools
import math

import jax
import jax.numpy as jnp
from jax.experimental import pallas as pl
from jax.experimental.pallas import tpu as pltpu


# ----------------------------- fused kernel --------------------------------------

def _layer_norm_f32(x, g, b, eps=1e-5):
    mean = jnp.mean(x, axis=-1, keepdims=True)
    xc = x - mean
    var = jnp.mean(xc * xc, axis=-1, keepdims=True)
    return xc * jax.lax.rsqrt(var + eps) * g + b


def _fused_forward_kernel(
    # inputs
    x_ref, pe_ref, inw_ref, inb_ref,
    ln1g_ref, ln1b_ref, wqkv_ref, bqkv_ref, wo_ref, bo_ref,
    ln2g_ref, ln2b_ref, w1_ref, b1_ref, w2_ref, b2_ref,
    outw_ref, outb_ref,
    # outputs
    o_ref,
    # scratch
    h_ref,
    *, batch, seq, num_heads):
    li = pl.program_id(0)
    n_layers = pl.num_programs(0)

    # ---- layer-0 prologue: input projection + positional encoding ----------------
    @pl.when(li == 0)
    def _():
        x = x_ref[...].astype(jnp.bfloat16)
        h0 = jnp.dot(x, inw_ref[...], preferred_element_type=jnp.float32)
        h0 = h0 + inb_ref[...]
        pe = pe_ref[...]                                   # (S, H)
        pe_full = jnp.concatenate([pe] * batch, axis=0)    # (B*S, H)
        h_ref[...] = h0 + pe_full

    h = h_ref[...]                                         # (M, H) f32
    M, H = h.shape
    dh = H // num_heads
    scale = 1.0 / math.sqrt(dh)

    # ---- self-attention block (norm_first) ---------------------------------------
    hn = _layer_norm_f32(h, ln1g_ref[...], ln1b_ref[...])
    qkv = jnp.dot(hn.astype(jnp.bfloat16), wqkv_ref[...],
                  preferred_element_type=jnp.float32) + bqkv_ref[...]   # (M, 3H) f32
    q = qkv[:, 0 * H:1 * H].reshape(batch, seq, H)
    k = qkv[:, 1 * H:2 * H].reshape(batch, seq, H)
    v = qkv[:, 2 * H:3 * H].reshape(batch, seq, H)

    wo = wo_ref[...]                                       # (H, H) bf16
    attn_proj = jnp.zeros((M, H), jnp.float32)
    for hd in range(num_heads):
        sl = slice(hd * dh, (hd + 1) * dh)
        qh = (q[:, :, sl] * scale).astype(jnp.bfloat16)    # (B, S, dh)
        kh = k[:, :, sl].astype(jnp.bfloat16)
        vh = v[:, :, sl].astype(jnp.bfloat16)
        s = jnp.einsum('bqd,bkd->bqk', qh, kh,
                       preferred_element_type=jnp.float32)             # (B, S, S)
        s = s - jnp.max(s, axis=-1, keepdims=True)
        p = jnp.exp(s)
        p = p * pl.reciprocal(jnp.sum(p, axis=-1, keepdims=True), approx=True)
        oh = jnp.einsum('bqk,bkd->bqd', p.astype(jnp.bfloat16), vh,
                        preferred_element_type=jnp.float32)            # (B, S, dh)
        oh = oh.reshape(M, dh).astype(jnp.bfloat16)
        # concat(heads) @ Wo  ==  sum_h head_h @ Wo[rows of head h]  (no lane concat)
        attn_proj = attn_proj + jnp.dot(oh, wo[sl, :],
                                        preferred_element_type=jnp.float32)
    h = h + attn_proj + bo_ref[...]

    # ---- feed-forward block (norm_first) ------------------------------------------
    hn2 = _layer_norm_f32(h, ln2g_ref[...], ln2b_ref[...])
    ff = jnp.dot(hn2.astype(jnp.bfloat16), w1_ref[...],
                 preferred_element_type=jnp.float32) + b1_ref[...]
    ff = jnp.maximum(ff, 0.0)
    ff = jnp.dot(ff.astype(jnp.bfloat16), w2_ref[...],
                 preferred_element_type=jnp.float32) + b2_ref[...]
    h = h + ff
    h_ref[...] = h

    # ---- last-layer epilogue: output head on the last token -----------------------
    @pl.when(li == n_layers - 1)
    def _():
        rows = [h_ref[pl.ds((b + 1) * seq - 1, 1), :] for b in range(batch)]
        last = jnp.concatenate(rows, axis=0)               # (B, H)
        out = jnp.dot(last.astype(jnp.bfloat16), outw_ref[...],
                      preferred_element_type=jnp.float32) + outb_ref[...]
        o_ref[...] = out.astype(o_ref.dtype)


def actor_transformer_forward(state, error, params, *, num_heads):
    B, S, _ = state.shape
    Din, H = params["in_w"].shape
    L = params["wqkv"].shape[0]
    F = params["w1"].shape[-1]
    Dout = params["out_w"].shape[1]
    M = B * S
    assert H % num_heads == 0

    x = jnp.concatenate([state, error], axis=-1).reshape(M, Din)
    pe = params["pe"][:S]

    const2 = lambda l: (0, 0)
    per_layer = lambda l: (l, 0, 0)

    kernel = functools.partial(_fused_forward_kernel,
                               batch=B, seq=S, num_heads=num_heads)

    return pl.pallas_call(
        kernel,
        out_shape=jax.ShapeDtypeStruct((B, Dout), jnp.float32),
        grid=(L,),
        in_specs=[
            pl.BlockSpec((M, Din), const2),              # x (concat(state, error))
            pl.BlockSpec((S, H), const2),                # positional encoding
            pl.BlockSpec((Din, H), const2),              # in_w (bf16)
            pl.BlockSpec((1, H), const2),                # in_b
            pl.BlockSpec((None, 1, H), per_layer),       # ln1_g
            pl.BlockSpec((None, 1, H), per_layer),       # ln1_b
            pl.BlockSpec((None, H, 3 * H), per_layer),   # wqkv (bf16)
            pl.BlockSpec((None, 1, 3 * H), per_layer),   # bqkv
            pl.BlockSpec((None, H, H), per_layer),       # wo (bf16)
            pl.BlockSpec((None, 1, H), per_layer),       # bo
            pl.BlockSpec((None, 1, H), per_layer),       # ln2_g
            pl.BlockSpec((None, 1, H), per_layer),       # ln2_b
            pl.BlockSpec((None, H, F), per_layer),       # w1 (bf16)
            pl.BlockSpec((None, 1, F), per_layer),       # b1
            pl.BlockSpec((None, F, H), per_layer),       # w2 (bf16)
            pl.BlockSpec((None, 1, H), per_layer),       # b2
            pl.BlockSpec((H, Dout), const2),             # out_w (bf16)
            pl.BlockSpec((1, Dout), const2),             # out_b
        ],
        out_specs=pl.BlockSpec((B, Dout), const2),
        scratch_shapes=[pltpu.VMEM((M, H), jnp.float32)],
        compiler_params=pltpu.CompilerParams(
            dimension_semantics=("arbitrary",)),
    )(x, pe,
      params["in_w"], params["in_b"],
      params["ln1_g"], params["ln1_b"], params["wqkv"], params["bqkv"],
      params["wo"], params["bo"],
      params["ln2_g"], params["ln2_b"], params["w1"], params["b1"],
      params["w2"], params["b2"],
      params["out_w"], params["out_b"])


# ----------------------------- parameter setup -----------------------------------

def _uniform(key, shape, scale):
    return jax.random.uniform(key, shape, jnp.float32, -scale, scale)


def _linear_init(key, fan_in, fan_out):
    kw, kb = jax.random.split(key)
    s = 1.0 / math.sqrt(fan_in)
    return _uniform(kw, (fan_in, fan_out), s), _uniform(kb, (1, fan_out), s)


def sinusoidal_pe(max_len, d):
    pos = jnp.arange(max_len, dtype=jnp.float32)[:, None]
    div = jnp.exp(jnp.arange(0, d, 2, dtype=jnp.float32) * (-math.log(10000.0) / d))
    pe = jnp.zeros((max_len, d), jnp.float32)
    pe = pe.at[:, 0::2].set(jnp.sin(pos * div))
    pe = pe.at[:, 1::2].set(jnp.cos(pos * div))
    return pe


def init_params(key, state_dim, error_dim, output_dim, hidden_dim, num_heads,
                num_layers, dim_feedforward=2048, max_len=512):
    del num_heads  # head split is a view of hidden_dim; no extra params
    H, F = hidden_dim, dim_feedforward
    keys = jax.random.split(key, 2 + num_layers)
    in_w, in_b = _linear_init(keys[0], state_dim + error_dim, H)
    out_w, out_b = _linear_init(keys[1], H, output_dim)

    def make_layer(k):
        lk = jax.random.split(k, 6)
        wq, bq = _linear_init(lk[0], H, H)
        wk, bk = _linear_init(lk[1], H, H)
        wv, bv = _linear_init(lk[2], H, H)
        wo, bo = _linear_init(lk[3], H, H)
        w1, b1 = _linear_init(lk[4], H, F)
        w2, b2 = _linear_init(lk[5], F, H)
        return dict(
            wqkv=jnp.concatenate([wq, wk, wv], axis=1),     # (H, 3H)
            bqkv=jnp.concatenate([bq, bk, bv], axis=1),     # (1, 3H)
            wo=wo, bo=bo, w1=w1, b1=b1, w2=w2, b2=b2,
            ln1_g=jnp.ones((1, H), jnp.float32), ln1_b=jnp.zeros((1, H), jnp.float32),
            ln2_g=jnp.ones((1, H), jnp.float32), ln2_b=jnp.zeros((1, H), jnp.float32))

    layers = [make_layer(keys[2 + i]) for i in range(num_layers)]
    stack = lambda name: jnp.stack([l[name] for l in layers], axis=0)

    return dict(
        in_w=in_w.astype(jnp.bfloat16), in_b=in_b,
        out_w=out_w.astype(jnp.bfloat16), out_b=out_b,
        pe=sinusoidal_pe(max_len, H),
        wqkv=stack("wqkv").astype(jnp.bfloat16), bqkv=stack("bqkv"),
        wo=stack("wo").astype(jnp.bfloat16), bo=stack("bo"),
        w1=stack("w1").astype(jnp.bfloat16), b1=stack("b1"),
        w2=stack("w2").astype(jnp.bfloat16), b2=stack("b2"),
        ln1_g=stack("ln1_g"), ln1_b=stack("ln1_b"),
        ln2_g=stack("ln2_g"), ln2_b=stack("ln2_b"),
    )


# ----------------------------- pure-JAX reference ---------------------------------

def reference_forward(state, error, params, *, num_heads):
    B, S, _ = state.shape
    H = params["in_w"].shape[1]
    nh, dh = num_heads, H // num_heads

    def ln(x, g, b):
        m = x.mean(-1, keepdims=True)
        v = ((x - m) ** 2).mean(-1, keepdims=True)
        return (x - m) * jax.lax.rsqrt(v + 1e-5) * g + b

    x = jnp.concatenate([state, error], axis=-1).astype(jnp.float32)
    h = x @ params["in_w"].astype(jnp.float32) + params["in_b"]
    h = h + params["pe"][:S][None]
    for l in range(params["wqkv"].shape[0]):
        hn = ln(h, params["ln1_g"][l], params["ln1_b"][l])
        qkv = hn @ params["wqkv"][l].astype(jnp.float32) + params["bqkv"][l]
        q, k, v = qkv[..., :H], qkv[..., H:2 * H], qkv[..., 2 * H:]
        q = q.reshape(B, S, nh, dh).transpose(0, 2, 1, 3)
        k = k.reshape(B, S, nh, dh).transpose(0, 2, 1, 3)
        v = v.reshape(B, S, nh, dh).transpose(0, 2, 1, 3)
        s = (q @ k.transpose(0, 1, 3, 2)) / math.sqrt(dh)
        p = jax.nn.softmax(s, axis=-1)
        o = (p @ v).transpose(0, 2, 1, 3).reshape(B, S, H)
        h = h + o @ params["wo"][l].astype(jnp.float32) + params["bo"][l]
        hn2 = ln(h, params["ln2_g"][l], params["ln2_b"][l])
        ff = jnp.maximum(hn2 @ params["w1"][l].astype(jnp.float32) + params["b1"][l], 0.0)
        ff = ff @ params["w2"][l].astype(jnp.float32) + params["b2"][l]
        h = h + ff
    last = h[:, -1, :]
    return last @ params["out_w"].astype(jnp.float32) + params["out_b"]


# ----------------------------- main ------------------------------------------------

if __name__ == "__main__":
    B, S = 2, 8
    state_dim, error_dim = 6, 2
    # torch module defaults: hidden_dim=128, num_heads=4, num_layers=4, output_dim=4
    hidden_dim, num_heads, num_layers, output_dim = 128, 4, 4, 4

    key = jax.random.PRNGKey(0)
    kp, ks, ke = jax.random.split(key, 3)
    params = init_params(kp, state_dim, error_dim, output_dim,
                         hidden_dim, num_heads, num_layers)

    state = jax.random.normal(ks, (B, S, state_dim), jnp.float32)
    error = jax.random.normal(ke, (B, S, error_dim), jnp.float32)

    fwd = jax.jit(functools.partial(actor_transformer_forward, num_heads=num_heads))
    out = jax.block_until_ready(fwd(state, error, params))

    assert out.shape == (B, output_dim) and out.dtype == jnp.float32
    assert bool(jnp.all(jnp.isfinite(out)))

    ref = reference_forward(state, error, params, num_heads=num_heads)
    max_err = float(jnp.max(jnp.abs(out - ref)))
    assert max_err < 0.2, f"kernel/reference mismatch: max abs err = {max_err}"

    print("KERNEL_OK")
</pallas_src>

<mosaic_0001>
module attributes {stable_mosaic.version = 11 : i64} {
  func.func @_fused_forward_kernel(%arg0: i32, %arg1: memref<16x8xf32, #tpu.memory_space<vmem>>, %arg2: memref<8x128xf32, #tpu.memory_space<vmem>>, %arg3: memref<8x128xbf16, #tpu.memory_space<vmem>>, %arg4: memref<1x128xf32, #tpu.memory_space<vmem>>, %arg5: memref<1x1x128xf32, #tpu.memory_space<vmem>>, %arg6: memref<1x1x128xf32, #tpu.memory_space<vmem>>, %arg7: memref<1x128x384xbf16, #tpu.memory_space<vmem>>, %arg8: memref<1x1x384xf32, #tpu.memory_space<vmem>>, %arg9: memref<1x128x128xbf16, #tpu.memory_space<vmem>>, %arg10: memref<1x1x128xf32, #tpu.memory_space<vmem>>, %arg11: memref<1x1x128xf32, #tpu.memory_space<vmem>>, %arg12: memref<1x1x128xf32, #tpu.memory_space<vmem>>, %arg13: memref<1x128x2048xbf16, #tpu.memory_space<vmem>>, %arg14: memref<1x1x2048xf32, #tpu.memory_space<vmem>>, %arg15: memref<1x2048x128xbf16, #tpu.memory_space<vmem>>, %arg16: memref<1x1x128xf32, #tpu.memory_space<vmem>>, %arg17: memref<128x4xbf16, #tpu.memory_space<vmem>>, %arg18: memref<1x4xf32, #tpu.memory_space<vmem>>, %arg19: memref<2x4xf32, #tpu.memory_space<vmem>>, %arg20: memref<16x128xf32, #tpu.memory_space<vmem>>) attributes {dimension_semantics = [#tpu.dimension_semantics<arbitrary>], iteration_bounds = array<i64: 4>, scalar_prefetch = 0 : i64, scratch_operands = 1 : i64, tpu.core_type = #tpu.core_type<tc>, window_params = [{pipeline_mode = #tpu.pipeline_mode<synchronous>, transform_indices = @transform_0, window_bounds = array<i64: 16, 8>}, {pipeline_mode = #tpu.pipeline_mode<synchronous>, transform_indices = @transform_1, window_bounds = array<i64: 8, 128>}, {pipeline_mode = #tpu.pipeline_mode<synchronous>, transform_indices = @transform_2, window_bounds = array<i64: 8, 128>}, {pipeline_mode = #tpu.pipeline_mode<synchronous>, transform_indices = @transform_3, window_bounds = array<i64: 1, 128>}, {transform_indices = @transform_4, window_bounds = array<i64: 1, 1, 128>}, {transform_indices = @transform_5, window_bounds = array<i64: 1, 1, 128>}, {transform_indices = @transform_6, window_bounds = array<i64: 1, 128, 384>}, {transform_indices = @transform_7, window_bounds = array<i64: 1, 1, 384>}, {transform_indices = @transform_8, window_bounds = array<i64: 1, 128, 128>}, {transform_indices = @transform_9, window_bounds = array<i64: 1, 1, 128>}, {transform_indices = @transform_10, window_bounds = array<i64: 1, 1, 128>}, {transform_indices = @transform_11, window_bounds = array<i64: 1, 1, 128>}, {transform_indices = @transform_12, window_bounds = array<i64: 1, 128, 2048>}, {transform_indices = @transform_13, window_bounds = array<i64: 1, 1, 2048>}, {transform_indices = @transform_14, window_bounds = array<i64: 1, 2048, 128>}, {transform_indices = @transform_15, window_bounds = array<i64: 1, 1, 128>}, {pipeline_mode = #tpu.pipeline_mode<synchronous>, transform_indices = @transform_16, window_bounds = array<i64: 128, 4>}, {pipeline_mode = #tpu.pipeline_mode<synchronous>, transform_indices = @transform_17, window_bounds = array<i64: 1, 4>}, {pipeline_mode = #tpu.pipeline_mode<synchronous>, transform_indices = @transform_18, window_bounds = array<i64: 2, 4>}]} {
    %c0_i32 = arith.constant 0 : i32
    %0 = arith.cmpi eq, %arg0, %c0_i32 : i32
    %1 = arith.extui %0 : i1 to i32
    %c0_i32_0 = arith.constant 0 : i32
    %2 = arith.cmpi ne, %1, %c0_i32_0 : i32
    scf.if %2 {
      %c0_79 = arith.constant 0 : index
      %c0_80 = arith.constant 0 : index
      %201 = vector.load %arg1[%c0_79, %c0_80] : memref<16x8xf32, #tpu.memory_space<vmem>>, vector<16x8xf32>
      %202 = arith.truncf %201 : vector<16x8xf32> to vector<16x8xbf16>
      %c0_81 = arith.constant 0 : index
      %c0_82 = arith.constant 0 : index
      %203 = vector.load %arg3[%c0_81, %c0_82] : memref<8x128xbf16, #tpu.memory_space<vmem>>, vector<8x128xbf16>
      %cst_83 = arith.constant dense<0.000000e+00> : vector<16x128xf32>
      %204 = tpu.matmul %202, %203, %cst_83 {dimension_numbers = #tpu.dot_dimension_numbers<[1], [0], [0], [1], [0, 0, 1, 1], [], []>} : vector<16x8xbf16>, vector<8x128xbf16>, vector<16x128xf32> -> vector<16x128xf32>
      %c0_84 = arith.constant 0 : index
      %c0_85 = arith.constant 0 : index
      %205 = vector.load %arg4[%c0_84, %c0_85] : memref<1x128xf32, #tpu.memory_space<vmem>>, vector<1x128xf32>
      %206 = vector.broadcast %205 : vector<1x128xf32> to vector<16x128xf32>
      %207 = arith.addf %204, %206 : vector<16x128xf32>
      %c0_86 = arith.constant 0 : index
      %c0_87 = arith.constant 0 : index
      %208 = vector.load %arg2[%c0_86, %c0_87] : memref<8x128xf32, #tpu.memory_space<vmem>>, vector<8x128xf32>
      %209 = tpu.concatenate %208, %208 in 0 : vector<8x128xf32>, vector<8x128xf32> -> vector<16x128xf32>
      %210 = arith.addf %207, %209 : vector<16x128xf32>
      %c0_88 = arith.constant 0 : index
      %c0_89 = arith.constant 0 : index
      %211 = vector.load %arg20[%c0_88, %c0_89] : memref<16x128xf32, #tpu.memory_space<vmem>>, vector<16x128xf32>
      tpu.vector_store %arg20[%c0_88, %c0_89], %210 {strides = array<i32>} : memref<16x128xf32, #tpu.memory_space<vmem>>, vector<16x128xf32>,
    } else {
    }
    %c0 = arith.constant 0 : index
    %c0_1 = arith.constant 0 : index
    %3 = vector.load %arg20[%c0, %c0_1] : memref<16x128xf32, #tpu.memory_space<vmem>>, vector<16x128xf32>
    %c0_2 = arith.constant 0 : index
    %c0_3 = arith.constant 0 : index
    %c0_4 = arith.constant 0 : index
    %4 = vector.load %arg5[%c0_2, %c0_3, %c0_4] : memref<1x1x128xf32, #tpu.memory_space<vmem>>, vector<1x1x128xf32>
    %5 = vector.shape_cast %4 : vector<1x1x128xf32> to vector<1x128xf32>
    %c0_5 = arith.constant 0 : index
    %c0_6 = arith.constant 0 : index
    %c0_7 = arith.constant 0 : index
    %6 = vector.load %arg6[%c0_5, %c0_6, %c0_7] : memref<1x1x128xf32, #tpu.memory_space<vmem>>, vector<1x1x128xf32>
    %7 = vector.shape_cast %6 : vector<1x1x128xf32> to vector<1x128xf32>
    %cst = arith.constant dense<0.000000e+00> : vector<16xf32>
    %8 = vector.multi_reduction <add>, %3, %cst [1] : vector<16x128xf32> to vector<16xf32>
    %9 = vector.shape_cast %8 : vector<16xf32> to vector<16x1xf32>
    %cst_8 = arith.constant 1.280000e+02 : f32
    %10 = vector.broadcast %cst_8 : f32 to vector<16x1xf32>
    %11 = arith.divf %9, %10 : vector<16x1xf32>
    %12 = vector.broadcast %11 : vector<16x1xf32> to vector<16x128xf32>
    %13 = arith.subf %3, %12 : vector<16x128xf32>
    %14 = arith.mulf %13, %13 : vector<16x128xf32>
    %cst_9 = arith.constant dense<0.000000e+00> : vector<16xf32>
    %15 = vector.multi_reduction <add>, %14, %cst_9 [1] : vector<16x128xf32> to vector<16xf32>
    %16 = vector.shape_cast %15 : vector<16xf32> to vector<16x1xf32>
    %cst_10 = arith.constant 1.280000e+02 : f32
    %17 = vector.broadcast %cst_10 : f32 to vector<16x1xf32>
    %18 = arith.divf %16, %17 : vector<16x1xf32>
    %cst_11 = arith.constant 9.99999974E-6 : f32
    %19 = vector.broadcast %cst_11 : f32 to vector<16x1xf32>
    %20 = arith.addf %18, %19 : vector<16x1xf32>
    %21 = math.rsqrt %20 : vector<16x1xf32>
    %22 = vector.broadcast %21 : vector<16x1xf32> to vector<16x128xf32>
    %23 = arith.mulf %13, %22 : vector<16x128xf32>
    %24 = vector.broadcast %5 : vector<1x128xf32> to vector<16x128xf32>
    %25 = arith.mulf %23, %24 : vector<16x128xf32>
    %26 = vector.broadcast %7 : vector<1x128xf32> to vector<16x128xf32>
    %27 = arith.addf %25, %26 : vector<16x128xf32>
    %28 = arith.truncf %27 : vector<16x128xf32> to vector<16x128xbf16>
    %c0_12 = arith.constant 0 : index
    %c0_13 = arith.constant 0 : index
    %c0_14 = arith.constant 0 : index
    %29 = vector.load %arg7[%c0_12, %c0_13, %c0_14] : memref<1x128x384xbf16, #tpu.memory_space<vmem>>, vector<1x128x384xbf16>
    %30 = vector.shape_cast %29 : vector<1x128x384xbf16> to vector<128x384xbf16>
    %cst_15 = arith.constant dense<0.000000e+00> : vector<16x384xf32>
    %31 = tpu.matmul %28, %30, %cst_15 {dimension_numbers = #tpu.dot_dimension_numbers<[1], [0], [0], [1], [0, 0, 1, 1], [], []>} : vector<16x128xbf16>, vector<128x384xbf16>, vector<16x384xf32> -> vector<16x384xf32>
    %c0_16 = arith.constant 0 : index
    %c0_17 = arith.constant 0 : index
    %c0_18 = arith.constant 0 : index
    %32 = vector.load %arg8[%c0_16, %c0_17, %c0_18] : memref<1x1x384xf32, #tpu.memory_space<vmem>>, vector<1x1x384xf32>
    %33 = vector.shape_cast %32 : vector<1x1x384xf32> to vector<1x384xf32>
    %34 = vector.broadcast %33 : vector<1x384xf32> to vector<16x384xf32>
    %35 = arith.addf %31, %34 : vector<16x384xf32>
    %36 = vector.extract_strided_slice %35 {offsets = [0, 0], sizes = [16, 128], strides = [1, 1]} : vector<16x384xf32> to vector<16x128xf32>
    %37 = vector.shape_cast %36 : vector<16x128xf32> to vector<2x8x128xf32>
    %38 = vector.extract_strided_slice %35 {offsets = [0, 128], sizes = [16, 128], strides = [1, 1]} : vector<16x384xf32> to vector<16x128xf32>
    %39 = vector.shape_cast %38 : vector<16x128xf32> to vector<2x8x128xf32>
    %40 = vector.extract_strided_slice %35 {offsets = [0, 256], sizes = [16, 128], strides = [1, 1]} : vector<16x384xf32> to vector<16x128xf32>
    %41 = vector.shape_cast %40 : vector<16x128xf32> to vector<2x8x128xf32>
    %c0_19 = arith.constant 0 : index
    %c0_20 = arith.constant 0 : index
    %c0_21 = arith.constant 0 : index
    %42 = vector.load %arg9[%c0_19, %c0_20, %c0_21] : memref<1x128x128xbf16, #tpu.memory_space<vmem>>, vector<1x128x128xbf16>
    %43 = vector.shape_cast %42 : vector<1x128x128xbf16> to vector<128x128xbf16>
    %cst_22 = arith.constant 0.000000e+00 : f32
    %44 = vector.broadcast %cst_22 : f32 to vector<16x128xf32>
    %45 = vector.extract_strided_slice %37 {offsets = [0, 0, 0], sizes = [2, 8, 32], strides = [1, 1, 1]} : vector<2x8x128xf32> to vector<2x8x32xf32>
    %cst_23 = arith.constant 0.176776692 : f32
    %46 = vector.broadcast %cst_23 : f32 to vector<2x8x32xf32>
    %47 = arith.mulf %45, %46 : vector<2x8x32xf32>
    %48 = arith.truncf %47 : vector<2x8x32xf32> to vector<2x8x32xbf16>
    %49 = vector.extract_strided_slice %39 {offsets = [0, 0, 0], sizes = [2, 8, 32], strides = [1, 1, 1]} : vector<2x8x128xf32> to vector<2x8x32xf32>
    %50 = arith.truncf %49 : vector<2x8x32xf32> to vector<2x8x32xbf16>
    %51 = vector.extract_strided_slice %41 {offsets = [0, 0, 0], sizes = [2, 8, 32], strides = [1, 1, 1]} : vector<2x8x128xf32> to vector<2x8x32xf32>
    %52 = arith.truncf %51 : vector<2x8x32xf32> to vector<2x8x32xbf16>
    "tpu.trace_start"() <{level = 10 : i32, message = "bqd,bkd->bqk"}> : () -> ()
    %cst_24 = arith.constant dense<0.000000e+00> : vector<2x8x8xf32>
    %53 = tpu.matmul %48, %50, %cst_24 {dimension_numbers = #tpu.dot_dimension_numbers<[2], [2], [1], [1], [0, 0, 0, 1, 1, 1], [0], [0]>} : vector<2x8x32xbf16>, vector<2x8x32xbf16>, vector<2x8x8xf32> -> vector<2x8x8xf32>
    "tpu.trace_stop"() : () -> ()
    %cst_25 = arith.constant dense<0xFF800000> : vector<2x8xf32>
    %54 = vector.multi_reduction <maximumf>, %53, %cst_25 [2] : vector<2x8x8xf32> to vector<2x8xf32>
    %55 = vector.shape_cast %54 : vector<2x8xf32> to vector<2x8x1xf32>
    %56 = vector.broadcast %55 : vector<2x8x1xf32> to vector<2x8x8xf32>
    %57 = arith.subf %53, %56 : vector<2x8x8xf32>
    %58 = math.exp %57 : vector<2x8x8xf32>
    %cst_26 = arith.constant dense<0.000000e+00> : vector<2x8xf32>
    %59 = vector.multi_reduction <add>, %58, %cst_26 [2] : vector<2x8x8xf32> to vector<2x8xf32>
    %60 = vector.shape_cast %59 : vector<2x8xf32> to vector<2x8x1xf32>
    %61 = tpu.reciprocal %60 {approx = true} : vector<2x8x1xf32> -> vector<2x8x1xf32>
    %62 = vector.broadcast %61 : vector<2x8x1xf32> to vector<2x8x8xf32>
    %63 = arith.mulf %58, %62 : vector<2x8x8xf32>
    %64 = arith.truncf %63 : vector<2x8x8xf32> to vector<2x8x8xbf16>
    "tpu.trace_start"() <{level = 10 : i32, message = "bqk,bkd->bqd"}> : () -> ()
    %cst_27 = arith.constant dense<0.000000e+00> : vector<2x8x32xf32>
    %65 = tpu.matmul %64, %52, %cst_27 {dimension_numbers = #tpu.dot_dimension_numbers<[2], [1], [1], [2], [0, 0, 0, 1, 1, 2], [0], [0]>} : vector<2x8x8xbf16>, vector<2x8x32xbf16>, vector<2x8x32xf32> -> vector<2x8x32xf32>
    "tpu.trace_stop"() : () -> ()
    %66 = vector.shape_cast %65 : vector<2x8x32xf32> to vector<16x32xf32>
    %67 = arith.truncf %66 : vector<16x32xf32> to vector<16x32xbf16>
    %68 = vector.extract_strided_slice %43 {offsets = [0, 0], sizes = [32, 128], strides = [1, 1]} : vector<128x128xbf16> to vector<32x128xbf16>
    %cst_28 = arith.constant dense<0.000000e+00> : vector<16x128xf32>
    %69 = tpu.matmul %67, %68, %cst_28 {dimension_numbers = #tpu.dot_dimension_numbers<[1], [0], [0], [1], [0, 0, 1, 1], [], []>} : vector<16x32xbf16>, vector<32x128xbf16>, vector<16x128xf32> -> vector<16x128xf32>
    %70 = arith.addf %44, %69 : vector<16x128xf32>
    %71 = vector.extract_strided_slice %37 {offsets = [0, 0, 32], sizes = [2, 8, 32], strides = [1, 1, 1]} : vector<2x8x128xf32> to vector<2x8x32xf32>
    %cst_29 = arith.constant 0.176776692 : f32
    %72 = vector.broadcast %cst_29 : f32 to vector<2x8x32xf32>
    %73 = arith.mulf %71, %72 : vector<2x8x32xf32>
    %74 = arith.truncf %73 : vector<2x8x32xf32> to vector<2x8x32xbf16>
    %75 = vector.extract_strided_slice %39 {offsets = [0, 0, 32], sizes = [2, 8, 32], strides = [1, 1, 1]} : vector<2x8x128xf32> to vector<2x8x32xf32>
    %76 = arith.truncf %75 : vector<2x8x32xf32> to vector<2x8x32xbf16>
    %77 = vector.extract_strided_slice %41 {offsets = [0, 0, 32], sizes = [2, 8, 32], strides = [1, 1, 1]} : vector<2x8x128xf32> to vector<2x8x32xf32>
    %78 = arith.truncf %77 : vector<2x8x32xf32> to vector<2x8x32xbf16>
    "tpu.trace_start"() <{level = 10 : i32, message = "bqd,bkd->bqk"}> : () -> ()
    %cst_30 = arith.constant dense<0.000000e+00> : vector<2x8x8xf32>
    %79 = tpu.matmul %74, %76, %cst_30 {dimension_numbers = #tpu.dot_dimension_numbers<[2], [2], [1], [1], [0, 0, 0, 1, 1, 1], [0], [0]>} : vector<2x8x32xbf16>, vector<2x8x32xbf16>, vector<2x8x8xf32> -> vector<2x8x8xf32>
    "tpu.trace_stop"() : () -> ()
    %cst_31 = arith.constant dense<0xFF800000> : vector<2x8xf32>
    %80 = vector.multi_reduction <maximumf>, %79, %cst_31 [2] : vector<2x8x8xf32> to vector<2x8xf32>
    %81 = vector.shape_cast %80 : vector<2x8xf32> to vector<2x8x1xf32>
    %82 = vector.broadcast %81 : vector<2x8x1xf32> to vector<2x8x8xf32>
    %83 = arith.subf %79, %82 : vector<2x8x8xf32>
    %84 = math.exp %83 : vector<2x8x8xf32>
    %cst_32 = arith.constant dense<0.000000e+00> : vector<2x8xf32>
    %85 = vector.multi_reduction <add>, %84, %cst_32 [2] : vector<2x8x8xf32> to vector<2x8xf32>
    %86 = vector.shape_cast %85 : vector<2x8xf32> to vector<2x8x1xf32>
    %87 = tpu.reciprocal %86 {approx = true} : vector<2x8x1xf32> -> vector<2x8x1xf32>
    %88 = vector.broadcast %87 : vector<2x8x1xf32> to vector<2x8x8xf32>
    %89 = arith.mulf %84, %88 : vector<2x8x8xf32>
    %90 = arith.truncf %89 : vector<2x8x8xf32> to vector<2x8x8xbf16>
    "tpu.trace_start"() <{level = 10 : i32, message = "bqk,bkd->bqd"}> : () -> ()
    %cst_33 = arith.constant dense<0.000000e+00> : vector<2x8x32xf32>
    %91 = tpu.matmul %90, %78, %cst_33 {dimension_numbers = #tpu.dot_dimension_numbers<[2], [1], [1], [2], [0, 0, 0, 1, 1, 2], [0], [0]>} : vector<2x8x8xbf16>, vector<2x8x32xbf16>, vector<2x8x32xf32> -> vector<2x8x32xf32>
    "tpu.trace_stop"() : () -> ()
    %92 = vector.shape_cast %91 : vector<2x8x32xf32> to vector<16x32xf32>
    %93 = arith.truncf %92 : vector<16x32xf32> to vector<16x32xbf16>
    %94 = vector.extract_strided_slice %43 {offsets = [32, 0], sizes = [32, 128], strides = [1, 1]} : vector<128x128xbf16> to vector<32x128xbf16>
    %cst_34 = arith.constant dense<0.000000e+00> : vector<16x128xf32>
    %95 = tpu.matmul %93, %94, %cst_34 {dimension_numbers = #tpu.dot_dimension_numbers<[1], [0], [0], [1], [0, 0, 1, 1], [], []>} : vector<16x32xbf16>, vector<32x128xbf16>, vector<16x128xf32> -> vector<16x128xf32>
    %96 = arith.addf %70, %95 : vector<16x128xf32>
    %97 = vector.extract_strided_slice %37 {offsets = [0, 0, 64], sizes = [2, 8, 32], strides = [1, 1, 1]} : vector<2x8x128xf32> to vector<2x8x32xf32>
    %cst_35 = arith.constant 0.176776692 : f32
    %98 = vector.broadcast %cst_35 : f32 to vector<2x8x32xf32>
    %99 = arith.mulf %97, %98 : vector<2x8x32xf32>
    %100 = arith.truncf %99 : vector<2x8x32xf32> to vector<2x8x32xbf16>
    %101 = vector.extract_strided_slice %39 {offsets = [0, 0, 64], sizes = [2, 8, 32], strides = [1, 1, 1]} : vector<2x8x128xf32> to vector<2x8x32xf32>
    %102 = arith.truncf %101 : vector<2x8x32xf32> to vector<2x8x32xbf16>
    %103 = vector.extract_strided_slice %41 {offsets = [0, 0, 64], sizes = [2, 8, 32], strides = [1, 1, 1]} : vector<2x8x128xf32> to vector<2x8x32xf32>
    %104 = arith.truncf %103 : vector<2x8x32xf32> to vector<2x8x32xbf16>
    "tpu.trace_start"() <{level = 10 : i32, message = "bqd,bkd->bqk"}> : () -> ()
    %cst_36 = arith.constant dense<0.000000e+00> : vector<2x8x8xf32>
    %105 = tpu.matmul %100, %102, %cst_36 {dimension_numbers = #tpu.dot_dimension_numbers<[2], [2], [1], [1], [0, 0, 0, 1, 1, 1], [0], [0]>} : vector<2x8x32xbf16>, vector<2x8x32xbf16>, vector<2x8x8xf32> -> vector<2x8x8xf32>
    "tpu.trace_stop"() : () -> ()
    %cst_37 = arith.constant dense<0xFF800000> : vector<2x8xf32>
    %106 = vector.multi_reduction <maximumf>, %105, %cst_37 [2] : vector<2x8x8xf32> to vector<2x8xf32>
    %107 = vector.shape_cast %106 : vector<2x8xf32> to vector<2x8x1xf32>
    %108 = vector.broadcast %107 : vector<2x8x1xf32> to vector<2x8x8xf32>
    %109 = arith.subf %105, %108 : vector<2x8x8xf32>
    %110 = math.exp %109 : vector<2x8x8xf32>
    %cst_38 = arith.constant dense<0.000000e+00> : vector<2x8xf32>
    %111 = vector.multi_reduction <add>, %110, %cst_38 [2] : vector<2x8x8xf32> to vector<2x8xf32>
    %112 = vector.shape_cast %111 : vector<2x8xf32> to vector<2x8x1xf32>
    %113 = tpu.reciprocal %112 {approx = true} : vector<2x8x1xf32> -> vector<2x8x1xf32>
    %114 = vector.broadcast %113 : vector<2x8x1xf32> to vector<2x8x8xf32>
    %115 = arith.mulf %110, %114 : vector<2x8x8xf32>
    %116 = arith.truncf %115 : vector<2x8x8xf32> to vector<2x8x8xbf16>
    "tpu.trace_start"() <{level = 10 : i32, message = "bqk,bkd->bqd"}> : () -> ()
    %cst_39 = arith.constant dense<0.000000e+00> : vector<2x8x32xf32>
    %117 = tpu.matmul %116, %104, %cst_39 {dimension_numbers = #tpu.dot_dimension_numbers<[2], [1], [1], [2], [0, 0, 0, 1, 1, 2], [0], [0]>} : vector<2x8x8xbf16>, vector<2x8x32xbf16>, vector<2x8x32xf32> -> vector<2x8x32xf32>
    "tpu.trace_stop"() : () -> ()
    %118 = vector.shape_cast %117 : vector<2x8x32xf32> to vector<16x32xf32>
    %119 = arith.truncf %118 : vector<16x32xf32> to vector<16x32xbf16>
    %120 = vector.extract_strided_slice %43 {offsets = [64, 0], sizes = [32, 128], strides = [1, 1]} : vector<128x128xbf16> to vector<32x128xbf16>
    %cst_40 = arith.constant dense<0.000000e+00> : vector<16x128xf32>
    %121 = tpu.matmul %119, %120, %cst_40 {dimension_numbers = #tpu.dot_dimension_numbers<[1], [0], [0], [1], [0, 0, 1, 1], [], []>} : vector<16x32xbf16>, vector<32x128xbf16>, vector<16x128xf32> -> vector<16x128xf32>
    %122 = arith.addf %96, %121 : vector<16x128xf32>
    %123 = vector.extract_strided_slice %37 {offsets = [0, 0, 96], sizes = [2, 8, 32], strides = [1, 1, 1]} : vector<2x8x128xf32> to vector<2x8x32xf32>
    %cst_41 = arith.constant 0.176776692 : f32
    %124 = vector.broadcast %cst_41 : f32 to vector<2x8x32xf32>
    %125 = arith.mulf %123, %124 : vector<2x8x32xf32>
    %126 = arith.truncf %125 : vector<2x8x32xf32> to vector<2x8x32xbf16>
    %127 = vector.extract_strided_slice %39 {offsets = [0, 0, 96], sizes = [2, 8, 32], strides = [1, 1, 1]} : vector<2x8x128xf32> to vector<2x8x32xf32>
    %128 = arith.truncf %127 : vector<2x8x32xf32> to vector<2x8x32xbf16>
    %129 = vector.extract_strided_slice %41 {offsets = [0, 0, 96], sizes = [2, 8, 32], strides = [1, 1, 1]} : vector<2x8x128xf32> to vector<2x8x32xf32>
    %130 = arith.truncf %129 : vector<2x8x32xf32> to vector<2x8x32xbf16>
    "tpu.trace_start"() <{level = 10 : i32, message = "bqd,bkd->bqk"}> : () -> ()
    %cst_42 = arith.constant dense<0.000000e+00> : vector<2x8x8xf32>
    %131 = tpu.matmul %126, %128, %cst_42 {dimension_numbers = #tpu.dot_dimension_numbers<[2], [2], [1], [1], [0, 0, 0, 1, 1, 1], [0], [0]>} : vector<2x8x32xbf16>, vector<2x8x32xbf16>, vector<2x8x8xf32> -> vector<2x8x8xf32>
    "tpu.trace_stop"() : () -> ()
    %cst_43 = arith.constant dense<0xFF800000> : vector<2x8xf32>
    %132 = vector.multi_reduction <maximumf>, %131, %cst_43 [2] : vector<2x8x8xf32> to vector<2x8xf32>
    %133 = vector.shape_cast %132 : vector<2x8xf32> to vector<2x8x1xf32>
    %134 = vector.broadcast %133 : vector<2x8x1xf32> to vector<2x8x8xf32>
    %135 = arith.subf %131, %134 : vector<2x8x8xf32>
    %136 = math.exp %135 : vector<2x8x8xf32>
    %cst_44 = arith.constant dense<0.000000e+00> : vector<2x8xf32>
    %137 = vector.multi_reduction <add>, %136, %cst_44 [2] : vector<2x8x8xf32> to vector<2x8xf32>
    %138 = vector.shape_cast %137 : vector<2x8xf32> to vector<2x8x1xf32>
    %139 = tpu.reciprocal %138 {approx = true} : vector<2x8x1xf32> -> vector<2x8x1xf32>
    %140 = vector.broadcast %139 : vector<2x8x1xf32> to vector<2x8x8xf32>
    %141 = arith.mulf %136, %140 : vector<2x8x8xf32>
    %142 = arith.truncf %141 : vector<2x8x8xf32> to vector<2x8x8xbf16>
    "tpu.trace_start"() <{level = 10 : i32, message = "bqk,bkd->bqd"}> : () -> ()
    %cst_45 = arith.constant dense<0.000000e+00> : vector<2x8x32xf32>
    %143 = tpu.matmul %142, %130, %cst_45 {dimension_numbers = #tpu.dot_dimension_numbers<[2], [1], [1], [2], [0, 0, 0, 1, 1, 2], [0], [0]>} : vector<2x8x8xbf16>, vector<2x8x32xbf16>, vector<2x8x32xf32> -> vector<2x8x32xf32>
    "tpu.trace_stop"() : () -> ()
    %144 = vector.shape_cast %143 : vector<2x8x32xf32> to vector<16x32xf32>
    %145 = arith.truncf %144 : vector<16x32xf32> to vector<16x32xbf16>
    %146 = vector.extract_strided_slice %43 {offsets = [96, 0], sizes = [32, 128], strides = [1, 1]} : vector<128x128xbf16> to vector<32x128xbf16>
    %cst_46 = arith.constant dense<0.000000e+00> : vector<16x128xf32>
    %147 = tpu.matmul %145, %146, %cst_46 {dimension_numbers = #tpu.dot_dimension_numbers<[1], [0], [0], [1], [0, 0, 1, 1], [], []>} : vector<16x32xbf16>, vector<32x128xbf16>, vector<16x128xf32> -> vector<16x128xf32>
    %148 = arith.addf %122, %147 : vector<16x128xf32>
    %149 = arith.addf %3, %148 : vector<16x128xf32>
    %c0_47 = arith.constant 0 : index
    %c0_48 = arith.constant 0 : index
    %c0_49 = arith.constant 0 : index
    %150 = vector.load %arg10[%c0_47, %c0_48, %c0_49] : memref<1x1x128xf32, #tpu.memory_space<vmem>>, vector<1x1x128xf32>
    %151 = vector.shape_cast %150 : vector<1x1x128xf32> to vector<1x128xf32>
    %152 = vector.broadcast %151 : vector<1x128xf32> to vector<16x128xf32>
    %153 = arith.addf %149, %152 : vector<16x128xf32>
    %c0_50 = arith.constant 0 : index
    %c0_51 = arith.constant 0 : index
    %c0_52 = arith.constant 0 : index
    %154 = vector.load %arg11[%c0_50, %c0_51, %c0_52] : memref<1x1x128xf32, #tpu.memory_space<vmem>>, vector<1x1x128xf32>
    %155 = vector.shape_cast %154 : vector<1x1x128xf32> to vector<1x128xf32>
    %c0_53 = arith.constant 0 : index
    %c0_54 = arith.constant 0 : index
    %c0_55 = arith.constant 0 : index
    %156 = vector.load %arg12[%c0_53, %c0_54, %c0_55] : memref<1x1x128xf32, #tpu.memory_space<vmem>>, vector<1x1x128xf32>
    %157 = vector.shape_cast %156 : vector<1x1x128xf32> to vector<1x128xf32>
    %cst_56 = arith.constant dense<0.000000e+00> : vector<16xf32>
    %158 = vector.multi_reduction <add>, %153, %cst_56 [1] : vector<16x128xf32> to vector<16xf32>
    %159 = vector.shape_cast %158 : vector<16xf32> to vector<16x1xf32>
    %cst_57 = arith.constant 1.280000e+02 : f32
    %160 = vector.broadcast %cst_57 : f32 to vector<16x1xf32>
    %161 = arith.divf %159, %160 : vector<16x1xf32>
    %162 = vector.broadcast %161 : vector<16x1xf32> to vector<16x128xf32>
    %163 = arith.subf %153, %162 : vector<16x128xf32>
    %164 = arith.mulf %163, %163 : vector<16x128xf32>
    %cst_58 = arith.constant dense<0.000000e+00> : vector<16xf32>
    %165 = vector.multi_reduction <add>, %164, %cst_58 [1] : vector<16x128xf32> to vector<16xf32>
    %166 = vector.shape_cast %165 : vector<16xf32> to vector<16x1xf32>
    %cst_59 = arith.constant 1.280000e+02 : f32
    %167 = vector.broadcast %cst_59 : f32 to vector<16x1xf32>
    %168 = arith.divf %166, %167 : vector<16x1xf32>
    %cst_60 = arith.constant 9.99999974E-6 : f32
    %169 = vector.broadcast %cst_60 : f32 to vector<16x1xf32>
    %170 = arith.addf %168, %169 : vector<16x1xf32>
    %171 = math.rsqrt %170 : vector<16x1xf32>
    %172 = vector.broadcast %171 : vector<16x1xf32> to vector<16x128xf32>
    %173 = arith.mulf %163, %172 : vector<16x128xf32>
    %174 = vector.broadcast %155 : vector<1x128xf32> to vector<16x128xf32>
    %175 = arith.mulf %173, %174 : vector<16x128xf32>
    %176 = vector.broadcast %157 : vector<1x128xf32> to vector<16x128xf32>
    %177 = arith.addf %175, %176 : vector<16x128xf32>
    %178 = arith.truncf %177 : vector<16x128xf32> to vector<16x128xbf16>
    %c0_61 = arith.constant 0 : index
    %c0_62 = arith.constant 0 : index
    %c0_63 = arith.constant 0 : index
    %179 = vector.load %arg13[%c0_61, %c0_62, %c0_63] : memref<1x128x2048xbf16, #tpu.memory_space<vmem>>, vector<1x128x2048xbf16>
    %180 = vector.shape_cast %179 : vector<1x128x2048xbf16> to vector<128x2048xbf16>
    %cst_64 = arith.constant dense<0.000000e+00> : vector<16x2048xf32>
    %181 = tpu.matmul %178, %180, %cst_64 {dimension_numbers = #tpu.dot_dimension_numbers<[1], [0], [0], [1], [0, 0, 1, 1], [], []>} : vector<16x128xbf16>, vector<128x2048xbf16>, vector<16x2048xf32> -> vector<16x2048xf32>
    %c0_65 = arith.constant 0 : index
    %c0_66 = arith.constant 0 : index
    %c0_67 = arith.constant 0 : index
    %182 = vector.load %arg14[%c0_65, %c0_66, %c0_67] : memref<1x1x2048xf32, #tpu.memory_space<vmem>>, vector<1x1x2048xf32>
    %183 = vector.shape_cast %182 : vector<1x1x2048xf32> to vector<1x2048xf32>
    %184 = vector.broadcast %183 : vector<1x2048xf32> to vector<16x2048xf32>
    %185 = arith.addf %181, %184 : vector<16x2048xf32>
    %cst_68 = arith.constant 0.000000e+00 : f32
    %186 = vector.broadcast %cst_68 : f32 to vector<16x2048xf32>
    %187 = arith.maximumf %185, %186 : vector<16x2048xf32>
    %188 = arith.truncf %187 : vector<16x2048xf32> to vector<16x2048xbf16>
    %c0_69 = arith.constant 0 : index
    %c0_70 = arith.constant 0 : index
    %c0_71 = arith.constant 0 : index
    %189 = vector.load %arg15[%c0_69, %c0_70, %c0_71] : memref<1x2048x128xbf16, #tpu.memory_space<vmem>>, vector<1x2048x128xbf16>
    %190 = vector.shape_cast %189 : vector<1x2048x128xbf16> to vector<2048x128xbf16>
    %cst_72 = arith.constant dense<0.000000e+00> : vector<16x128xf32>
    %191 = tpu.matmul %188, %190, %cst_72 {dimension_numbers = #tpu.dot_dimension_numbers<[1], [0], [0], [1], [0, 0, 1, 1], [], []>} : vector<16x2048xbf16>, vector<2048x128xbf16>, vector<16x128xf32> -> vector<16x128xf32>
    %c0_73 = arith.constant 0 : index
    %c0_74 = arith.constant 0 : index
    %c0_75 = arith.constant 0 : index
    %192 = vector.load %arg16[%c0_73, %c0_74, %c0_75] : memref<1x1x128xf32, #tpu.memory_space<vmem>>, vector<1x1x128xf32>
    %193 = vector.shape_cast %192 : vector<1x1x128xf32> to vector<1x128xf32>
    %194 = vector.broadcast %193 : vector<1x128xf32> to vector<16x128xf32>
    %195 = arith.addf %191, %194 : vector<16x128xf32>
    %196 = arith.addf %153, %195 : vector<16x128xf32>
    %c0_76 = arith.constant 0 : index
    %c0_77 = arith.constant 0 : index
    %197 = vector.load %arg20[%c0_76, %c0_77] : memref<16x128xf32, #tpu.memory_space<vmem>>, vector<16x128xf32>
    tpu.vector_store %arg20[%c0_76, %c0_77], %196 {strides = array<i32>} : memref<16x128xf32, #tpu.memory_space<vmem>>, vector<16x128xf32>,
    %c3_i32 = arith.constant 3 : i32
    %198 = arith.cmpi eq, %arg0, %c3_i32 : i32
    %199 = arith.extui %198 : i1 to i32
    %c0_i32_78 = arith.constant 0 : i32
    %200 = arith.cmpi ne, %199, %c0_i32_78 : i32
    scf.if %200 {
      %c7 = arith.constant 7 : index
      %c0_79 = arith.constant 0 : index
      %201 = vector.load %arg20[%c7, %c0_79] : memref<16x128xf32, #tpu.memory_space<vmem>>, vector<1x128xf32>
      %c15 = arith.constant 15 : index
      %c0_80 = arith.constant 0 : index
      %202 = vector.load %arg20[%c15, %c0_80] : memref<16x128xf32, #tpu.memory_space<vmem>>, vector<1x128xf32>
      %203 = tpu.concatenate %201, %202 in 0 : vector<1x128xf32>, vector<1x128xf32> -> vector<2x128xf32>
      %204 = arith.truncf %203 : vector<2x128xf32> to vector<2x128xbf16>
      %c0_81 = arith.constant 0 : index
      %c0_82 = arith.constant 0 : index
      %205 = vector.load %arg17[%c0_81, %c0_82] : memref<128x4xbf16, #tpu.memory_space<vmem>>, vector<128x4xbf16>
      %cst_83 = arith.constant dense<0.000000e+00> : vector<2x4xf32>
      %206 = tpu.matmul %204, %205, %cst_83 {dimension_numbers = #tpu.dot_dimension_numbers<[1], [0], [0], [1], [0, 0, 1, 1], [], []>} : vector<2x128xbf16>, vector<128x4xbf16>, vector<2x4xf32> -> vector<2x4xf32>
      %c0_84 = arith.constant 0 : index
      %c0_85 = arith.constant 0 : index
      %207 = vector.load %arg18[%c0_84, %c0_85] : memref<1x4xf32, #tpu.memory_space<vmem>>, vector<1x4xf32>
      %208 = vector.broadcast %207 : vector<1x4xf32> to vector<2x4xf32>
      %209 = arith.addf %206, %208 : vector<2x4xf32>
      %c0_86 = arith.constant 0 : index
      %c0_87 = arith.constant 0 : index
      %210 = vector.load %arg19[%c0_86, %c0_87] : memref<2x4xf32, #tpu.memory_space<vmem>>, vector<2x4xf32>
      tpu.vector_store %arg19[%c0_86, %c0_87], %209 {strides = array<i32>} : memref<2x4xf32, #tpu.memory_space<vmem>>, vector<2x4xf32>,
    } else {
    }
    return
  }
  func.func @transform_0(%arg0: i32) -> (i32, i32) {
    %c0_i32 = arith.constant 0 : i32
    %c0_i32_0 = arith.constant 0 : i32
    %c0_i32_1 = arith.constant 0 : i32
    return %c0_i32, %c0_i32_0 : i32, i32
  }
  func.func @transform_1(%arg0: i32) -> (i32, i32) {
    %c0_i32 = arith.constant 0 : i32
    %c0_i32_0 = arith.constant 0 : i32
    %c0_i32_1 = arith.constant 0 : i32
    return %c0_i32, %c0_i32_0 : i32, i32
  }
  func.func @transform_2(%arg0: i32) -> (i32, i32) {
    %c0_i32 = arith.constant 0 : i32
    %c0_i32_0 = arith.constant 0 : i32
    %c0_i32_1 = arith.constant 0 : i32
    return %c0_i32, %c0_i32_0 : i32, i32
  }
  func.func @transform_3(%arg0: i32) -> (i32, i32) {
    %c0_i32 = arith.constant 0 : i32
    %c0_i32_0 = arith.constant 0 : i32
    %c0_i32_1 = arith.constant 0 : i32
    return %c0_i32, %c0_i32_0 : i32, i32
  }
  func.func @transform_4(%arg0: i32) -> (i32, i32, i32) {
    %c0_i32 = arith.constant 0 : i32
    %c0_i32_0 = arith.constant 0 : i32
    %c0_i32_1 = arith.constant 0 : i32
    return %arg0, %c0_i32, %c0_i32_0 : i32, i32, i32
  }
  func.func @transform_5(%arg0: i32) -> (i32, i32, i32) {
    %c0_i32 = arith.constant 0 : i32
    %c0_i32_0 = arith.constant 0 : i32
    %c0_i32_1 = arith.constant 0 : i32
    return %arg0, %c0_i32, %c0_i32_0 : i32, i32, i32
  }
  func.func @transform_6(%arg0: i32) -> (i32, i32, i32) {
    %c0_i32 = arith.constant 0 : i32
    %c0_i32_0 = arith.constant 0 : i32
    %c0_i32_1 = arith.constant 0 : i32
    return %arg0, %c0_i32, %c0_i32_0 : i32, i32, i32
  }
  func.func @transform_7(%arg0: i32) -> (i32, i32, i32) {
    %c0_i32 = arith.constant 0 : i32
    %c0_i32_0 = arith.constant 0 : i32
    %c0_i32_1 = arith.constant 0 : i32
    return %arg0, %c0_i32, %c0_i32_0 : i32, i32, i32
  }
  func.func @transform_8(%arg0: i32) -> (i32, i32, i32) {
    %c0_i32 = arith.constant 0 : i32
    %c0_i32_0 = arith.constant 0 : i32
    %c0_i32_1 = arith.constant 0 : i32
    return %arg0, %c0_i32, %c0_i32_0 : i32, i32, i32
  }
  func.func @transform_9(%arg0: i32) -> (i32, i32, i32) {
    %c0_i32 = arith.constant 0 : i32
    %c0_i32_0 = arith.constant 0 : i32
    %c0_i32_1 = arith.constant 0 : i32
    return %arg0, %c0_i32, %c0_i32_0 : i32, i32, i32
  }
  func.func @transform_10(%arg0: i32) -> (i32, i32, i32) {
    %c0_i32 = arith.constant 0 : i32
    %c0_i32_0 = arith.constant 0 : i32
    %c0_i32_1 = arith.constant 0 : i32
    return %arg0, %c0_i32, %c0_i32_0 : i32, i32, i32
  }
  func.func @transform_11(%arg0: i32) -> (i32, i32, i32) {
    %c0_i32 = arith.constant 0 : i32
    %c0_i32_0 = arith.constant 0 : i32
    %c0_i32_1 = arith.constant 0 : i32
    return %arg0, %c0_i32, %c0_i32_0 : i32, i32, i32
  }
  func.func @transform_12(%arg0: i32) -> (i32, i32, i32) {
    %c0_i32 = arith.constant 0 : i32
    %c0_i32_0 = arith.constant 0 : i32
    %c0_i32_1 = arith.constant 0 : i32
    return %arg0, %c0_i32, %c0_i32_0 : i32, i32, i32
  }
  func.func @transform_13(%arg0: i32) -> (i32, i32, i32) {
    %c0_i32 = arith.constant 0 : i32
    %c0_i32_0 = arith.constant 0 : i32
    %c0_i32_1 = arith.constant 0 : i32
    return %arg0, %c0_i32, %c0_i32_0 : i32, i32, i32
  }
  func.func @transform_14(%arg0: i32) -> (i32, i32, i32) {
    %c0_i32 = arith.constant 0 : i32
    %c0_i32_0 = arith.constant 0 : i32
    %c0_i32_1 = arith.constant 0 : i32
    return %arg0, %c0_i32, %c0_i32_0 : i32, i32, i32
  }
  func.func @transform_15(%arg0: i32) -> (i32, i32, i32) {
    %c0_i32 = arith.constant 0 : i32
    %c0_i32_0 = arith.constant 0 : i32
    %c0_i32_1 = arith.constant 0 : i32
    return %arg0, %c0_i32, %c0_i32_0 : i32, i32, i32
  }
  func.func @transform_16(%arg0: i32) -> (i32, i32) {
    %c0_i32 = arith.constant 0 : i32
    %c0_i32_0 = arith.constant 0 : i32
    %c0_i32_1 = arith.constant 0 : i32
    return %c0_i32, %c0_i32_0 : i32, i32
  }
  func.func @transform_17(%arg0: i32) -> (i32, i32) {
    %c0_i32 = arith.constant 0 : i32
    %c0_i32_0 = arith.constant 0 : i32
    %c0_i32_1 = arith.constant 0 : i32
    return %c0_i32, %c0_i32_0 : i32, i32
  }
  func.func @transform_18(%arg0: i32) -> (i32, i32) {
    %c0_i32 = arith.constant 0 : i32
    %c0_i32_0 = arith.constant 0 : i32
    %c0_i32_1 = arith.constant 0 : i32
    return %c0_i32, %c0_i32_0 : i32, i32
  }
}

</mosaic_0001>

<bundles_post_ra>
// kernel: actor_transformer_forward.1
= control target key start
LH: loop header
LB: loop body
LE: loop exit
PB: predicated region body
PF: predicated region fallthrough
CT: control target
= control target key end

     0   :  { %s8582_s0 = inlined_call_operand.vmem [shape: f32[16,8], index: 0, kind: input, shape index: {}]   ;;  %s8583_s1 = inlined_call_operand.vmem [shape: f32[8,128], index: 1, kind: input, shape index: {}]   ;;  %s8584_s2 = inlined_call_operand.hbm [shape: bf16[8,128], index: 2, kind: input, shape index: {}]   ;;  %s8585_s3 = inlined_call_operand.hbm [shape: f32[1,128], index: 3, kind: input, shape index: {}]   ;;  %s8586_s4 = inlined_call_operand.hbm [shape: f32[4,1,128], index: 4, kind: input, shape index: {}]   ;;  %s8587_s5 = inlined_call_operand.hbm [shape: f32[4,1,128], index: 5, kind: input, shape index: {}]   ;;  %s8588_s6 = inlined_call_operand.hbm [shape: bf16[4,128,384], index: 6, kind: input, shape index: {}]   ;;  %s8589_s7 = inlined_call_operand.hbm [shape: f32[4,1,384], index: 7, kind: input, shape index: {}]   ;;  %s8590_s8 = inlined_call_operand.hbm [shape: bf16[4,128,128], index: 8, kind: input, shape index: {}]   ;;  %s8591_s9 = inlined_call_operand.hbm [shape: f32[4,1,128], index: 9, kind: input, shape index: {}]   ;;  %s8592_s10 = inlined_call_operand.hbm [shape: f32[4,1,128], index: 10, kind: input, shape index: {}]   ;;  %s8593_s11 = inlined_call_operand.hbm [shape: f32[4,1,128], index: 11, kind: input, shape index: {}]   ;;  %s8594_s12 = inlined_call_operand.hbm [shape: bf16[4,128,2048], index: 12, kind: input, shape index: {}]   ;;  %s8595_s13 = inlined_call_operand.hbm [shape: f32[4,1,2048], index: 13, kind: input, shape index: {}]   ;;  %s8596_s14 = inlined_call_operand.hbm [shape: bf16[4,2048,128], index: 14, kind: input, shape index: {}]   ;;  %s8597_s15 = inlined_call_operand.hbm [shape: f32[4,1,128], index: 15, kind: input, shape index: {}]   ;;  %s8598_s16 = inlined_call_operand.vmem [shape: bf16[128,4], index: 16, kind: input, shape index: {}]   ;;  %s8599_s17 = inlined_call_operand.hbm [shape: f32[1,4], index: 17, kind: input, shape index: {}]   ;;  %s8600_s18 = inlined_call_operand.hbm [shape: f32[2,4], index: 18, kind: output, shape index: {}]  }
   0x1   :  { %8634 = sst [smem:[#allocation35_spill]] %s8582_s0 }
   0x2   :  { %8635 = sst [smem:[#allocation36_spill]] %s8583_s1 }
   0x3   :  { %8636 = sst [smem:[#allocation37_spill]] %s8584_s2 }
   0x4   :  { %8637 = sst [smem:[#allocation38_spill]] %s8585_s3 }
   0x5   :  { %8638 = sst [smem:[#allocation39_spill]] %s8586_s4 }
   0x6   :  { %8639 = sst [smem:[#allocation40_spill]] %s8587_s5 }
   0x7   :  { %8640 = sst [smem:[#allocation41_spill]] %s8588_s6 }
   0x8   :  { %8641 = sst [smem:[#allocation42_spill]] %s8596_s14 }
   0x9   :  { %8642 = sst [smem:[#allocation43_spill]] %s8597_s15 }
   0xa   :  { %8643 = sst [smem:[#allocation44_spill]] %s8598_s16 }
   0xb   :  { %8644 = sst [smem:[#allocation45_spill]] %s8599_s17 }
   0xc   :  { %8645 = sst [smem:[#allocation46_spill]] %s8600_s18 }
   0xd   :  { %23 = vsyncpa [#allocation4], 0 }
   0xe   :  { %24 = vsyncpa [#allocation7], 0 }
   0xf   :  { %25 = vsyncpa [#allocation5], 0  ;;  %s7365_s27 = smov 0   ;;  %s7367_s28 = smov 0  }
  0x10   :  { %s7369_s29 = smov 0   ;;  %s7371_s30 = smov 0  }
  0x11 LB: > { %8646 = sst [smem:[#allocation27_spill]] %s7229_s28  ;;  %s7384_s0 = sadd.s32 4294967295, %s7237_s30   ;;  %s7237_s30 = sphi %s7371_s30, %s8704_s30   ;;  %s7233_s29 = sphi %s7369_s29, %s8707_s29   ;;  %s7229_s28 = sphi %s7367_s28, %s8706_s28   ;;  %s7225_s27 = sphi %s7365_s27, %s8705_s27  }
  0x12   : > { %8647 = sst [smem:[#allocation28_spill]] %s7233_s29  ;;  %s7387_s19 = sadd.s32 1, %s7237_s30  }
  0x13   : > { %8648 = sst [smem:[#allocation29_spill]] %s7384_s0  ;;  %s119_s1 = ssub.s32 %s7237_s30, %s7387_s19 }
  0x14   : > { %8649 = sst [smem:[#allocation30_spill]] %s7387_s19  ;;  %s122_s20 = sadd.s32 1, %s7233_s29 }
  0x15   : > { %p120_p0 = scmp.eq.s32.totalorder %s119_s1, 0  ;;  %p129_p1 = scmp.ne.s32.totalorder %s7233_s29, %s7229_s28 }
  0x16   : > { %p130_p2 = scmp.eq.s32.totalorder %s7237_s30, 0  ;;  %p135_p3 = scmp.ne.s32.totalorder %s7229_s28, %s7225_s27 }
  0x17   : > { %s7397_s21 = scalar_select %p120_p0, %s7233_s29, %s122_s20  }
  0x18   : > { %p7399_p4 = por %p130_p2, %p129_p1  ;;  %p8611_p5 = scmp.eq.s32.totalorder %s7384_s0, 0 }
  0x19   : > { %8650 = sst [smem:[#allocation31_spill]] %s7397_s21  ;;  %p5564_p6 = scmp.ge.s32.totalorder %s7237_s30, 1 }
  0x1a   : > { %p495_p7 = scmp.lt.s32.totalorder %s7237_s30, 5  ;;  %p7408_p8 = por %p8611_p5, %p135_p3 }
  0x1b   : > { %s7239_s24 = smov [#allocation3]   ;;  %p6442_p12 = scmp.lt.s32.totalorder %s7237_s30, 4 }
  0x1c   : > { %s8652_s2 = scalar_select %p7408_p8, 1, 0 }
  0x1d   : > { %p7413_p10 = pnand %p5564_p6, %p495_p7  ;;  %s514_s25 = sshll.u32 %s7239_s24, 4  ;;  %s515_s25 = int_to_ptr.vmem [resolvable:$true] %s514_s25 }
  0x1e   : > { %8653 = sst [smem:[#allocation32_spill]] %s8652_s2  ;;  %s7421_s26 = sand.u32 1, %s7233_s29  }
  0x1f   : > { %s8654_s23 = scalar_select %p7413_p10, 1, 0 }
  0x20   : > { %p6392_p11 = pneg %p7413_p10  ;;  %s550_s1 = sand.u32 1, %s7237_s30  }
  0x21   : > { %8655 = sst [smem:[#allocation33_spill]] %s8654_s23  ;;  %p7432_p0 = pnand %p6442_p12, %p7399_p4 }
  0x22   : > { %p7425_p13 = pnand %p6392_p11, %p8611_p5  ;;  %s8659_s19 = sld [smem:[#allocation37_spill]] }
  0x23   : > { %s8658_s20 = scalar_select %p7432_p0, 1, 0 }
  0x24   : > { %s8656_s27 = scalar_select %p7425_p13, 1, 0 }
  0x25   : > { %p7444_p2 = pneg %p7425_p13 }
  0x26   : > { %8657 = sst [smem:[#allocation34_spill]] %s8656_s27 }
  0x27   : > { %s8660_s29 = scalar_select %p7444_p2, 1, 0 }
  0x28   : > { %s6717_s18 = scalar_lea.hbm %s8659_s19, 64 }
  0x29   : > { %p6718_p1 = scmp.ne.s32.totalorder %s8659_s19, %s6717_s18  ;;  %p6724_p6 = scmp.lt.u32.totalorder %s6717_s18, %s8659_s19 }
  0x2b   : > { %p6720_p3 = pnand %p7444_p2, %p6718_p1 }
  0x2d   : > { %p6721_p4 = pneg %p6720_p3 }
  0x2f   : > { %p6726_p7 = pnand %p6724_p6, %p6721_p4 }
  0x31   : > { %6729 = shalt.err (!%p6726_p7)
}
  0x32   : > { %s6730_s21 = scalar_lea.vmem %s515_s25, 64  ;;  %p6738_p5 = scmp.lt.s32.totalorder %s515_s25, %s515_s25 }
  0x33   : > { %p6731_p11 = scmp.ne.s32.totalorder %s515_s25, %s6730_s21  ;;  %p6739_p8 = scmp.lt.s32.totalorder %s6730_s21, %s6730_s21 }
  0x35   : > { %p6733_p12 = pnand %p6731_p11, %p7444_p2  ;;  %p6740_p10 = por %p6739_p8, %p6738_p5 }
  0x37   : > { %p6734_p9 = pneg %p6733_p12 }
  0x39   : > { %p6741_p0 = pnand %p6740_p10, %p6734_p9 }
  0x3b   : > { %6744 = shalt.err (!%p6741_p0)
}
  0x3c   : > { %6395 = dma.hbm_to_vmem [thread:$0]  (!%p7425_p13), %s8659_s19, 64, %s515_s25, [#allocation4]  }
  0x3d   : > { %s7461_s18 = sshll.u32 %s7237_s30, 4  ;;  %s8661_s4 = sld [smem:[#allocation39_spill]] }
  0x3e   : > { %s553_s21 = scalar_lea.vmem [#allocation8], %s7421_s26  ;;  %s7472_s16 = scalar_lea.sflag [#allocation4], %s550_s1 }
  0x3f   : > { %s560_s0 = sshll.u32 %s553_s21, 4  ;;  %p8662_p8 = scmp.ne.s32.totalorder %s8658_s20, 0  ;;  %s7470_s0 = int_to_ptr.vmem [resolvable:$true] %s560_s0 }
  0x41   : > { %p7478_p9 = pneg %p8662_p8 }
  0x43   : > { %s7467_s22 = scalar_lea.hbm %s8661_s4, %s7461_s18  ;;  %s6750_s19 = scalar_lea.hbm %s8661_s4, 64 }
  0x44   : > { %s6745_s2 = scalar_lea.hbm %s7467_s22, 16  ;;  %p6751_p1 = scmp.lt.u32.totalorder %s7467_s22, %s8661_s4 }
  0x45   : > { %p6746_p5 = scmp.ne.s32.totalorder %s7467_s22, %s6745_s2  ;;  %p6752_p3 = scmp.lt.u32.totalorder %s6750_s19, %s6745_s2 }
  0x46   : > { %p6754_p6 = scmp.lt.u32.totalorder %s6745_s2, %s7467_s22 }
  0x47   : > { %p6748_p10 = pnand %p7478_p9, %p6746_p5  ;;  %p6753_p4 = por %p6752_p3, %p6751_p1 }
  0x49   : > { %p6749_p0 = pneg %p6748_p10  ;;  %p6755_p7 = por %p6754_p6, %p6753_p4 }
  0x4b   : > { %p6756_p11 = pnand %p6755_p7, %p6749_p0 }
  0x4d   : > { %6759 = shalt.err (!%p6756_p11)
}
  0x4e   : > { %s6760_s1 = scalar_lea.vmem %s7470_s0, 16  ;;  %s7240_s28 = smov [#allocation8]  }
  0x4f   : > { %p6761_p12 = scmp.ne.s32.totalorder %s7470_s0, %s6760_s1  ;;  %s6765_s24 = sshll.u32 %s7240_s28, 4  ;;  %s6766_s24 = int_to_ptr.vmem [resolvable:$false] %s6765_s24 }
  0x50   : > { %s6767_s23 = scalar_lea.vmem %s6766_s24, 32  ;;  %p6768_p13 = scmp.lt.s32.totalorder %s7470_s0, %s6766_s24 }
  0x51   : > { %p6763_p5 = pnand %p6761_p12, %p7478_p9  ;;  %p6769_p2 = scmp.lt.s32.totalorder %s6767_s23, %s6760_s1 }
  0x53   : > { %p6764_p10 = pneg %p6763_p5  ;;  %p6770_p1 = por %p6769_p2, %p6768_p13 }
  0x55   : > { %p6771_p3 = pnand %p6770_p1, %p6764_p10 }
  0x57   : > { %6774 = shalt.err (!%p6771_p3)
}
  0x58   : > { %6405 = dma.hbm_to_vmem [thread:$0]  (!%p8662_p8), %s7467_s22, 16, %s7470_s0, %s7472_s16  }
  0x59   : > { %s8664_s5 = sld [smem:[#allocation40_spill]]  ;;  %s570_s1 = scalar_lea.vmem [#allocation9], %s7421_s26 }
  0x5a   : > { %s577_s28 = sshll.u32 %s570_s1, 4  ;;  %s6346_s24 = smul.u32 192, %s7421_s26  ;;  %s578_s28 = int_to_ptr.vmem [resolvable:$true] %s577_s28 }
  0x5f   : > { %s7506_s21 = scalar_lea.hbm %s8664_s5, %s7461_s18  ;;  %s6780_s22 = scalar_lea.hbm %s8664_s5, 64 }
  0x60   : > { %s6775_s23 = scalar_lea.hbm %s7506_s21, 16  ;;  %p6781_p4 = scmp.lt.u32.totalorder %s7506_s21, %s8664_s5 }
  0x61   : > { %p6776_p13 = scmp.ne.s32.totalorder %s7506_s21, %s6775_s23  ;;  %p6782_p6 = scmp.lt.u32.totalorder %s6780_s22, %s6775_s23 }
  0x62   : > { %p6784_p11 = scmp.lt.u32.totalorder %s6775_s23, %s7506_s21 }
  0x63   : > { %p6778_p2 = pnand %p6776_p13, %p7478_p9  ;;  %p6783_p7 = por %p6782_p6, %p6781_p4 }
  0x65   : > { %p6779_p0 = pneg %p6778_p2  ;;  %p6785_p12 = por %p6784_p11, %p6783_p7 }
  0x67   : > { %p6786_p5 = pnand %p6785_p12, %p6779_p0 }
  0x69   : > { %6789 = shalt.err (!%p6786_p5)
}
  0x6a   : > { %s6790_s1 = scalar_lea.vmem %s578_s28, 16  ;;  %s7241_s17 = smov [#allocation9]  }
  0x6b   : > { %p6791_p10 = scmp.ne.s32.totalorder %s578_s28, %s6790_s1  ;;  %s6795_s15 = sshll.u32 %s7241_s17, 4  ;;  %s6796_s15 = int_to_ptr.vmem [resolvable:$false] %s6795_s15 }
  0x6c   : > { %s6797_s4 = scalar_lea.vmem %s6796_s15, 32  ;;  %p6798_p13 = scmp.lt.s32.totalorder %s578_s28, %s6796_s15 }
  0x6d   : > { %p6793_p1 = pnand %p6791_p10, %p7478_p9  ;;  %p6799_p2 = scmp.lt.s32.totalorder %s6797_s4, %s6790_s1 }
  0x6f   : > { %p6794_p3 = pneg %p6793_p1  ;;  %p6800_p8 = por %p6799_p2, %p6798_p13 }
  0x71   : > { %p6801_p4 = pnand %p6800_p8, %p6794_p3 }
  0x73   : > { %6804 = shalt.err (!%p6801_p4)
}
  0x74   : > { %p8665_p6 = scmp.ne.s32.totalorder %s8658_s20, 0  ;;  %s6347_s23 = smul.u32 3072, %s7237_s30 }
  0x75   : > { %s588_s0 = scalar_lea.vmem [#allocation10], %s6346_s24  ;;  %s8666_s6 = sld [smem:[#allocation41_spill]] }
  0x76   : > { %6408 = dma.hbm_to_vmem [thread:$0]  (!%p8665_p6), %s7506_s21, 16, %s578_s28, %s7472_s16  }
  0x77   : > { %s595_s22 = sshll.u32 %s588_s0, 4  ;;  %s6348_s15 = smul.u32 3, %s7421_s26  ;;  %s7534_s22 = int_to_ptr.vmem [resolvable:$true] %s595_s22 }
  0x7b   : > { %s7532_s2 = scalar_lea.hbm %s8666_s6, %s6347_s23  ;;  %s6810_s24 = scalar_lea.hbm %s8666_s6, 12288 }
  0x7c   : > { %s6805_s1 = scalar_lea.hbm %s7532_s2, 3072  ;;  %p6811_p11 = scmp.lt.u32.totalorder %s7532_s2, %s8666_s6 }
  0x7d   : > { %p6806_p8 = scmp.ne.s32.totalorder %s7532_s2, %s6805_s1  ;;  %p6812_p12 = scmp.lt.u32.totalorder %s6810_s24, %s6805_s1 }
  0x7e   : > { %p6814_p10 = scmp.lt.u32.totalorder %s6805_s1, %s7532_s2 }
  0x7f   : > { %p6808_p0 = pnand %p6806_p8, %p7478_p9  ;;  %p6813_p5 = por %p6812_p12, %p6811_p11 }
  0x81   : > { %p6809_p7 = pneg %p6808_p0  ;;  %p6815_p1 = por %p6814_p10, %p6813_p5 }
  0x83   : > { %p6816_p3 = pnand %p6815_p1, %p6809_p7 }
  0x85   : > { %6819 = shalt.err (!%p6816_p3)
}
  0x86   : > { %s6820_s23 = scalar_lea.vmem %s7534_s22, 3072  ;;  %s7242_s19 = smov [#allocation10]  }
  0x87   : > { %p6821_p13 = scmp.ne.s32.totalorder %s7534_s22, %s6820_s23  ;;  %s6825_s17 = sshll.u32 %s7242_s19, 4  ;;  %s6826_s17 = int_to_ptr.vmem [resolvable:$false] %s6825_s17 }
  0x88   : > { %s6827_s21 = scalar_lea.vmem %s6826_s17, 6144  ;;  %p6828_p8 = scmp.lt.s32.totalorder %s7534_s22, %s6826_s17 }
  0x89   : > { %p6823_p2 = pnand %p6821_p13, %p7478_p9  ;;  %p6829_p0 = scmp.lt.s32.totalorder %s6827_s21, %s6820_s23 }
  0x8b   : > { %p6824_p4 = pneg %p6823_p2  ;;  %p6830_p11 = por %p6829_p0, %p6828_p8 }
  0x8d   : > { %p6831_p12 = pnand %p6830_p11, %p6824_p4 }
  0x8f   : > { %6834 = shalt.err (!%p6831_p12)
}
  0x90   : > { %s7243_s1 = smov 192   ;;  %s7244_s28 = smov 12  }
  0x91   : > { %6411 = dma.hbm_to_vmem [thread:$0]  (!%p8665_p6), %s7532_s2, 3072, %s7534_s22, %s7472_s16, %s7243_s1, %s7243_s1, %s7244_s28  }
  0x92   : > { %s6349_s24 = smul.u32 48, %s7237_s30  ;;  %s609_s4 = scalar_lea.vmem [#allocation11], %s6348_s15 }
  0x93   : > { %s617_s0 = sshll.u32 %s609_s4, 4  ;;  %s5573_s23 = sshll.u32 %s7421_s26, 6  ;;  %s618_s0 = int_to_ptr.vmem [resolvable:$true] %s617_s0 }
  0x94   : > { %s615_s21 = scalar_lea.hbm %s8589_s7, %s6349_s24  ;;  %s6840_s27 = scalar_lea.hbm %s8589_s7, 192 }
  0x95   : > { %s6835_s5 = scalar_lea.hbm %s615_s21, 48  ;;  %p6841_p1 = scmp.lt.u32.totalorder %s615_s21, %s8589_s7 }
  0x96   : > { %p6836_p7 = scmp.ne.s32.totalorder %s615_s21, %s6835_s5  ;;  %p6842_p3 = scmp.lt.u32.totalorder %s6840_s27, %s6835_s5 }
  0x97   : > { %p6844_p2 = scmp.lt.u32.totalorder %s6835_s5, %s615_s21 }
  0x98   : > { %p6838_p5 = pnand %p6836_p7, %p7478_p9  ;;  %p6843_p13 = por %p6842_p3, %p6841_p1 }
  0x9a   : > { %p6839_p10 = pneg %p6838_p5  ;;  %p6845_p4 = por %p6844_p2, %p6843_p13 }
  0x9c   : > { %p6846_p8 = pnand %p6845_p4, %p6839_p10 }
  0x9e   : > { %6849 = shalt.err (!%p6846_p8)
}
  0x9f   : > { %s6850_s15 = scalar_lea.vmem %s618_s0, 48  ;;  %s7245_s1 = smov [#allocation11]  }
  0xa0   : > { %p6851_p0 = scmp.ne.s32.totalorder %s618_s0, %s6850_s15  ;;  %s6855_s28 = sshll.u32 %s7245_s1, 4  ;;  %s6856_s28 = int_to_ptr.vmem [resolvable:$false] %s6855_s28 }
  0xa1   : > { %s6857_s6 = scalar_lea.vmem %s6856_s28, 96  ;;  %p6858_p7 = scmp.lt.s32.totalorder %s618_s0, %s6856_s28 }
  0xa2   : > { %p6853_p11 = pnand %p6851_p0, %p7478_p9  ;;  %p6859_p5 = scmp.lt.s32.totalorder %s6857_s6, %s6850_s15 }
  0xa4   : > { %p6854_p12 = pneg %p6853_p11  ;;  %p6860_p6 = por %p6859_p5, %p6858_p7 }
  0xa6   : > { %p6861_p1 = pnand %p6860_p6, %p6854_p12 }
  0xa8   : > { %6864 = shalt.err (!%p6861_p1)
}
  0xa9   : > { %p8667_p3 = scmp.ne.s32.totalorder %s8658_s20, 0  ;;  %s5928_s5 = sshll.u32 %s7237_s30, 10 }
  0xaa   : > { %s7583_s24 = scalar_lea.hbm %s8590_s8, %s5928_s5  ;;  %s628_s4 = scalar_lea.vmem [#allocation12], %s5573_s23 }
  0xab   : > { %6414 = dma.hbm_to_vmem [thread:$0]  (!%p8667_p3), %s615_s21, 48, %s618_s0, %s7472_s16  }
  0xac   : > { %s635_s19 = sshll.u32 %s628_s4, 4  ;;  %s6865_s17 = scalar_lea.hbm %s7583_s24, 1024  ;;  %s7587_s19 = int_to_ptr.vmem [resolvable:$true] %s635_s19 }
  0xad   : > { %p6866_p6 = scmp.ne.s32.totalorder %s7583_s24, %s6865_s17  ;;  %s6870_s22 = scalar_lea.hbm %s8590_s8, 4096 }
  0xae   : > { %p6871_p2 = scmp.lt.u32.totalorder %s7583_s24, %s8590_s8  ;;  %p6872_p4 = scmp.lt.u32.totalorder %s6870_s22, %s6865_s17 }
  0xaf   : > { %p6868_p10 = pnand %p6866_p6, %p7478_p9  ;;  %p6874_p0 = scmp.lt.u32.totalorder %s6865_s17, %s7583_s24 }
  0xb0   : > { %p6873_p8 = por %p6872_p4, %p6871_p2 }
  0xb1   : > { %p6869_p13 = pneg %p6868_p10 }
  0xb2   : > { %p6875_p11 = por %p6874_p0, %p6873_p8 }
  0xb4   : > { %p6876_p12 = pnand %p6875_p11, %p6869_p13 }
  0xb6   : > { %6879 = shalt.err (!%p6876_p12)
}
  0xb7   : > { %s6880_s23 = scalar_lea.vmem %s7587_s19, 1024  ;;  %s7246_s1 = smov [#allocation12]  }
  0xb8   : > { %p6881_p7 = scmp.ne.s32.totalorder %s7587_s19, %s6880_s23  ;;  %s6885_s28 = sshll.u32 %s7246_s1, 4  ;;  %s6886_s28 = int_to_ptr.vmem [resolvable:$false] %s6885_s28 }
  0xb9   : > { %s6887_s6 = scalar_lea.vmem %s6886_s28, 2048  ;;  %p6888_p6 = scmp.lt.s32.totalorder %s7587_s19, %s6886_s28 }
  0xba   : > { %p6883_p5 = pnand %p6881_p7, %p7478_p9  ;;  %p6889_p10 = scmp.lt.s32.totalorder %s6887_s6, %s6880_s23 }
  0xbc   : > { %p6884_p1 = pneg %p6883_p5  ;;  %p6890_p2 = por %p6889_p10, %p6888_p6 }
  0xbe   : > { %p6891_p4 = pnand %p6890_p2, %p6884_p1 }
  0xc0   : > { %6894 = shalt.err (!%p6891_p4)
}
  0xc1   : > { %s7247_s5 = smov 64   ;;  %s8632_s14 = smov 4  }
  0xc2   : > { %6417 = dma.hbm_to_vmem [thread:$0]  (!%p8667_p3), %s7583_s24, 1024, %s7587_s19, %s7472_s16, %s7247_s5, %s7247_s5, %s8632_s14  }
  0xc3   : > { %s7618_s17 = scalar_lea.hbm %s8591_s9, %s7461_s18  ;;  %s648_s0 = scalar_lea.vmem [#allocation13], %s7421_s26 }
  0xc4   : > { %s655_s21 = sshll.u32 %s648_s0, 4  ;;  %s6895_s22 = scalar_lea.hbm %s7618_s17, 16  ;;  %s656_s21 = int_to_ptr.vmem [resolvable:$true] %s655_s21 }
  0xc5   : > { %p6896_p13 = scmp.ne.s32.totalorder %s7618_s17, %s6895_s22  ;;  %s6900_s24 = scalar_lea.hbm %s8591_s9, 64 }
  0xc6   : > { %p6901_p11 = scmp.lt.u32.totalorder %s7618_s17, %s8591_s9  ;;  %p6902_p12 = scmp.lt.u32.totalorder %s6900_s24, %s6895_s22 }
  0xc7   : > { %p6898_p8 = pnand %p6896_p13, %p7478_p9  ;;  %p6904_p5 = scmp.lt.u32.totalorder %s6895_s22, %s7618_s17 }
  0xc8   : > { %p6903_p7 = por %p6902_p12, %p6901_p11 }
  0xc9   : > { %p6899_p0 = pneg %p6898_p8 }
  0xca   : > { %p6905_p1 = por %p6904_p5, %p6903_p7 }
  0xcc   : > { %p6906_p6 = pnand %p6905_p1, %p6899_p0 }
  0xce   : > { %6909 = shalt.err (!%p6906_p6)
}
  0xcf   : > { %s6910_s1 = scalar_lea.vmem %s656_s21, 16  ;;  %s7249_s28 = smov [#allocation13]  }
  0xd0   : > { %p6911_p10 = scmp.ne.s32.totalorder %s656_s21, %s6910_s1  ;;  %s6915_s6 = sshll.u32 %s7249_s28, 4  ;;  %s6916_s6 = int_to_ptr.vmem [resolvable:$false] %s6915_s6 }
  0xd1   : > { %s6917_s27 = scalar_lea.vmem %s6916_s6, 32  ;;  %p6918_p13 = scmp.lt.s32.totalorder %s656_s21, %s6916_s6 }
  0xd2   : > { %p6913_p2 = pnand %p6911_p10, %p7478_p9  ;;  %p6919_p8 = scmp.lt.s32.totalorder %s6917_s27, %s6910_s1 }
  0xd4   : > { %p6914_p4 = pneg %p6913_p2  ;;  %p6920_p3 = por %p6919_p8, %p6918_p13 }
  0xd6   : > { %p6921_p11 = pnand %p6920_p3, %p6914_p4 }
  0xd8   : > { %6924 = shalt.err (!%p6921_p11)
}
  0xd9   : > { %p8668_p12 = scmp.ne.s32.totalorder %s8658_s20, 0  ;;  %s7643_s22 = scalar_lea.hbm %s8592_s10, %s7461_s18 }
  0xda   : > { %s665_s2 = scalar_lea.vmem [#allocation14], %s7421_s26  ;;  %s6925_s24 = scalar_lea.hbm %s7643_s22, 16 }
  0xdb   : > { %6420 = dma.hbm_to_vmem [thread:$0]  (!%p8668_p12), %s7618_s17, 16, %s656_s21, %s7472_s16  }
  0xdc   : > { %s672_s15 = sshll.u32 %s665_s2, 4  ;;  %p6926_p3 = scmp.ne.s32.totalorder %s7643_s22, %s6925_s24  ;;  %s673_s15 = int_to_ptr.vmem [resolvable:$true] %s672_s15 }
  0xdd   : > { %s6930_s17 = scalar_lea.hbm %s8592_s10, 64  ;;  %p6931_p5 = scmp.lt.u32.totalorder %s7643_s22, %s8592_s10 }
  0xde   : > { %p6928_p0 = pnand %p6926_p3, %p7478_p9  ;;  %p6932_p1 = scmp.lt.u32.totalorder %s6930_s17, %s6925_s24 }
  0xdf   : > { %p6934_p10 = scmp.lt.u32.totalorder %s6925_s24, %s7643_s22 }
  0xe0   : > { %p6929_p7 = pneg %p6928_p0  ;;  %p6933_p6 = por %p6932_p1, %p6931_p5 }
  0xe2   : > { %p6935_p2 = por %p6934_p10, %p6933_p6 }
  0xe4   : > { %p6936_p4 = pnand %p6935_p2, %p6929_p7 }
  0xe6   : > { %6939 = shalt.err (!%p6936_p4)
}
  0xe7   : > { %s6940_s28 = scalar_lea.vmem %s673_s15, 16  ;;  %s7250_s6 = smov [#allocation14]  }
  0xe8   : > { %p6941_p13 = scmp.ne.s32.totalorder %s673_s15, %s6940_s28  ;;  %s6945_s27 = sshll.u32 %s7250_s6, 4  ;;  %s6946_s27 = int_to_ptr.vmem [resolvable:$false] %s6945_s27 }
  0xe9   : > { %s6947_s4 = scalar_lea.vmem %s6946_s27, 32  ;;  %p6948_p3 = scmp.lt.s32.totalorder %s673_s15, %s6946_s27 }
  0xea   : > { %p6943_p8 = pnand %p6941_p13, %p7478_p9  ;;  %p6949_p0 = scmp.lt.s32.totalorder %s6947_s4, %s6940_s28 }
  0xec   : > { %p6944_p11 = pneg %p6943_p8  ;;  %p6950_p12 = por %p6949_p0, %p6948_p3 }
  0xee   : > { %p6951_p1 = pnand %p6950_p12, %p6944_p11 }
  0xf0   : > { %6954 = shalt.err (!%p6951_p1)
}
  0xf1   : > { %p8669_p5 = scmp.ne.s32.totalorder %s8658_s20, 0  ;;  %s7668_s24 = scalar_lea.hbm %s8593_s11, %s7461_s18 }
  0xf2   : > { %s682_s19 = scalar_lea.vmem [#allocation15], %s7421_s26  ;;  %s5579_s17 = sshll.u32 %s7421_s26, 10 }
  0xf3   : > { %6423 = dma.hbm_to_vmem [thread:$0]  (!%p8669_p5), %s7643_s22, 16, %s673_s15, %s7472_s16  }
  0xf4   : > { %s689_s23 = sshll.u32 %s682_s19, 4  ;;  %s6955_s21 = scalar_lea.hbm %s7668_s24, 16  ;;  %s690_s23 = int_to_ptr.vmem [resolvable:$true] %s689_s23 }
  0xf5   : > { %p6956_p12 = scmp.ne.s32.totalorder %s7668_s24, %s6955_s21  ;;  %s6960_s15 = scalar_lea.hbm %s8593_s11, 64 }
  0xf6   : > { %p6961_p10 = scmp.lt.u32.totalorder %s7668_s24, %s8593_s11  ;;  %p6962_p2 = scmp.lt.u32.totalorder %s6960_s15, %s6955_s21 }
  0xf7   : > { %p6958_p7 = pnand %p6956_p12, %p7478_p9  ;;  %p6964_p13 = scmp.lt.u32.totalorder %s6955_s21, %s7668_s24 }
  0xf8   : > { %p6963_p4 = por %p6962_p2, %p6961_p10 }
  0xf9   : > { %p6959_p6 = pneg %p6958_p7 }
  0xfa   : > { %p6965_p8 = por %p6964_p13, %p6963_p4 }
  0xfc   : > { %p6966_p11 = pnand %p6965_p8, %p6959_p6 }
  0xfe   : > { %6969 = shalt.err (!%p6966_p11)
}
  0xff   : > { %s6970_s27 = scalar_lea.vmem %s690_s23, 16  ;;  %s7251_s4 = smov [#allocation15]  }
 0x100   : > { %p6971_p3 = scmp.ne.s32.totalorder %s690_s23, %s6970_s27  ;;  %s6975_s0 = sshll.u32 %s7251_s4, 4  ;;  %s6976_s0 = int_to_ptr.vmem [resolvable:$false] %s6975_s0 }
 0x101   : > { %s6977_s2 = scalar_lea.vmem %s6976_s0, 32  ;;  %p6978_p12 = scmp.lt.s32.totalorder %s690_s23, %s6976_s0 }
 0x102   : > { %p6973_p0 = pnand %p6971_p3, %p7478_p9  ;;  %p6979_p7 = scmp.lt.s32.totalorder %s6977_s2, %s6970_s27 }
 0x104   : > { %p6974_p1 = pneg %p6973_p0  ;;  %p6980_p5 = por %p6979_p7, %p6978_p12 }
 0x106   : > { %p6981_p2 = pnand %p6980_p5, %p6974_p1 }
 0x108   : > { %6984 = shalt.err (!%p6981_p2)
}
 0x109   : > { %p8670_p10 = scmp.ne.s32.totalorder %s8658_s20, 0  ;;  %s5929_s19 = sshll.u32 %s7237_s30, 14 }
 0x10a   : > { %s7696_s22 = scalar_lea.hbm %s8594_s12, %s5929_s19  ;;  %s700_s15 = scalar_lea.vmem [#allocation16], %s5579_s17 }
 0x10b   : > { %6426 = dma.hbm_to_vmem [thread:$0]  (!%p8670_p10), %s7668_s24, 16, %s690_s23, %s7472_s16  }
 0x10c   : > { %s707_s28 = sshll.u32 %s700_s15, 4  ;;  %s6985_s6 = scalar_lea.hbm %s7696_s22, 16384  ;;  %s7700_s28 = int_to_ptr.vmem [resolvable:$true] %s707_s28 }
 0x10d   : > { %p6986_p5 = scmp.ne.s32.totalorder %s7696_s22, %s6985_s6  ;;  %s6990_s27 = scalar_lea.hbm %s8594_s12, 65536 }
 0x10e   : > { %p6991_p13 = scmp.lt.u32.totalorder %s7696_s22, %s8594_s12  ;;  %p6992_p8 = scmp.lt.u32.totalorder %s6990_s27, %s6985_s6 }
 0x10f   : > { %p6988_p6 = pnand %p6986_p5, %p7478_p9  ;;  %p6994_p3 = scmp.lt.u32.totalorder %s6985_s6, %s7696_s22 }
 0x110   : > { %p6993_p11 = por %p6992_p8, %p6991_p13 }
 0x111   : > { %p6989_p4 = pneg %p6988_p6 }
 0x112   : > { %p6995_p0 = por %p6994_p3, %p6993_p11 }
 0x114   : > { %p6996_p1 = pnand %p6995_p0, %p6989_p4 }
 0x116   : > { %6999 = shalt.err (!%p6996_p1)
}
 0x117   : > { %s7000_s2 = scalar_lea.vmem %s7700_s28, 16384  ;;  %s7252_s21 = smov [#allocation16]  }
 0x118   : > { %p7001_p12 = scmp.ne.s32.totalorder %s7700_s28, %s7000_s2  ;;  %s7005_s1 = sshll.u32 %s7252_s21, 4  ;;  %s7006_s1 = int_to_ptr.vmem [resolvable:$false] %s7005_s1 }
 0x119   : > { %s7007_s15 = scalar_lea.vmem %s7006_s1, 32768  ;;  %p7008_p5 = scmp.lt.s32.totalorder %s7700_s28, %s7006_s1 }
 0x11a   : > { %p7003_p7 = pnand %p7001_p12, %p7478_p9  ;;  %p7009_p6 = scmp.lt.s32.totalorder %s7007_s15, %s7000_s2 }
 0x11c   : > { %p7004_p2 = pneg %p7003_p7  ;;  %p7010_p13 = por %p7009_p6, %p7008_p5 }
 0x11e   : > { %p7011_p8 = pnand %p7010_p13, %p7004_p2 }
 0x120   : > { %7014 = shalt.err (!%p7011_p8)
}
 0x121   : > { %s7253_s6 = smov 1024   ;;  %s5582_s24 = sshll.u32 %s7421_s26, 4 }
 0x122   : > { %6429 = dma.hbm_to_vmem [thread:$0]  (!%p8670_p10), %s7696_s22, 16384, %s7700_s28, %s7472_s16, %s7253_s6, %s7253_s6, %s7247_s5  }
 0x123   : > { %s5930_s23 = sshll.u32 %s7237_s30, 8  ;;  %s721_s2 = scalar_lea.vmem [#allocation17], %s5582_s24 }
 0x124   : > { %s7730_s0 = scalar_lea.hbm %s8595_s13, %s5930_s23  ;;  %s729_s21 = sshll.u32 %s721_s2, 4  ;;  %s7732_s21 = int_to_ptr.vmem [resolvable:$true] %s729_s21 }
 0x125   : > { %s7254_s1 = smov [#allocation6]   ;;  %s7015_s14 = scalar_lea.hbm %s7730_s0, 256 }
 0x126   : > { %s525_s15 = sshll.u32 %s7254_s1, 4  ;;  %p7016_p4 = scmp.ne.s32.totalorder %s7730_s0, %s7015_s14  ;;  %s526_s15 = int_to_ptr.vmem [resolvable:$true] %s525_s15 }
 0x127   : > { %s7020_s6 = scalar_lea.hbm %s8595_s13, 1024  ;;  %p7021_p0 = scmp.lt.u32.totalorder %s7730_s0, %s8595_s13 }
 0x128   : > { %p7018_p11 = pnand %p7016_p4, %p7478_p9  ;;  %p7022_p1 = scmp.lt.u32.totalorder %s7020_s6, %s7015_s14 }
 0x129   : > { %p7024_p7 = scmp.lt.u32.totalorder %s7015_s14, %s7730_s0 }
 0x12a   : > { %p7019_p3 = pneg %p7018_p11  ;;  %p7023_p12 = por %p7022_p1, %p7021_p0 }
 0x12c   : > { %p7025_p2 = por %p7024_p7, %p7023_p12 }
 0x12e   : > { %p7026_p5 = pnand %p7025_p2, %p7019_p3 }
 0x130   : > { %7029 = shalt.err (!%p7026_p5)
}
 0x131   : > { %s7030_s24 = scalar_lea.vmem %s7732_s21, 256  ;;  %s7255_s4 = smov [#allocation17]  }
 0x132   : > { %p7031_p6 = scmp.ne.s32.totalorder %s7732_s21, %s7030_s24  ;;  %s7035_s2 = sshll.u32 %s7255_s4, 4  ;;  %s7036_s2 = int_to_ptr.vmem [resolvable:$false] %s7035_s2 }
 0x133   : > { %s7037_s1 = scalar_lea.vmem %s7036_s2, 512  ;;  %p7038_p4 = scmp.lt.s32.totalorder %s7732_s21, %s7036_s2 }
 0x134   : > { %p7033_p13 = pnand %p7031_p6, %p7478_p9  ;;  %p7039_p11 = scmp.lt.s32.totalorder %s7037_s1, %s7030_s24 }
 0x136   : > { %p7034_p8 = pneg %p7033_p13  ;;  %p7040_p0 = por %p7039_p11, %p7038_p4 }
 0x138   : > { %p7041_p1 = pnand %p7040_p0, %p7034_p8 }
 0x13a   : > { %7044 = shalt.err (!%p7041_p1)
}
 0x13b   : > { %6432 = dma.hbm_to_vmem [thread:$0]  (!%p8670_p10), %s7730_s0, 256, %s7732_s21, %s7472_s16  }
 0x13c   : > { %s8671_s3 = sld [smem:[#allocation38_spill]]  ;;  %p8672_p12 = scmp.ne.s32.totalorder %s8660_s29, 0 }
 0x142   : > { %s7045_s28 = scalar_lea.hbm %s8671_s3, 16 }
 0x143   : > { %p7046_p3 = scmp.ne.s32.totalorder %s8671_s3, %s7045_s28  ;;  %p7052_p5 = scmp.lt.u32.totalorder %s7045_s28, %s8671_s3 }
 0x145   : > { %p7048_p7 = pnand %p7046_p3, %p8672_p12 }
 0x147   : > { %p7049_p2 = pneg %p7048_p7 }
 0x149   : > { %p7054_p6 = pnand %p7052_p5, %p7049_p2 }
 0x14b   : > { %7057 = shalt.err (!%p7054_p6)
}
 0x14c   : > { %s7058_s4 = scalar_lea.vmem %s526_s15, 16  ;;  %s7065_s0 = scalar_lea.vmem %s526_s15, 32 }
 0x14d   : > { %p7059_p13 = scmp.ne.s32.totalorder %s526_s15, %s7058_s4  ;;  %p7066_p11 = scmp.lt.s32.totalorder %s526_s15, %s526_s15 }
 0x14e   : > { %p7067_p0 = scmp.lt.s32.totalorder %s7065_s0, %s7058_s4 }
 0x14f   : > { %p7061_p8 = pnand %p7059_p13, %p8672_p12 }
 0x150   : > { %p7068_p1 = por %p7067_p0, %p7066_p11 }
 0x151   : > { %p7062_p4 = pneg %p7061_p8 }
 0x153   : > { %p7069_p10 = pnand %p7068_p1, %p7062_p4 }
 0x155   : > { %7072 = shalt.err (!%p7069_p10)
}
 0x156   : > { %s8673_s21 = sld [smem:[#allocation34_spill]]  ;;  %s8675_s28 = sld [smem:[#allocation42_spill]] }
 0x157   : > { %s740_s27 = scalar_lea.vmem [#allocation18], %s5579_s17 }
 0x158   : > { %s747_s24 = sshll.u32 %s740_s27, 4  ;;  %s7783_s24 = int_to_ptr.vmem [resolvable:$true] %s747_s24 }
 0x15c   : > { %p8674_p3 = scmp.ne.s32.totalorder %s8673_s21, 0  ;;  %s8676_s6 = smov %s8675_s28 }
 0x15d   : > { %s7779_s23 = scalar_lea.hbm %s8675_s28, %s5929_s19  ;;  %s7078_s0 = scalar_lea.hbm %s8676_s6, 65536 }
 0x15e   : > { %6398 = dma.hbm_to_vmem [thread:$0]  (!%p8674_p3), %s8671_s3, 16, %s526_s15, [#allocation7]  }
 0x15f   : > { %s7073_s4 = scalar_lea.hbm %s7779_s23, 16384  ;;  %p7079_p5 = scmp.lt.u32.totalorder %s7779_s23, %s8676_s6 }
 0x160   : > { %p7074_p10 = scmp.ne.s32.totalorder %s7779_s23, %s7073_s4  ;;  %p7080_p6 = scmp.lt.u32.totalorder %s7078_s0, %s7073_s4 }
 0x161   : > { %p7082_p8 = scmp.lt.u32.totalorder %s7073_s4, %s7779_s23 }
 0x162   : > { %p7076_p7 = pnand %p7074_p10, %p7478_p9  ;;  %p7081_p13 = por %p7080_p6, %p7079_p5 }
 0x164   : > { %p7077_p2 = pneg %p7076_p7  ;;  %p7083_p4 = por %p7082_p8, %p7081_p13 }
 0x166   : > { %p7084_p11 = pnand %p7083_p4, %p7077_p2 }
 0x168   : > { %7087 = shalt.err (!%p7084_p11)
}
 0x169   : > { %s7088_s17 = scalar_lea.vmem %s7783_s24, 16384  ;;  %s7256_s1 = smov [#allocation18]  }
 0x16a   : > { %p7089_p0 = scmp.ne.s32.totalorder %s7783_s24, %s7088_s17  ;;  %s7093_s14 = sshll.u32 %s7256_s1, 4  ;;  %s7094_s14 = int_to_ptr.vmem [resolvable:$false] %s7093_s14 }
 0x16b   : > { %s7095_s22 = scalar_lea.vmem %s7094_s14, 32768  ;;  %p7096_p7 = scmp.lt.s32.totalorder %s7783_s24, %s7094_s14 }
 0x16c   : > { %p7091_p1 = pnand %p7089_p0, %p7478_p9  ;;  %p7097_p3 = scmp.lt.s32.totalorder %s7095_s22, %s7088_s17 }
 0x16e   : > { %p7092_p10 = pneg %p7091_p1  ;;  %p7098_p5 = por %p7097_p3, %p7096_p7 }
 0x170   : > { %p7099_p6 = pnand %p7098_p5, %p7092_p10 }
 0x172   : > { %7102 = shalt.err (!%p7099_p6)
}
 0x173   : > { %p8677_p2 = scmp.ne.s32.totalorder %s8658_s20, 0  ;;  %s8678_s28 = smov 4  }
 0x174   : > { %s7257_s27 = smov [#allocation20]   ;;  %s8679_s0 = sld [smem:[#allocation43_spill]] }
 0x175   : > { %6435 = dma.hbm_to_vmem [thread:$0]  (!%p8677_p2), %s7779_s23, 16384, %s7783_s24, %s7472_s16, %s7247_s5, %s7247_s5, %s8678_s28  }
 0x176   : > { %s539_s4 = sshll.u32 %s7257_s27, 4  ;;  %s8680_s1 = sld [smem:[#allocation45_spill]]  ;;  %s540_s4 = int_to_ptr.vmem [resolvable:$true] %s539_s4 }
 0x17a   : > { %s7814_s19 = scalar_lea.hbm %s8679_s0, %s7461_s18 }
 0x17c   : > { %s7103_s14 = scalar_lea.hbm %s8680_s1, 16 }
 0x17d   : > { %p7104_p3 = scmp.ne.s32.totalorder %s8680_s1, %s7103_s14  ;;  %p7110_p4 = scmp.lt.u32.totalorder %s7103_s14, %s8680_s1 }
 0x17f   : > { %p7106_p13 = pnand %p7104_p3, %p8672_p12 }
 0x181   : > { %p7107_p8 = pneg %p7106_p13 }
 0x183   : > { %p7112_p11 = pnand %p7110_p4, %p7107_p8 }
 0x185   : > { %7115 = shalt.err (!%p7112_p11)
}
 0x186   : > { %s7116_s24 = scalar_lea.vmem %s540_s4, 16  ;;  %s7123_s18 = scalar_lea.vmem %s540_s4, 32 }
 0x187   : > { %p7117_p0 = scmp.ne.s32.totalorder %s540_s4, %s7116_s24  ;;  %p7124_p7 = scmp.lt.s32.totalorder %s540_s4, %s540_s4 }
 0x188   : > { %p7125_p5 = scmp.lt.s32.totalorder %s7123_s18, %s7116_s24 }
 0x189   : > { %p7119_p1 = pnand %p7117_p0, %p8672_p12 }
 0x18a   : > { %p7126_p6 = por %p7125_p5, %p7124_p7 }
 0x18b   : > { %p7120_p10 = pneg %p7119_p1 }
 0x18d   : > { %p7127_p2 = pnand %p7126_p6, %p7120_p10 }
 0x18f   : > { %7130 = shalt.err (!%p7127_p2)
}
 0x190   : > { %p8681_p3 = scmp.ne.s32.totalorder %s8673_s21, 0  ;;  %s760_s29 = scalar_lea.vmem [#allocation19], %s7421_s26 }
 0x191   : > { %s767_s27 = sshll.u32 %s760_s29, 4  ;;  %s7131_s30 = scalar_lea.hbm %s7814_s19, 16  ;;  %s768_s27 = int_to_ptr.vmem [resolvable:$true] %s767_s27 }
 0x192   : > { %6401 = dma.hbm_to_vmem [thread:$0]  (!%p8681_p3), %s8680_s1, 16, %s540_s4, [#allocation7]  }
 0x193   : > { %p7132_p12 = scmp.ne.s32.totalorder %s7814_s19, %s7131_s30  ;;  %s7136_s2 = scalar_lea.hbm %s8679_s0, 64 }
 0x194   : > { %p7137_p8 = scmp.lt.u32.totalorder %s7814_s19, %s8679_s0  ;;  %p7138_p4 = scmp.lt.u32.totalorder %s7136_s2, %s7131_s30 }
 0x195   : > { %p7134_p13 = pnand %p7132_p12, %p7478_p9  ;;  %p7140_p0 = scmp.lt.u32.totalorder %s7131_s30, %s7814_s19 }
 0x196   : > { %p7139_p11 = por %p7138_p4, %p7137_p8 }
 0x197   : > { %p7135_p2 = pneg %p7134_p13 }
 0x198   : > { %p7141_p1 = por %p7140_p0, %p7139_p11 }
 0x19a   : > { %p7142_p10 = pnand %p7141_p1, %p7135_p2 }
 0x19c   : > { %7145 = shalt.err (!%p7142_p10)
}
 0x19d   : > { %s7146_s26 = scalar_lea.vmem %s768_s27, 16  ;;  %s7258_s4 = smov [#allocation19]  }
 0x19e   : > { %p7147_p7 = scmp.ne.s32.totalorder %s768_s27, %s7146_s26  ;;  %s7151_s22 = sshll.u32 %s7258_s4, 4  ;;  %s7152_s22 = int_to_ptr.vmem [resolvable:$false] %s7151_s22 }
 0x19f   : > { %s7153_s5 = scalar_lea.vmem %s7152_s22, 32  ;;  %p7154_p3 = scmp.lt.s32.totalorder %s768_s27, %s7152_s22 }
 0x1a0   : > { %p7149_p5 = pnand %p7147_p7, %p7478_p9  ;;  %p7155_p12 = scmp.lt.s32.totalorder %s7153_s5, %s7146_s26 }
 0x1a2   : > { %p7150_p6 = pneg %p7149_p5  ;;  %p7156_p13 = por %p7155_p12, %p7154_p3 }
 0x1a4   : > { %p7157_p4 = pnand %p7156_p13, %p7150_p6 }
 0x1a6   : > { %7160 = shalt.err (!%p7157_p4)
}
 0x1a7   : > { %p8682_p8 = scmp.ne.s32.totalorder %s8658_s20, 0  ;;  %s8683_s23 = sld [smem:[#allocation33_spill]] }
 0x1a9   : > { %6438 = dma.hbm_to_vmem [thread:$0]  (!%p8682_p8), %s7814_s19, 16, %s768_s27, %s7472_s16  }
 0x1ad   : > { %p8684_p2 = scmp.ne.s32.totalorder %s8683_s23, 0 }
 0x1ae   : > { %s8685_s25 = sld [smem:[#allocation29_spill]] (!%p8684_p2) }
 0x1af   : > { %776 = sbr.rel (%p8684_p2) target bundleno = 5363 (0x14f3), region = 92 }
 0x1b4   : > { %p8686_p9 = scmp.eq.s32.totalorder (!%p8684_p2), %s8685_s25, 0 }
 0x1b6   : > { %7204 = dma.done.wait (%p8686_p9), [#allocation4], 64   ;;  %p8687_p11 = pmov %p8686_p9 }
 0x1b7   : > { %p8688_p0 = pmov %p8686_p9 }
 0x1b8   : > { %7206 = vsyncadd (%p8687_p11), [#allocation4], 4294967232 }
 0x1b9   : > { %7208 = dma.done.wait (%p8688_p0), [#allocation7], 16   ;;  %p8689_p1 = pmov %p8688_p0 }
 0x1ba   : > { %s8690_s20 = sld [smem:[#allocation27_spill]]  ;;  %s8691_s24 = sld [smem:[#allocation32_spill]] }
 0x1bb   : > { %7210 = vsyncadd (%p8689_p1), [#allocation7], 4294967280  ;;  %s786_s18 = sand.u32 1, %s8685_s25  }
 0x1bc   : > { %s787_s19 = scalar_lea.sflag [#allocation4], %s786_s18 }
 0x1c0   : > { %s7865_s16 = sand.u32 1, %s8690_s20   ;;  %p8692_p10 = scmp.ne.s32.totalorder %s8691_s24, 0 }
 0x1c1   : > { %s789_s3 = scalar_lea.vmem [#allocation8], %s7865_s16 }
 0x1c2   : > { %7212 = dma.done.wait (%p8692_p10), %s787_s19, 37264  }
 0x1c3   : > { %7214 = vsyncadd (%p8692_p10), %s787_s19, 4294930032  ;;  %s6350_s28 = smul.u32 192, %s7865_s16  ;;  %s5592_s27 = sshll.u32 %s7865_s16, 6 }
 0x1c4   : > { %s6351_s29 = smul.u32 3, %s7865_s16  ;;  %s5593_s30 = sshll.u32 %s7865_s16, 10 }
 0x1c5   : > { %s5594_s15 = sshll.u32 %s7865_s16, 4  ;;  %s797_s21 = scalar_lea.vmem [#allocation9], %s7865_s16 }
 0x1c6   : > { %s7878_s2 = scalar_lea.vmem [#allocation10], %s6350_s28  ;;  %s7880_s17 = scalar_lea.vmem [#allocation11], %s6351_s29 }
 0x1c7   : > { %s7882_s14 = scalar_lea.vmem [#allocation12], %s5592_s27  ;;  %s832_s26 = scalar_lea.vmem [#allocation13], %s7865_s16 }
 0x1c8   : > { %s840_s4 = scalar_lea.vmem [#allocation14], %s7865_s16  ;;  %s7887_s5 = scalar_lea.vmem [#allocation16], %s5593_s30 }
 0x1c9   : > { %s7889_s23 = scalar_lea.vmem [#allocation17], %s5594_s15  ;;  %s7891_s20 = scalar_lea.vmem [#allocation18], %s5593_s30 }
 0x1ca   : > { %s883_s24 = scalar_lea.vmem [#allocation19], %s7865_s16  ;;  %p8693_p7 = pmov %p8688_p0 }
 0x1cb   : > { %p8694_p5 = pmov %p8688_p0 }
 0x1cc   : > { %7216 = dma.done.wait (%p8693_p7), [#allocation7], 16  }
 0x1cd   : > { %7218 = vsyncadd (%p8694_p5), [#allocation7], 4294967280  ;;  %p8695_p6 = scmp.ne.s32.totalorder %s8685_s25, 0 }
 0x1ce   : > { %v992_v0 = vld [vmem:[#allocation3] sm:$0xf] (!%p8695_p6)  ;;  %vm1004_vm0 = vcmask (!%p8695_p6), 1043456   ;;  %s8696_s28 = sld [smem:[#allocation35_spill]] (!%p8695_p6)  ;;  %v7259_v2 = vmov (!%p8695_p6), 0.0   ;;  %vm7260_vm1 = vmmov (!%p8695_p6), 0  }
 0x1cf   : > { %988 = sbr.rel (%p8695_p6) target bundleno = 691 (0x2b3), region = 156  ;;  %6172 = vmatprep.subr.bf16.mxu0 (!%p8695_p6), %v7259_v2  ;;  %v1006_v3 = vsel (!%p8695_p6), %vm1004_vm0, %v992_v0, 0  ;;  %6174 = vmatprep.mubr.msk.bf16.mxu0 (!%p8695_p6), %vm7260_vm1, %v7259_v2  ;;  %vm1000_vm2 = vcmask (!%p8695_p6), 64512   ;;  %v5598_v6 = vld [vmem:[#allocation6] ss:$0 sm:$0xff] (!%p8695_p6)  ;;  %s8698_s15 = sld [smem:[#allocation36_spill]] (!%p8695_p6) }
 0x1d0   : > { %6173 = vmatpush3.bf16.msra.mxu0 (!%p8695_p6), %v1006_v3 }
 0x1d4   : > { %s8697_s22 = smov (!%p8695_p6), %s8696_s28  ;;  %v989_v1 = vld [vmem:[%s8696_s28] sm:$0xff] (!%p8695_p6) }
 0x1d5   : > { %v990_v4 = vld [vmem:[%s8697_s22 + $0x8] sm:$0xff] (!%p8695_p6)  ;;  %v1049_v8 = vld [vmem:[%s8698_s15] sm:$0xff] (!%p8695_p6) }
 0x1d6   : > { %v991_v5 = vpack.c.bf16 %v990_v4, %v989_v1 }
 0x1d8   : > { %6175 = vmatmul.mubr.msk.bf16.vlgmr.msra.gmra.mrb[0].mxu0 %vm1000_vm2, %v991_v5 }
 0x2ab   : > { %v1042_v7 = vpop.f32.mrb[0].mxu0 }
 0x2ac   : > { %v1043_v9 = vadd.f32 %v5598_v6, %v1042_v7  ;;  %v6176_v10 = vpop.f32.mrb[1].mxu0 }
 0x2ad   : > { %v1045_v11 = vpop.f32.mrb[2].mxu0 }
 0x2ae   : > { %v1050_v12 = vadd.f32 %v1049_v8, %v1043_v9  ;;  %v1046_v13 = vadd.f32 %v5598_v6, %v1045_v11  ;;  %v6177_v14 = vpop.f32.mrb[3].mxu0 }
 0x2b0   : > { %1052 = vst [vmem:[#allocation2] sm:$0xff] %v1050_v12  ;;  %v1051_v15 = vadd.f32 %v1049_v8, %v1046_v13 }
 0x2b2   : > { %1053 = vst [vmem:[#allocation2 + $0x8] sm:$0xff] %v1051_v15 }
 0x2b3 PF: > { %v6499_v18 = vld [vmem:[%s7878_s2 + $0x4] ss:$12 sps:$4 sm:$0xff]   ;;  %v6501_v19 = vld [vmem:[%s7878_s2] ss:$12 sps:$4 sm:$0xff]   ;;  %v7261_v20 = vmov 0.0   ;;  %v7262_v46 = vmov 0   ;;  %v1132_v5 = vlaneseq }
 0x2b4   : > { %6178 = vmatprep.subr.bf16.mxu1 %v7261_v20  ;;  %v6502_v21 = vld [vmem:[%s7878_s2 + $0x8] ss:$12 sps:$4 sm:$0xff]   ;;  %1275 = vmatprep.subr.bf16.mxu0 %v6499_v18  ;;  %v6505_v31 = vld [vmem:[%s7878_s2 + $0x18] ss:$12 sps:$4 sm:$0xff]   ;;  %v6506_v32 = vld [vmem:[%s7878_s2 + $0x20] ss:$12 sps:$4 sm:$0xff]  }
 0x2b5   : > { %v6503_v22 = vld [vmem:[%s7878_s2 + $0x1c] ss:$12 sps:$4 sm:$0xff]   ;;  %1276 = vmatpush1.bf16.msra.mxu0 %v6501_v19  ;;  %6179 = vmatpush3.bf16.msra.mxu1 %v6502_v21  ;;  %v6507_v33 = vld [vmem:[%s7878_s2 + $0x34] ss:$12 sps:$4 sm:$0xff]   ;;  %v6510_v35 = vld [vmem:[%s7878_s2 + $0x38] ss:$12 sps:$4 sm:$0xff]  }
 0x2b6   : > { %1277 = vmatprep.subr.bf16.mxu0 %v6503_v22  ;;  %6180 = vmatprep.subr.bf16.mxu1 %v7261_v20  ;;  %v6509_v34 = vld [vmem:[%s7878_s2 + $0x30] ss:$12 sps:$4 sm:$0xff]   ;;  %v6511_v36 = vld [vmem:[%s7878_s2 + $0x4c] ss:$12 sps:$4 sm:$0xff]   ;;  %v6513_v37 = vld [vmem:[%s7878_s2 + $0x48] ss:$12 sps:$4 sm:$0xff]  }
 0x2b7   : > { %v1054_v16 = vld [vmem:[#allocation2] sm:$0xff]  ;;  %v6514_v38 = vld [vmem:[%s7878_s2 + $0x50] ss:$12 sps:$4 sm:$0xff]   ;;  %v6523_v45 = vld [vmem:[%s7878_s2 + $0x94] ss:$12 sps:$4 sm:$0xff]   ;;  %1307 = vmatprep.mubr.bf16.mxu0 %v7262_v46  ;;  %vm7263_vm3 = vmmov 0  }
 0x2b8   : > { %1058 = vadd.xlane.f32.xlu0 %v1054_v16  ;;  %v6515_v39 = vld [vmem:[%s7878_s2 + $0x64] ss:$12 sps:$4 sm:$0xff]   ;;  %v6517_v40 = vld [vmem:[%s7878_s2 + $0x60] ss:$12 sps:$4 sm:$0xff]   ;;  %v6518_v41 = vld [vmem:[%s7878_s2 + $0x68] ss:$12 sps:$4 sm:$0xff]   ;;  %6194 = vmatprep.mubr.msk.bf16.mxu1 %vm7263_vm3, %v7261_v20 }
 0x2b9   : > { %v1055_v17 = vld [vmem:[#allocation2 + $0x8] sm:$0xff]  ;;  %1278 = vmatpush1.bf16.msra.mxu0 %v6505_v31  ;;  %6181 = vmatpush3.bf16.msra.mxu1 %v6506_v32  ;;  %v6519_v42 = vld [vmem:[%s7878_s2 + $0x7c] ss:$12 sps:$4 sm:$0xff]   ;;  %v6521_v43 = vld [vmem:[%s7878_s2 + $0x78] ss:$12 sps:$4 sm:$0xff]   ;;  %v7964_v6 = vshrl.u32 %v1132_v5, 7 }
 0x2ba   : > { %6182 = vmatprep.subr.bf16.mxu1 %v7261_v20  ;;  %1279 = vmatprep.subr.bf16.mxu0 %v6507_v33  ;;  %v6522_v44 = vld [vmem:[%s7878_s2 + $0x80] ss:$12 sps:$4 sm:$0xff]   ;;  %v6525_v47 = vld [vmem:[%s7878_s2 + $0x90] ss:$12 sps:$4 sm:$0xff]   ;;  %v6526_v48 = vld [vmem:[%s7878_s2 + $0x98] ss:$12 sps:$4 sm:$0xff]  }
 0x2bb   : > { %v6527_v49 = vld [vmem:[%s7878_s2 + $0xac] ss:$12 sps:$4 sm:$0xff]   ;;  %v6529_v50 = vld [vmem:[%s7878_s2 + $0xa8] ss:$12 sps:$4 sm:$0xff]   ;;  %v6530_v51 = vld [vmem:[%s7878_s2 + $0xb0] ss:$12 sps:$4 sm:$0xff]  }
 0x2bc   : > { %1060 = vadd.xlane.f32.xlu0 %v1055_v17  ;;  %v5600_v60 = vld [vmem:[%s789_s3] ss:$0 sm:$0xff]  ;;  %v7967_v7 = vsub.s32 1, %v7964_v6  ;;  %v1130_v8 = vld [vmem:[%s7880_s17] sm:$0x7]  ;;  %v7971_v9 = vsub.s32 0, %v7964_v6 }
 0x2bd   : > { %1280 = vmatpush1.bf16.msra.mxu0 %v6509_v34  ;;  %6183 = vmatpush3.bf16.msra.mxu1 %v6510_v35  ;;  %v5601_v0 = vld [vmem:[%s797_s21] ss:$0 sm:$0xff]  ;;  %v7974_v10 = vsub.s32 2, %v7964_v6  ;;  %vm1383_vm4 = vcmask 261120   ;;  %vm1504_vm5 = vcmask 1043456   ;;  %vm1476_vm6 = vcmask 64512  }
 0x2be   : > { %6184 = vmatprep.subr.bf16.mxu1 %v7261_v20  ;;  %1281 = vmatprep.subr.bf16.mxu0 %v6511_v36  ;;  %v1139_v11 = vrot.slane %v1130_v8, %v7967_v7  ;;  %v1135_v12 = vrot.slane %v1130_v8, %v7971_v9  ;;  %s7264_s3 = smov 96   ;;  %s7265_s21 = smov 64  }
 0x2bf   : > { %s7266_s2 = smov 32   ;;  %s8699_s17 = scalar_lea.vmem [#allocation15], %s7865_s16 }
 0x2c0   : > { %s8700_s16 = sld [smem:[#allocation29_spill]] }
 0x2c1   : > { %1282 = vmatpush1.bf16.msra.mxu0 %v6513_v37  ;;  %6185 = vmatpush3.bf16.msra.mxu1 %v6514_v38 }
 0x2c2   : > { %6186 = vmatprep.subr.bf16.mxu1 %v7261_v20  ;;  %1283 = vmatprep.subr.bf16.mxu0 %v6515_v39 }
 0x2c5   : > { %1284 = vmatpush1.bf16.msra.mxu0 %v6517_v40  ;;  %6187 = vmatpush3.bf16.msra.mxu1 %v6518_v41 }
 0x2c6   : > { %1285 = vmatprep.subr.bf16.mxu0 %v6519_v42  ;;  %6188 = vmatprep.subr.bf16.mxu1 %v7261_v20  ;;  %p5914_p3 = scmp.ne.s32.totalorder %s8700_s16, 3 }
 0x2c7   : > { %vm7268_vm7 = vmmov (!%p5914_p3), 0   ;;  %vm5160_vm8 = vcmask (!%p5914_p3), 1040384   ;;  %vm5274_vm9 = vcmask (!%p5914_p3), 25600  }
 0x2c9   : > { %1286 = vmatpush1.bf16.msra.mxu0 %v6521_v43  ;;  %6189 = vmatpush3.bf16.msra.mxu1 %v6522_v44 }
 0x2ca   : > { %1287 = vmatprep.subr.bf16.mxu0 %v6523_v45  ;;  %6190 = vmatprep.subr.bf16.mxu1 %v7261_v20 }
 0x2cd   : > { %1288 = vmatpush1.bf16.msra.mxu0 %v6525_v47  ;;  %6191 = vmatpush3.bf16.msra.mxu1 %v6526_v48 }
 0x2ce   : > { %1289 = vmatprep.subr.bf16.mxu0 %v6527_v49  ;;  %6192 = vmatprep.subr.bf16.mxu1 %v7261_v20 }
 0x2d1   : > { %1290 = vmatpush1.bf16.msra.mxu0 %v6529_v50  ;;  %6193 = vmatpush3.bf16.msra.mxu1 %v6530_v51 }
 0x2d2   : > { %6198 = vmatprep.subr.bf16.mxu0 %v7261_v20  ;;  %6204 = vmatprep.subr.bf16.mxu1 %v7261_v20 }
 0x345   : > { %v1059_v23 = vpop.xlane.xlu0 %1058 }
 0x346   : > { %v1063_v24 = vmul.f32 0.0078125, %v1059_v23 }
 0x348   : > { %v7915_v25 = vsub.f32 %v1054_v16, %v1063_v24 }
 0x349   : > { %v1061_v26 = vpop.xlane.xlu0 %1060 }
 0x34a   : > { %v1064_v27 = vmul.f32 0.0078125, %v1061_v26  ;;  %v1067_v28 = vmul.f32 %v7915_v25, %v7915_v25 }
 0x34c   : > { %v7919_v29 = vsub.f32 %v1055_v17, %v1064_v27  ;;  %1069 = vadd.xlane.f32.xlu1 %v1067_v28  ;;  %v1143_v17 = vrot.slane %v1130_v8, %v7974_v10 }
 0x34e   : > { %v1068_v30 = vmul.f32 %v7919_v29, %v7919_v29 }
 0x350   : > { %1071 = vadd.xlane.f32.xlu1 %v1068_v30 }
 0x3d9   : > { %v1070_v52 = vpop.xlane.xlu1 %1069 }
 0x3da   : > { %v1073_v53 = vmul.f32 0.0078125, %v1070_v52 }
 0x3dc   : > { %v1075_v54 = vadd.f32 1e-05, %v1073_v53 }
 0x3dd   : > { %v1072_v55 = vpop.xlane.xlu1 %1071 }
 0x3de   : > { %6667 = vrsqrt.f32 %v1075_v54  ;;  %v1074_v56 = vmul.f32 0.0078125, %v1072_v55 }
 0x3e0   : > { %v1076_v57 = vadd.f32 1e-05, %v1074_v56 }
 0x3e2   : > { %6669 = vrsqrt.f32 %v1076_v57 }
 0x3e8   : > { %v6668_v58 = vpop.eup %6667 }
 0x3e9   : > { %v1079_v59 = vmul.f32 %v6668_v58, %v7915_v25 }
 0x3eb   : > { %v1087_v63 = vmul.f32 %v5600_v60, %v1079_v59 }
 0x3ec   : > { %v6670_v61 = vpop.eup %6669 }
 0x3ed   : > { %v1080_v62 = vmul.f32 %v6670_v61, %v7919_v29  ;;  %v1095_v2 = vadd.f32 %v5601_v0, %v1087_v63 }
 0x3ef   : > { %v1088_v1 = vmul.f32 %v5600_v60, %v1080_v62 }
 0x3f1   : > { %v1096_v3 = vadd.f32 %v5601_v0, %v1088_v1 }
 0x3f3   : > { %v1097_v4 = vpack.c.bf16 %v1096_v3, %v1095_v2 }
 0x3f5   : > { %1308 = vmatmul.mubr.bf16.vlgmr.msra.gmra.mrb[0].mxu0 %v1097_v4  ;;  %6195 = vmatmul.mubr.bf16.vlgmr.msra.gmra.mrb[0].mxu1 %v1097_v4 }
 0x3f6   : > { %6200 = vmatprep.mubr.msk.bf16.mxu0 %vm7263_vm3, %v7261_v20  ;;  %6206 = vmatprep.mubr.msk.bf16.mxu1 %vm7263_vm3, %v7261_v20 }
 0x4c8   : > { %v1309_v13 = vpop.f32.mrb[0].mxu0  ;;  %v1352_v14 = vpop.f32.mrb[0].mxu1 }
 0x4c9   : > { %v1311_v15 = vpop.f32.mrb[1].mxu0  ;;  %v6196_v16 = vpop.f32.mrb[1].mxu1  ;;  %v1310_v24 = vadd.f32 %v1309_v13, %v1135_v12  ;;  %v1353_v27 = vadd.f32 %v1352_v14, %v1143_v17 }
 0x4ca   : > { %v1312_v18 = vadd.f32 %v1311_v15, %v1139_v11  ;;  %v1313_v19 = vpop.f32.mrb[2].mxu0  ;;  %v1355_v21 = vpop.f32.mrb[2].mxu1 }
 0x4cb   : > { %v1315_v22 = vpop.f32.mrb[3].mxu0  ;;  %v6197_v23 = vpop.f32.mrb[3].mxu1  ;;  %v1314_v28 = vadd.f32 %v1313_v19, %v1135_v12  ;;  %v1375_v31 = vmul.f32 0.17677669, %v1310_v24  ;;  %v1356_v32 = vadd.f32 %v1355_v21, %v1143_v17  ;;  %v7988_v34 = vpack.c.bf16 %v1353_v27, %v1353_v27 }
 0x4cc   : > { %v7979_v25 = vpack.c.bf16 %v1312_v18, %v1312_v18  ;;  %v1316_v26 = vadd.f32 %v1315_v22, %v1139_v11 }
 0x4cd   : > { %v1376_v35 = vmul.f32 0.17677669, %v1314_v28  ;;  %v7991_v36 = vpack.c.bf16 %v1375_v31, %v1375_v31  ;;  %v7993_v37 = vpack.c.bf16 %v1356_v32, %v1356_v32  ;;  %v1506_v39 = vsel %vm1504_vm5, %v7988_v34, 0 }
 0x4ce   : > { %v7981_v29 = vpack.c.bf16 %v1316_v26, %v1316_v26  ;;  %v1388_v30 = vsel %vm1383_vm4, %v7979_v25, 0 }
 0x4cf   : > { %6199 = vmatpush3.bf16.xpose.msra.mxu0 %v1388_v30  ;;  %v7995_v38 = vpack.c.bf16 %v1376_v35, %v1376_v35  ;;  %v1552_v40 = vsel %vm1504_vm5, %v7993_v37, 0 }
 0x4d0   : > { %v1434_v33 = vsel %vm1383_vm4, %v7981_v29, 0  ;;  %6210 = vmatprep.subr.bf16.mxu0 %v7261_v20 }
 0x4d1   : > { %6205 = vmatpush3.bf16.xpose.msra.mxu1 %v1434_v33 }
 0x4d2   : > { %6216 = vmatprep.subr.bf16.mxu1 %v7261_v20 }
 0x4d6   : > { %6201 = vmatmul.mubr.msk.bf16.vlgmr.msra.gmra.mrb[4].mxu0 %vm1383_vm4, %v7991_v36 }
 0x4d7   : > { %6211 = vmatpush3.bf16.msra.mxu0 %v1506_v39  ;;  %6212 = vmatprep.mubr.msk.bf16.mxu0 %vm7263_vm3, %v7261_v20 }
 0x4d8   : > { %6207 = vmatmul.mubr.msk.bf16.vlgmr.msra.gmra.mrb[4].mxu1 %vm1383_vm4, %v7995_v38  ;;  %6222 = vmatprep.subr.bf16.mxu0 %v7261_v20 }
 0x4d9   : > { %6217 = vmatpush3.bf16.msra.mxu1 %v1552_v40  ;;  %6218 = vmatprep.mubr.msk.bf16.mxu1 %vm7263_vm3, %v7261_v20 }
 0x4da   : > { %6228 = vmatprep.subr.bf16.mxu1 %v7261_v20 }
 0x5a9   : > { %v1424_v41 = vpop.f32.mrb[4].mxu0 }
 0x5aa   : > { %v6202_v42 = vpop.f32.mrb[5].mxu0  ;;  %v1477_v43 = vsel %vm1476_vm6, %v1424_v41, -inf }
 0x5ab   : > { %v1470_v44 = vpop.f32.mrb[4].mxu1  ;;  %1478 = vmax.xlane.f32.xlu0 %v1477_v43  ;;  %v1427_v45 = vpop.f32.mrb[6].mxu0 }
 0x5ac   : > { %v6203_v47 = vpop.f32.mrb[7].mxu0  ;;  %v6208_v48 = vpop.f32.mrb[5].mxu1  ;;  %v1480_v49 = vsel %vm1476_vm6, %v1470_v44, -inf }
 0x5ad   : > { %1481 = vmax.xlane.f32.xlu1 %v1480_v49  ;;  %v1473_v50 = vpop.f32.mrb[6].mxu1 }
 0x5ae   : > { %v6209_v51 = vpop.f32.mrb[7].mxu1 }
 0x5be   : > { %1651 = vrot.lane.b32.xlu1 %v7981_v29, %s7264_s3 }
 0x638   : > { %v1479_v52 = vpop.xlane.xlu0 %1478 }
 0x639   : > { %v1483_v53 = vsub.f32 %v1424_v41, %v1479_v52 }
 0x63a   : > { %v1482_v54 = vpop.xlane.xlu1 %1481 }
 0x63b   : > { %v1485_v55 = vmul.f32 1.442695, %v1483_v53  ;;  %v1484_v56 = vsub.f32 %v1470_v44, %v1482_v54 }
 0x63d   : > { %6671 = vpow2.f32 %v1485_v55  ;;  %v1487_v57 = vmul.f32 1.442695, %v1484_v56 }
 0x63e   : > { %v1652_v62 = vpop.permute.xlu1 %1651 }
 0x63f   : > { %6673 = vpow2.f32 %v1487_v57  ;;  %v1657_v13 = vsel %vm1383_vm4, %v1652_v62, 0 }
 0x647   : > { %v6672_v58 = vpop.eup %6671 }
 0x648   : > { %v1489_v59 = vsel %vm1476_vm6, %v6672_v58, 0.0 }
 0x649   : > { %v6674_v60 = vpop.eup %6673  ;;  %1490 = vadd.xlane.f32.xlu0 %v1489_v59 }
 0x64a   : > { %v1492_v61 = vsel %vm1476_vm6, %v6674_v60, 0.0 }
 0x64b   : > { %1493 = vadd.xlane.f32.xlu1 %v1492_v61  ;;  %v6533_v61 = vld [vmem:[%s7882_s14 + $0x10] sm:$0xff]  }
 0x65c   : > { %1596 = vrot.lane.b32.xlu1 %v7991_v36, %s7264_s3 }
 0x65f   : > { %1599 = vrot.lane.b32.xlu0 %v7979_v25, %s7264_s3 }
 0x660   : > { %1648 = vrot.lane.b32.xlu1 %v7995_v38, %s7264_s3 }
 0x6d6   : > { %v1491_v63 = vpop.xlane.xlu0 %1490 }
 0x6d7   : > { %6675 = vrcp.f32 %v1491_v63 }
 0x6d8   : > { %v1494_v0 = vpop.xlane.xlu1 %1493 }
 0x6d9   : > { %6677 = vrcp.f32 %v1494_v0 }
 0x6da   : > { %v1600_v4 = vpop.permute.xlu0 %1599 }
 0x6db   : > { %v1605_v11 = vsel %vm1383_vm4, %v1600_v4, 0  ;;  %v6532_v4 = vld [vmem:[%s7882_s14 + $0x8] sm:$0xff]  }
 0x6dc   : > { %v1597_v14 = vpop.permute.xlu1 %1596 }
 0x6e0   : > { %v1649_v15 = vpop.permute.xlu1 %1648 }
 0x6e1   : > { %v6676_v1 = vpop.eup %6675 }
 0x6e2   : > { %v1497_v2 = vmul.f32 %v6676_v1, %v6672_v58  ;;  %v6531_v1 = vld [vmem:[%s7882_s14] sm:$0xff]  }
 0x6e3   : > { %v6678_v3 = vpop.eup %6677 }
 0x6e4   : > { %v1498_v5 = vmul.f32 %v6678_v3, %v6674_v60  ;;  %v1499_v8 = vpack.c.bf16 %v1497_v2, %v1497_v2  ;;  %v6534_v3 = vld [vmem:[%s7882_s14 + $0x18] sm:$0xff]  }
 0x6e6   : > { %6213 = vmatmul.mubr.msk.bf16.vlgmr.msra.gmra.mrb[8].mxu0 %vm1476_vm6, %v1499_v8  ;;  %v1500_v12 = vpack.c.bf16 %v1498_v5, %v1498_v5 }
 0x6e7   : > { %6223 = vmatpush3.bf16.xpose.msra.mxu0 %v1605_v11  ;;  %6224 = vmatprep.mubr.msk.bf16.mxu0 %vm7263_vm3, %v7261_v20 }
 0x6e8   : > { %6219 = vmatmul.mubr.msk.bf16.vlgmr.msra.gmra.mrb[8].mxu1 %vm1476_vm6, %v1500_v12  ;;  %6234 = vmatprep.subr.bf16.mxu0 %v7261_v20 }
 0x6e9   : > { %6229 = vmatpush3.bf16.xpose.msra.mxu1 %v1657_v13  ;;  %6230 = vmatprep.mubr.msk.bf16.mxu1 %vm7263_vm3, %v7261_v20 }
 0x6ea   : > { %6240 = vmatprep.subr.bf16.mxu1 %v7261_v20 }
 0x6ee   : > { %6225 = vmatmul.mubr.msk.bf16.vlgmr.msra.gmra.mrb[12].mxu0 %vm1383_vm4, %v1597_v14 }
 0x6ef   : > { %6236 = vmatprep.mubr.msk.bf16.mxu0 %vm7263_vm3, %v7261_v20 }
 0x6f0   : > { %6231 = vmatmul.mubr.msk.bf16.vlgmr.msra.gmra.mrb[12].mxu1 %vm1383_vm4, %v1649_v15 }
 0x6f1   : > { %6242 = vmatprep.mubr.msk.bf16.mxu1 %vm7263_vm3, %v7261_v20 }
 0x7b9   : > { %v8039_v16 = vpop.f32.mrb[8].mxu0 }
 0x7ba   : > { %v6214_v17 = vpop.f32.mrb[9].mxu0 }
 0x7bb   : > { %v1545_v18 = vpop.f32.mrb[10].mxu0  ;;  %v8041_v19 = vpop.f32.mrb[8].mxu1 }
 0x7bc   : > { %v1594_v21 = vpack.c.bf16 %v8041_v19, %v8039_v16  ;;  %v6215_v22 = vpop.f32.mrb[11].mxu0  ;;  %v6220_v23 = vpop.f32.mrb[9].mxu1 }
 0x7bd   : > { %v1591_v24 = vpop.f32.mrb[10].mxu1 }
 0x7be   : > { %v6221_v26 = vpop.f32.mrb[11].mxu1 }
 0x7c1   : > { %v1641_v27 = vpop.f32.mrb[12].mxu0 }
 0x7c2   : > { %v6226_v28 = vpop.f32.mrb[13].mxu0  ;;  %v1699_v30 = vsel %vm1476_vm6, %v1641_v27, -inf }
 0x7c3   : > { %v1693_v31 = vpop.f32.mrb[12].mxu1  ;;  %1700 = vmax.xlane.f32.xlu0 %v1699_v30  ;;  %v1644_v32 = vpop.f32.mrb[14].mxu0 }
 0x7c4   : > { %v6227_v33 = vpop.f32.mrb[15].mxu0  ;;  %v6232_v35 = vpop.f32.mrb[13].mxu1  ;;  %v1702_v39 = vsel %vm1476_vm6, %v1693_v31, -inf }
 0x7c5   : > { %1703 = vmax.xlane.f32.xlu1 %v1702_v39  ;;  %v1696_v40 = vpop.f32.mrb[14].mxu1 }
 0x7c6   : > { %v6233_v41 = vpop.f32.mrb[15].mxu1 }
 0x7d6   : > { %1773 = vrot.lane.b32.xlu1 %v7993_v37, %s7264_s3 }
 0x7da   : > { %1936 = vrot.lane.b32.xlu1 %v7979_v25, %s7265_s21 }
 0x7de   : > { %1986 = vrot.lane.b32.xlu1 %v7981_v29, %s7265_s21 }
 0x7e2   : > { %1984 = vrot.lane.b32.xlu1 %v7995_v38, %s7265_s21 }
 0x850   : > { %v1701_v42 = vpop.xlane.xlu0 %1700 }
 0x851   : > { %v1705_v43 = vsub.f32 %v1641_v27, %v1701_v42 }
 0x852   : > { %v1704_v44 = vpop.xlane.xlu1 %1703 }
 0x853   : > { %v1707_v45 = vmul.f32 1.442695, %v1705_v43  ;;  %v1706_v47 = vsub.f32 %v1693_v31, %v1704_v44 }
 0x855   : > { %6679 = vpow2.f32 %v1707_v45  ;;  %v1709_v48 = vmul.f32 1.442695, %v1706_v47 }
 0x856   : > { %v1774_v49 = vpop.permute.xlu1 %1773 }
 0x857   : > { %6681 = vpow2.f32 %v1709_v48  ;;  %v1779_v50 = vsel %vm1504_vm5, %v1774_v49, 0 }
 0x858   : > { %6241 = vmatpush3.bf16.msra.mxu1 %v1779_v50 }
 0x859   : > { %6254 = vmatprep.subr.bf16.mxu1 %v7261_v20 }
 0x85a   : > { %v1937_v5 = vpop.permute.xlu1 %1936 }
 0x85b   : > { %v1942_v22 = vsel %vm1383_vm4, %v1937_v5, 0 }
 0x85e   : > { %v1987_v8 = vpop.permute.xlu1 %1986 }
 0x85f   : > { %v6680_v51 = vpop.eup %6679  ;;  %v1992_v11 = vsel %vm1383_vm4, %v1987_v8, 0 }
 0x860   : > { %v1711_v52 = vsel %vm1476_vm6, %v6680_v51, 0.0 }
 0x861   : > { %v6682_v53 = vpop.eup %6681  ;;  %1712 = vadd.xlane.f32.xlu0 %v1711_v52 }
 0x862   : > { %v1714_v54 = vsel %vm1476_vm6, %v6682_v53, 0.0  ;;  %v1985_v12 = vpop.permute.xlu1 %1984 }
 0x865   : > { %1715 = vadd.xlane.f32.xlu0 %v1714_v54 }
 0x87b   : > { %1724 = vrot.lane.b32.xlu0 %v7988_v34, %s7264_s3 }
 0x87f   : > { %1934 = vrot.lane.b32.xlu0 %v7991_v36, %s7265_s21 }
 0x8ee   : > { %v1713_v55 = vpop.xlane.xlu0 %1712 }
 0x8ef   : > { %6683 = vrcp.f32 %v1713_v55 }
 0x8f2   : > { %v1716_v56 = vpop.xlane.xlu0 %1715 }
 0x8f3   : > { %6685 = vrcp.f32 %v1716_v56 }
 0x8f6   : > { %v1725_v57 = vpop.permute.xlu0 %1724 }
 0x8f7   : > { %v1730_v58 = vsel %vm1504_vm5, %v1725_v57, 0 }
 0x8f8   : > { %6235 = vmatpush3.bf16.msra.mxu0 %v1730_v58 }
 0x8f9   : > { %v6684_v59 = vpop.eup %6683  ;;  %6246 = vmatprep.subr.bf16.mxu0 %v7261_v20 }
 0x8fa   : > { %v1719_v60 = vmul.f32 %v6684_v59, %v6680_v51  ;;  %v1935_v27 = vpop.permute.xlu0 %1934 }
 0x8fc   : > { %v1721_v62 = vpack.c.bf16 %v1719_v60, %v1719_v60 }
 0x8fd   : > { %v6686_v63 = vpop.eup %6685 }
 0x8fe   : > { %v1720_v0 = vmul.f32 %v6686_v63, %v6682_v53  ;;  %6237 = vmatmul.mubr.msk.bf16.vlgmr.msra.gmra.mrb[16].mxu0 %vm1476_vm6, %v1721_v62 }
 0x8ff   : > { %6247 = vmatpush3.bf16.msra.mxu0 %v6533_v61  ;;  %6250 = vmatprep.mubr.msk.bf16.mxu0 %vm7263_vm3, %v7261_v20 }
 0x900   : > { %v1722_v2 = vpack.c.bf16 %v1720_v0, %v1720_v0  ;;  %6248 = vmatprep.subr.bf16.mxu0 %v7261_v20 }
 0x902   : > { %6243 = vmatmul.mubr.msk.bf16.vlgmr.msra.gmra.mrb[16].mxu1 %vm1476_vm6, %v1722_v2 }
 0x903   : > { %6255 = vmatpush3.bf16.msra.mxu1 %v6531_v1  ;;  %6258 = vmatprep.mubr.msk.bf16.mxu1 %vm7263_vm3, %v7261_v20 }
 0x904   : > { %6256 = vmatprep.subr.bf16.mxu1 %v7261_v20  ;;  %6249 = vmatpush3.bf16.msra.mxu0 %v6534_v3 }
 0x905   : > { %6262 = vmatprep.subr.bf16.mxu0 %v7261_v20 }
 0x907   : > { %6257 = vmatpush3.bf16.msra.mxu1 %v6532_v4 }
 0x908   : > { %6268 = vmatprep.subr.bf16.mxu1 %v7261_v20 }
 0x90a   : > { %6259 = vmatmul.mubr.msk.bf16.vlgmr.msra.gmra.mrb[20].mxu1 %vm1383_vm4, %v1594_v21 }
 0x90b   : > { %6270 = vmatprep.mubr.msk.bf16.mxu1 %vm7263_vm3, %v7261_v20 }
 0x910   : > { %6269 = vmatpush3.bf16.xpose.msra.mxu1 %v1992_v11 }
 0x911   : > { %6280 = vmatprep.subr.bf16.mxu1 %v7261_v20 }
 0x917   : > { %6271 = vmatmul.mubr.msk.bf16.vlgmr.msra.gmra.mrb[24].mxu1 %vm1383_vm4, %v1985_v12 }
 0x918   : > { %6282 = vmatprep.mubr.msk.bf16.mxu1 %vm7263_vm3, %v7261_v20 }
 0x9d1   : > { %v1766_v13 = vpop.f32.mrb[16].mxu0 }
 0x9d2   : > { %v6238_v14 = vpop.f32.mrb[17].mxu0 }
 0x9d3   : > { %v1769_v15 = vpop.f32.mrb[18].mxu0 }
 0x9d4   : > { %v6239_v16 = vpop.f32.mrb[19].mxu0 }
 0x9d5   : > { %v1815_v17 = vpop.f32.mrb[16].mxu1 }
 0x9d6   : > { %v1821_v18 = vpack.c.bf16 %v1815_v17, %v1766_v13  ;;  %v6244_v19 = vpop.f32.mrb[17].mxu1  ;;  %v6535_v13 = vld [vmem:[%s7882_s14 + $0x20] sm:$0xff]  }
 0x9d7   : > { %v1818_v21 = vpop.f32.mrb[18].mxu1 }
 0x9d8   : > { %v6245_v23 = vpop.f32.mrb[19].mxu1  ;;  %6251 = vmatmul.mubr.msk.bf16.vlgmr.msra.gmra.mrb[20].mxu0 %vm1383_vm4, %v1821_v18  ;;  %v6536_v18 = vld [vmem:[%s7882_s14 + $0x28] sm:$0xff]  }
 0x9d9   : > { %6263 = vmatpush3.bf16.xpose.msra.mxu0 %v1942_v22  ;;  %6264 = vmatprep.mubr.msk.bf16.mxu0 %vm7263_vm3, %v7261_v20 }
 0x9da   : > { %6274 = vmatprep.subr.bf16.mxu0 %v7261_v20 }
 0x9dd   : > { %v1927_v24 = vpop.f32.mrb[20].mxu1 }
 0x9de   : > { %v6260_v26 = vpop.f32.mrb[21].mxu1 }
 0x9df   : > { %v1930_v28 = vpop.f32.mrb[22].mxu1 }
 0x9e0   : > { %v6261_v30 = vpop.f32.mrb[23].mxu1  ;;  %6265 = vmatmul.mubr.msk.bf16.vlgmr.msra.gmra.mrb[24].mxu0 %vm1383_vm4, %v1935_v27 }
 0x9e1   : > { %6276 = vmatprep.mubr.msk.bf16.mxu0 %vm7263_vm3, %v7261_v20 }
 0x9ea   : > { %v2028_v31 = vpop.f32.mrb[24].mxu1 }
 0x9eb   : > { %v6272_v32 = vpop.f32.mrb[25].mxu1  ;;  %v2037_v33 = vsel %vm1476_vm6, %v2028_v31, -inf }
 0x9ec   : > { %2038 = vmax.xlane.f32.xlu1 %v2037_v33  ;;  %v2031_v35 = vpop.f32.mrb[26].mxu1 }
 0x9ed   : > { %v6273_v39 = vpop.f32.mrb[27].mxu1 }
 0x9fd   : > { %2106 = vrot.lane.b32.xlu1 %v7993_v37, %s7265_s21 }
 0xa01   : > { %2215 = vrot.lane.b32.xlu1 %v7979_v25, %s7266_s2 }
 0xa05   : > { %2265 = vrot.lane.b32.xlu1 %v7981_v29, %s7266_s2 }
 0xa09   : > { %2263 = vrot.lane.b32.xlu1 %v7995_v38, %s7266_s2 }
 0xa79   : > { %v2039_v40 = vpop.xlane.xlu1 %2038 }
 0xa7a   : > { %v2041_v43 = vsub.f32 %v2028_v31, %v2039_v40 }
 0xa7c   : > { %v2044_v44 = vmul.f32 1.442695, %v2041_v43 }
 0xa7d   : > { %v2107_v41 = vpop.permute.xlu1 %2106 }
 0xa7e   : > { %v2112_v42 = vsel %vm1504_vm5, %v2107_v41, 0  ;;  %6687 = vpow2.f32 %v2044_v44 }
 0xa7f   : > { %6281 = vmatpush3.bf16.msra.mxu1 %v2112_v42 }
 0xa80   : > { %6294 = vmatprep.subr.bf16.mxu1 %v7261_v20 }
 0xa81   : > { %v2216_v0 = vpop.permute.xlu1 %2215 }
 0xa82   : > { %v2221_v2 = vsel %vm1383_vm4, %v2216_v0, 0 }
 0xa85   : > { %v2266_v26 = vpop.permute.xlu1 %2265 }
 0xa86   : > { %v2271_v32 = vsel %vm1383_vm4, %v2266_v26, 0 }
 0xa88   : > { %v6688_v52 = vpop.eup %6687 }
 0xa89   : > { %v2049_v55 = vsel %vm1476_vm6, %v6688_v52, 0.0  ;;  %v2264_v35 = vpop.permute.xlu1 %2263 }
 0xaab   : > { %v1871_v45 = vpop.f32.mrb[20].mxu0 }
 0xaac   : > { %v8109_v47 = vadd.f32 %v1927_v24, %v1871_v45  ;;  %v6252_v25 = vpop.f32.mrb[21].mxu0 }
 0xaad   : > { %v1874_v48 = vpop.f32.mrb[22].mxu0 }
 0xaae   : > { %v8111_v49 = vadd.f32 %v1930_v28, %v1874_v48  ;;  %v6253_v29 = vpop.f32.mrb[23].mxu0 }
 0xab3   : > { %v1978_v50 = vpop.f32.mrb[24].mxu0 }
 0xab4   : > { %v6266_v38 = vpop.f32.mrb[25].mxu0  ;;  %v2034_v51 = vsel %vm1476_vm6, %v1978_v50, -inf }
 0xab5   : > { %2035 = vmax.xlane.f32.xlu0 %v2034_v51  ;;  %v1981_v53 = vpop.f32.mrb[26].mxu0 }
 0xab6   : > { %v6267_v54 = vpop.f32.mrb[27].mxu0 }
 0xab9   : > { %2050 = vadd.xlane.f32.xlu0 %v2049_v55 }
 0xb42   : > { %v2036_v56 = vpop.xlane.xlu0 %2035 }
 0xb43   : > { %v2040_v57 = vsub.f32 %v1978_v50, %v2036_v56 }
 0xb45   : > { %v2042_v58 = vmul.f32 1.442695, %v2040_v57 }
 0xb46   : > { %v2051_v59 = vpop.xlane.xlu0 %2050 }
 0xb47   : > { %6689 = vpow2.f32 %v2042_v58 }
 0xb48   : > { %6691 = vrcp.f32 %v2051_v59 }
 0xb51   : > { %v6690_v60 = vpop.eup %6689 }
 0xb52   : > { %v6692_v61 = vpop.eup %6691  ;;  %v2046_v62 = vsel %vm1476_vm6, %v6690_v60, 0.0 }
 0xb53   : > { %v2055_v63 = vmul.f32 %v6692_v61, %v6688_v52  ;;  %2047 = vadd.xlane.f32.xlu0 %v2046_v62 }
 0xb55   : > { %v2057_v1 = vpack.c.bf16 %v2055_v63, %v2055_v63 }
 0xb57   : > { %6283 = vmatmul.mubr.msk.bf16.vlgmr.msra.gmra.mrb[28].mxu1 %vm1476_vm6, %v2057_v1 }
 0xb58   : > { %6295 = vmatpush3.bf16.xpose.msra.mxu1 %v2221_v2  ;;  %6296 = vmatprep.mubr.msk.bf16.mxu1 %vm7263_vm3, %v7261_v20 }
 0xb59   : > { %6306 = vmatprep.subr.bf16.mxu1 %v7261_v20 }
 0xb69   : > { %2058 = vrot.lane.b32.xlu0 %v7988_v34, %s7265_s21 }
 0xb6d   : > { %2213 = vrot.lane.b32.xlu0 %v7991_v36, %s7266_s2 }
 0xbe0   : > { %v2048_v3 = vpop.xlane.xlu0 %2047 }
 0xbe1   : > { %6693 = vrcp.f32 %v2048_v3 }
 0xbe4   : > { %v2059_v4 = vpop.permute.xlu0 %2058 }
 0xbe5   : > { %v2064_v5 = vsel %vm1504_vm5, %v2059_v4, 0  ;;  %v6537_v4 = vld [vmem:[%s7882_s14 + $0x30] sm:$0xff]  }
 0xbe6   : > { %6275 = vmatpush3.bf16.msra.mxu0 %v2064_v5  ;;  %v6538_v5 = vld [vmem:[%s7882_s14 + $0x38] sm:$0xff]  }
 0xbe7   : > { %6286 = vmatprep.subr.bf16.mxu0 %v7261_v20 }
 0xbe8   : > { %v2214_v8 = vpop.permute.xlu0 %2213 }
 0xbe9   : > { %6297 = vmatmul.mubr.msk.bf16.vlgmr.msra.gmra.mrb[32].mxu1 %vm1383_vm4, %v2214_v8 }
 0xbea   : > { %6308 = vmatprep.mubr.msk.bf16.mxu1 %vm7263_vm3, %v7261_v20 }
 0xbeb   : > { %v6694_v11 = vpop.eup %6693 }
 0xbec   : > { %v2054_v12 = vmul.f32 %v6694_v11, %v6690_v60 }
 0xbee   : > { %v2056_v14 = vpack.c.bf16 %v2054_v12, %v2054_v12 }
 0xbf0   : > { %6277 = vmatmul.mubr.msk.bf16.vlgmr.msra.gmra.mrb[28].mxu0 %vm1476_vm6, %v2056_v14 }
 0xbf1   : > { %6287 = vmatpush3.bf16.msra.mxu0 %v6535_v13  ;;  %6290 = vmatprep.mubr.msk.bf16.mxu0 %vm7263_vm3, %v7261_v20 }
 0xbf2   : > { %6288 = vmatprep.subr.bf16.mxu0 %v7261_v20 }
 0xbf5   : > { %6289 = vmatpush3.bf16.msra.mxu0 %v6536_v18 }
 0xbf6   : > { %6300 = vmatprep.subr.bf16.mxu0 %v7261_v20 }
 0xc2a   : > { %v2148_v36 = vpop.f32.mrb[28].mxu1 }
 0xc2b   : > { %v6284_v15 = vpop.f32.mrb[29].mxu1 }
 0xc2c   : > { %v2151_v16 = vpop.f32.mrb[30].mxu1 }
 0xc2d   : > { %v6285_v17 = vpop.f32.mrb[31].mxu1 }
 0xcbc   : > { %v2257_v19 = vpop.f32.mrb[32].mxu1 }
 0xcbd   : > { %v6298_v21 = vpop.f32.mrb[33].mxu1  ;;  %v2313_v22 = vsel %vm1476_vm6, %v2257_v19, -inf }
 0xcbe   : > { %2314 = vmax.xlane.f32.xlu0 %v2313_v22  ;;  %v2260_v23 = vpop.f32.mrb[34].mxu1  ;;  %v5654_v22 = vld [vmem:[%s832_s26] ss:$0 sm:$0xff] }
 0xcbf   : > { %v6299_v24 = vpop.f32.mrb[35].mxu1  ;;  %v6707_v23 = vld [vmem:[#allocation2] sm:$0xff] }
 0xcc3   : > { %v2100_v27 = vpop.f32.mrb[28].mxu0 }
 0xcc4   : > { %v2154_v28 = vpack.c.bf16 %v2148_v36, %v2100_v27  ;;  %v6278_v30 = vpop.f32.mrb[29].mxu0 }
 0xcc5   : > { %v2103_v31 = vpop.f32.mrb[30].mxu0 }
 0xcc6   : > { %v6279_v33 = vpop.f32.mrb[31].mxu0  ;;  %6291 = vmatmul.mubr.msk.bf16.vlgmr.msra.gmra.mrb[32].mxu0 %vm1383_vm4, %v2154_v28  ;;  %v6708_v28 = vld [vmem:[#allocation2 + $0x8] sm:$0xff] }
 0xcc7   : > { %6301 = vmatpush3.bf16.xpose.msra.mxu0 %v2271_v32  ;;  %6302 = vmatprep.mubr.msk.bf16.mxu0 %vm7263_vm3, %v7261_v20  ;;  %v2544_v33 = vld [vmem:[%s7887_s5] sm:$0xff] }
 0xcc8   : > { %6312 = vmatprep.subr.bf16.mxu0 %v7261_v20 }
 0xcce   : > { %6303 = vmatmul.mubr.msk.bf16.vlgmr.msra.gmra.mrb[36].mxu0 %vm1383_vm4, %v2264_v35  ;;  %v2552_v35 = vld [vmem:[%s7887_s5 + $0x40] sm:$0xff] }
 0xccf   : > { %6314 = vmatprep.mubr.msk.bf16.mxu0 %vm7263_vm3, %v7261_v20 }
 0xd4b   : > { %v2315_v39 = vpop.xlane.xlu0 %2314 }
 0xd4c   : > { %v2319_v40 = vsub.f32 %v2257_v19, %v2315_v39  ;;  %v2545_v39 = vld [vmem:[%s7887_s5 + $0x8] sm:$0xff] }
 0xd4e   : > { %v2321_v41 = vmul.f32 1.442695, %v2319_v40  ;;  %v5657_v40 = vcombine.low %v2544_v33, %v2552_v35 }
 0xd50   : > { %6695 = vpow2.f32 %v2321_v41  ;;  %v5658_v41 = vcombine.high %v2544_v33, %v2552_v35  ;;  %v2648_v33 = vld [vmem:[%s7887_s5 + $0x340] sm:$0xff]  ;;  %v2641_v35 = vld [vmem:[%s7887_s5 + $0x308] sm:$0xff] }
 0xd5a   : > { %v6696_v42 = vpop.eup %6695 }
 0xd5b   : > { %v2325_v43 = vsel %vm1476_vm6, %v6696_v42, 0.0 }
 0xd5c   : > { %2326 = vadd.xlane.f32.xlu0 %v2325_v43  ;;  %v2560_v43 = vld [vmem:[%s7887_s5 + $0x80] sm:$0xff] }
 0xd99   : > { %v2204_v44 = vpop.f32.mrb[32].mxu0 }
 0xd9a   : > { %v2211_v45 = vadd.f32 %v2204_v44, %v8109_v47  ;;  %v6292_v25 = vpop.f32.mrb[33].mxu0  ;;  %v2568_v44 = vld [vmem:[%s7887_s5 + $0xc0] sm:$0xff] }
 0xd9b   : > { %v2207_v48 = vpop.f32.mrb[34].mxu0 }
 0xd9c   : > { %v2212_v29 = vadd.f32 %v2207_v48, %v8111_v49  ;;  %v6293_v50 = vpop.f32.mrb[35].mxu0  ;;  %v5674_v48 = vcombine.high %v2560_v43, %v2568_v44 }
 0xd9d   : > { %v2569_v50 = vld [vmem:[%s7887_s5 + $0xc8] sm:$0xff] }
 0xda1   : > { %v2307_v38 = vpop.f32.mrb[36].mxu0 }
 0xda2   : > { %v6304_v51 = vpop.f32.mrb[37].mxu0  ;;  %v2316_v52 = vsel %vm1476_vm6, %v2307_v38, -inf }
 0xda3   : > { %2317 = vmax.xlane.f32.xlu1 %v2316_v52  ;;  %v2310_v53 = vpop.f32.mrb[38].mxu0  ;;  %v5673_v51 = vcombine.low %v2560_v43, %v2568_v44  ;;  %v2656_v44 = vld [vmem:[%s7887_s5 + $0x380] sm:$0xff] }
 0xda4   : > { %v6305_v54 = vpop.f32.mrb[39].mxu0 }
 0xdb4   : > { %2385 = vrot.lane.b32.xlu1 %v7993_v37, %s7266_s2 }
 0xde9   : > { %v2327_v60 = vpop.xlane.xlu0 %2326 }
 0xe30   : > { %v2318_v55 = vpop.xlane.xlu1 %2317 }
 0xe31   : > { %v2320_v56 = vsub.f32 %v2307_v38, %v2318_v55 }
 0xe33   : > { %v2323_v57 = vmul.f32 1.442695, %v2320_v56 }
 0xe34   : > { %v2386_v58 = vpop.permute.xlu1 %2385 }
 0xe35   : > { %6697 = vpow2.f32 %v2323_v57  ;;  %v2391_v47 = vsel %vm1504_vm5, %v2386_v58, 0 }
 0xe36   : > { %6313 = vmatpush3.bf16.msra.mxu0 %v2391_v47  ;;  %6699 = vrcp.f32 %v2327_v60  ;;  %v2584_v60 = vld [vmem:[%s7887_s5 + $0x140] sm:$0xff] }
 0xe37   : > { %3396 = vmatprep.subr.bf16.mxu0 %v5658_v41 }
 0xe3f   : > { %v6698_v49 = vpop.eup %6697 }
 0xe40   : > { %v2328_v59 = vsel %vm1476_vm6, %v6698_v49, 0.0  ;;  %v6700_v61 = vpop.eup %6699 }
 0xe41   : > { %2329 = vadd.xlane.f32.xlu0 %v2328_v59  ;;  %v2333_v62 = vmul.f32 %v6700_v61, %v6696_v42  ;;  %v2553_v42 = vld [vmem:[%s7887_s5 + $0x48] sm:$0xff]  ;;  %v2576_v59 = vld [vmem:[%s7887_s5 + $0x100] sm:$0xff] }
 0xe42   : > { %v5660_v25 = vcombine.high %v2545_v39, %v2553_v42  ;;  %v2577_v61 = vld [vmem:[%s7887_s5 + $0x108] sm:$0xff] }
 0xe43   : > { %v2335_v1 = vpack.c.bf16 %v2333_v62, %v2333_v62  ;;  %v2585_v62 = vld [vmem:[%s7887_s5 + $0x148] sm:$0xff] }
 0xe57   : > { %2337 = vrot.lane.b32.xlu0 %v7988_v34, %s7266_s2 }
 0xece   : > { %v2330_v37 = vpop.xlane.xlu0 %2329 }
 0xecf   : > { %6701 = vrcp.f32 %v2330_v37  ;;  %v5690_v37 = vcombine.high %v2576_v59, %v2584_v60 }
 0xed2   : > { %v2338_v63 = vpop.permute.xlu0 %2337 }
 0xed3   : > { %v2343_v0 = vsel %vm1504_vm5, %v2338_v63, 0  ;;  %v5689_v63 = vcombine.low %v2576_v59, %v2584_v60 }
 0xed4   : > { %6307 = vmatpush3.bf16.msra.mxu1 %v2343_v0  ;;  %v5691_v0 = vcombine.low %v2577_v61, %v2585_v62 }
 0xed5   : > { %6318 = vmatprep.subr.bf16.mxu1 %v7261_v20 }
 0xed7   : > { %6309 = vmatmul.mubr.msk.bf16.vlgmr.msra.gmra.mrb[36].mxu1 %vm1476_vm6, %v2335_v1  ;;  %v5692_v1 = vcombine.high %v2577_v61, %v2585_v62 }
 0xed8   : > { %6322 = vmatprep.mubr.msk.bf16.mxu1 %vm7263_vm3, %v7261_v20  ;;  %6319 = vmatpush3.bf16.msra.mxu1 %v6537_v4 }
 0xed9   : > { %v6702_v34 = vpop.eup %6701  ;;  %6320 = vmatprep.subr.bf16.mxu1 %v7261_v20 }
 0xeda   : > { %v2334_v2 = vmul.f32 %v6702_v34, %v6698_v49  ;;  %v2592_v34 = vld [vmem:[%s7887_s5 + $0x180] sm:$0xff] }
 0xedc   : > { %v2336_v3 = vpack.c.bf16 %v2334_v2, %v2334_v2  ;;  %6321 = vmatpush3.bf16.msra.mxu1 %v6538_v5  ;;  %v2600_v2 = vld [vmem:[%s7887_s5 + $0x1c0] sm:$0xff]  ;;  %v2601_v5 = vld [vmem:[%s7887_s5 + $0x1c8] sm:$0xff] }
 0xedd   : > { %3439 = vmatprep.subr.bf16.mxu1 %v5660_v25  ;;  %v5706_v4 = vcombine.high %v2592_v34, %v2600_v2  ;;  %v2657_v25 = vld [vmem:[%s7887_s5 + $0x388] sm:$0xff] }
 0xede   : > { %6315 = vmatmul.mubr.msk.bf16.vlgmr.msra.gmra.mrb[40].mxu0 %vm1476_vm6, %v2336_v3  ;;  %v2593_v3 = vld [vmem:[%s7887_s5 + $0x188] sm:$0xff] }
 0xedf   : > { %3428 = vmatprep.mubr.bf16.mxu0 %v7262_v46  ;;  %3397 = vmatpush1.bf16.msra.mxu0 %v5657_v40  ;;  %v2649_v40 = vld [vmem:[%s7887_s5 + $0x348] sm:$0xff] }
 0xee0   : > { %3398 = vmatprep.subr.bf16.mxu0 %v5674_v48  ;;  %v5756_v43 = vcombine.high %v2641_v35, %v2649_v40 }
 0xee3   : > { %3399 = vmatpush1.bf16.msra.mxu0 %v5673_v51 }
 0xee4   : > { %3400 = vmatprep.subr.bf16.mxu0 %v5690_v37 }
 0xee7   : > { %3401 = vmatpush1.bf16.msra.mxu0 %v5689_v63 }
 0xee8   : > { %3402 = vmatprep.subr.bf16.mxu0 %v5706_v4 }
 0xfaa   : > { %v2379_v8 = vpop.f32.mrb[36].mxu1 }
 0xfab   : > { %v6310_v11 = vpop.f32.mrb[37].mxu1 }
 0xfac   : > { %v2382_v12 = vpop.f32.mrb[38].mxu1  ;;  %v5707_v11 = vcombine.low %v2593_v3, %v2601_v5 }
 0xfad   : > { %v6311_v13 = vpop.f32.mrb[39].mxu1  ;;  %v5708_v12 = vcombine.high %v2593_v3, %v2601_v5 }
 0xfae   : > { %v2608_v13 = vld [vmem:[%s7887_s5 + $0x200] sm:$0xff] }
 0xfb1   : > { %v2427_v14 = vpop.f32.mrb[40].mxu0 }
 0xfb2   : > { %v2433_v36 = vpack.c.bf16 %v2427_v14, %v2379_v8  ;;  %v6316_v15 = vpop.f32.mrb[41].mxu0  ;;  %v5705_v8 = vcombine.low %v2592_v34, %v2600_v2  ;;  %v2616_v14 = vld [vmem:[%s7887_s5 + $0x240] sm:$0xff]  ;;  %v5655_v34 = vld [vmem:[%s840_s4] ss:$0 sm:$0xff]  ;;  %s8701_s4 = sld [smem:[#allocation44_spill]] (!%p5914_p3) }
 0xfb3   : > { %v2430_v16 = vpop.f32.mrb[42].mxu0  ;;  %v5722_v15 = vcombine.high %v2608_v13, %v2616_v14 }
 0xfb4   : > { %v6317_v17 = vpop.f32.mrb[43].mxu0  ;;  %6323 = vmatmul.mubr.msk.bf16.vlgmr.msra.gmra.mrb[40].mxu1 %vm1383_vm4, %v2433_v36  ;;  %3403 = vmatpush1.bf16.msra.mxu0 %v5705_v8  ;;  %v2609_v36 = vld [vmem:[%s7887_s5 + $0x208] sm:$0xff]  ;;  %v5656_v8 = vld [vmem:[%s8699_s17] ss:$0 sm:$0xff] }
 0xfb5   : > { %3471 = vmatprep.mubr.bf16.mxu1 %v7262_v46  ;;  %v2617_v16 = vld [vmem:[%s7887_s5 + $0x248] sm:$0xff]  ;;  %v5721_v17 = vcombine.low %v2608_v13, %v2616_v14  ;;  %3404 = vmatprep.subr.bf16.mxu0 %v5722_v15  ;;  %v2570_v13 = vld [vmem:[%s7887_s5 + $0xd0] sm:$0xff]  ;;  %v2563_v14 = vld [vmem:[%s7887_s5 + $0x98] sm:$0xff] }
 0xfb8   : > { %3405 = vmatpush1.bf16.msra.mxu0 %v5721_v17 }
0x1087   : > { %v2483_v18 = vpop.f32.mrb[40].mxu1 }
0x1088   : > { %v2490_v20 = vadd.f32 %v2483_v18, %v2211_v45  ;;  %v6324_v19 = vpop.f32.mrb[41].mxu1  ;;  %v5659_v45 = vcombine.low %v2545_v39, %v2553_v42  ;;  %v5723_v18 = vcombine.low %v2609_v36, %v2617_v16  ;;  %v5755_v42 = vcombine.low %v2641_v35, %v2649_v40 }
0x1089   : > { %v2486_v21 = vpop.f32.mrb[42].mxu1  ;;  %v2624_v19 = vld [vmem:[%s7887_s5 + $0x280] sm:$0xff] }
0x108a   : > { %v2492_v24 = vadd.f32 %v6707_v23, %v2490_v20  ;;  %v2491_v26 = vadd.f32 %v2486_v21, %v2212_v29  ;;  %v6325_v27 = vpop.f32.mrb[43].mxu1  ;;  %v2561_v29 = vld [vmem:[%s7887_s5 + $0x88] sm:$0xff]  ;;  %3440 = vmatpush1.bf16.msra.mxu1 %v5659_v45  ;;  %v5724_v20 = vcombine.high %v2609_v36, %v2617_v16  ;;  %v2632_v21 = vld [vmem:[%s7887_s5 + $0x2c0] sm:$0xff]  ;;  %v2571_v36 = vld [vmem:[%s7887_s5 + $0xd8] sm:$0xff] }
0x108b   : > { %v5676_v38 = vcombine.high %v2561_v29, %v2569_v50  ;;  %v5675_v52 = vcombine.low %v2561_v29, %v2569_v50  ;;  %v5738_v23 = vcombine.high %v2624_v19, %v2632_v21  ;;  %v2664_v45 = vld [vmem:[%s7887_s5 + $0x3c0] sm:$0xff]  ;;  %v2665_v29 = vld [vmem:[%s7887_s5 + $0x3c8] sm:$0xff] }
0x108c   : > { %v2493_v30 = vadd.f32 %v6708_v28, %v2491_v26  ;;  %v8170_v31 = vadd.f32 %v5654_v22, %v2492_v24  ;;  %v2633_v24 = vld [vmem:[%s7887_s5 + $0x2c8] sm:$0xff]  ;;  %v5737_v26 = vcombine.low %v2624_v19, %v2632_v21  ;;  %v5770_v48 = vcombine.high %v2656_v44, %v2664_v45  ;;  %v2586_v19 = vld [vmem:[%s7887_s5 + $0x150] sm:$0xff]  ;;  %v2587_v21 = vld [vmem:[%s7887_s5 + $0x158] sm:$0xff] }
0x108d   : > { %3441 = vmatprep.subr.bf16.mxu1 %v5676_v38  ;;  %3406 = vmatprep.subr.bf16.mxu0 %v5738_v23  ;;  %v5769_v50 = vcombine.low %v2656_v44, %v2664_v45  ;;  %v5771_v38 = vcombine.low %v2657_v25, %v2665_v29  ;;  %v5772_v51 = vcombine.high %v2657_v25, %v2665_v29  ;;  %v2611_v44 = vld [vmem:[%s7887_s5 + $0x218] sm:$0xff] }
0x108e   : > { %2505 = vadd.xlane.f32.xlu1 %v8170_v31  ;;  %v8173_v32 = vadd.f32 %v5654_v22, %v2493_v30  ;;  %3442 = vmatpush1.bf16.msra.mxu1 %v5675_v52  ;;  %v2625_v22 = vld [vmem:[%s7887_s5 + $0x288] sm:$0xff]  ;;  %v2640_v30 = vld [vmem:[%s7887_s5 + $0x300] sm:$0xff]  ;;  %v2546_v52 = vld [vmem:[%s7887_s5 + $0x10] sm:$0xff]  ;;  %v5679_v23 = vcombine.low %v2563_v14, %v2571_v36 }
0x108f   : > { %3443 = vmatprep.subr.bf16.mxu1 %v5692_v1  ;;  %v5739_v27 = vcombine.low %v2625_v22, %v2633_v24  ;;  %v5740_v28 = vcombine.high %v2625_v22, %v2633_v24  ;;  %3407 = vmatpush1.bf16.msra.mxu0 %v5737_v26  ;;  %v5754_v39 = vcombine.high %v2640_v30, %v2648_v33  ;;  %v2619_v45 = vld [vmem:[%s7887_s5 + $0x258] sm:$0xff] }
0x1090   : > { %2507 = vadd.xlane.f32.xlu0 %v8173_v32  ;;  %v5753_v41 = vcombine.low %v2640_v30, %v2648_v33  ;;  %v2595_v30 = vld [vmem:[%s7887_s5 + $0x198] sm:$0xff] }
0x1091   : > { %3408 = vmatprep.subr.bf16.mxu0 %v5754_v39  ;;  %v2603_v33 = vld [vmem:[%s7887_s5 + $0x1d8] sm:$0xff] }
0x1092   : > { %3444 = vmatpush1.bf16.msra.mxu1 %v5691_v0 }
0x1093   : > { %3445 = vmatprep.subr.bf16.mxu1 %v5708_v12  ;;  %3409 = vmatpush1.bf16.msra.mxu0 %v5753_v41  ;;  %v2562_v12 = vld [vmem:[%s7887_s5 + $0x90] sm:$0xff]  ;;  %v5712_v41 = vcombine.high %v2595_v30, %v2603_v33 }
0x1094   : > { %3410 = vmatprep.subr.bf16.mxu0 %v5770_v48  ;;  %v5677_v22 = vcombine.low %v2562_v12, %v2570_v13  ;;  %v5711_v48 = vcombine.low %v2595_v30, %v2603_v33  ;;  %v2581_v30 = vld [vmem:[%s7887_s5 + $0x128] sm:$0xff] }
0x1095   : > { %v2589_v33 = vld [vmem:[%s7887_s5 + $0x168] sm:$0xff] }
0x1096   : > { %3446 = vmatpush1.bf16.msra.mxu1 %v5707_v11 }
0x1097   : > { %3447 = vmatprep.subr.bf16.mxu1 %v5724_v20  ;;  %3411 = vmatpush1.bf16.msra.mxu0 %v5769_v50  ;;  %v2578_v20 = vld [vmem:[%s7887_s5 + $0x110] sm:$0xff]  ;;  %v5728_v50 = vcombine.high %v2611_v44, %v2619_v45 }
0x1098   : > { %v5694_v24 = vcombine.high %v2578_v20, %v2586_v19  ;;  %v5693_v35 = vcombine.low %v2578_v20, %v2586_v19  ;;  %v2564_v20 = vld [vmem:[%s7887_s5 + $0xa0] sm:$0xff] }
0x1099   : > { %v2572_v19 = vld [vmem:[%s7887_s5 + $0xe0] sm:$0xff] }
0x109a   : > { %3448 = vmatpush1.bf16.msra.mxu1 %v5723_v18  ;;  %v5678_v18 = vcombine.high %v2562_v12, %v2570_v13  ;;  %v2548_v12 = vld [vmem:[%s7887_s5 + $0x20] sm:$0xff] }
0x109b   : > { %3449 = vmatprep.subr.bf16.mxu1 %v5740_v28  ;;  %v2602_v28 = vld [vmem:[%s7887_s5 + $0x1d0] sm:$0xff]  ;;  %v2556_v13 = vld [vmem:[%s7887_s5 + $0x60] sm:$0xff] }
0x109e   : > { %3450 = vmatpush1.bf16.msra.mxu1 %v5739_v27  ;;  %v2594_v27 = vld [vmem:[%s7887_s5 + $0x190] sm:$0xff] }
0x109f   : > { %3451 = vmatprep.subr.bf16.mxu1 %v5756_v43  ;;  %v5710_v40 = vcombine.high %v2594_v27, %v2602_v28  ;;  %v2618_v43 = vld [vmem:[%s7887_s5 + $0x250] sm:$0xff]  ;;  %v5709_v25 = vcombine.low %v2594_v27, %v2602_v28  ;;  %v2580_v27 = vld [vmem:[%s7887_s5 + $0x120] sm:$0xff] }
0x10a0   : > { %v2588_v28 = vld [vmem:[%s7887_s5 + $0x160] sm:$0xff] }
0x10a2   : > { %3452 = vmatpush1.bf16.msra.mxu1 %v5755_v42  ;;  %v2610_v42 = vld [vmem:[%s7887_s5 + $0x210] sm:$0xff] }
0x10a3   : > { %3453 = vmatprep.subr.bf16.mxu1 %v5772_v51  ;;  %v5726_v29 = vcombine.high %v2610_v42, %v2618_v43  ;;  %v2634_v51 = vld [vmem:[%s7887_s5 + $0x2d0] sm:$0xff] }
0x10a6   : > { %3454 = vmatpush1.bf16.msra.mxu1 %v5771_v38  ;;  %v2626_v38 = vld [vmem:[%s7887_s5 + $0x290] sm:$0xff] }
0x111b   : > { %v2506_v53 = vpop.xlane.xlu1 %2505 }
0x111c   : > { %v2509_v54 = vmul.f32 0.0078125, %v2506_v53  ;;  %v2554_v53 = vld [vmem:[%s7887_s5 + $0x50] sm:$0xff] }
0x111d   : > { %v2508_v55 = vpop.xlane.xlu0 %2507 }
0x111e   : > { %v8185_v56 = vsub.f32 %v8170_v31, %v2509_v54  ;;  %v2510_v57 = vmul.f32 0.0078125, %v2508_v55  ;;  %v2547_v54 = vld [vmem:[%s7887_s5 + $0x18] sm:$0xff]  ;;  %v5661_v55 = vcombine.low %v2546_v52, %v2554_v53 }
0x1120   : > { %v8188_v58 = vsub.f32 %v8173_v32, %v2510_v57  ;;  %v2513_v47 = vmul.f32 %v8185_v56, %v8185_v56  ;;  %v5662_v57 = vcombine.high %v2546_v52, %v2554_v53  ;;  %v2627_v52 = vld [vmem:[%s7887_s5 + $0x298] sm:$0xff] }
0x1121   : > { %v2635_v53 = vld [vmem:[%s7887_s5 + $0x2d8] sm:$0xff] }
0x1122   : > { %2515 = vadd.xlane.f32.xlu0 %v2513_v47  ;;  %v2514_v49 = vmul.f32 %v8188_v58, %v8188_v58  ;;  %v2555_v47 = vld [vmem:[%s7887_s5 + $0x58] sm:$0xff]  ;;  %3482 = vmatprep.subr.bf16.mxu0 %v5662_v57  ;;  %v5742_v57 = vcombine.high %v2626_v38, %v2634_v51 }
0x1123   : > { %v5664_v59 = vcombine.high %v2547_v54, %v2555_v47 }
0x1124   : > { %2517 = vadd.xlane.f32.xlu1 %v2514_v49  ;;  %v5663_v49 = vcombine.low %v2547_v54, %v2555_v47  ;;  %v5725_v54 = vcombine.low %v2610_v42, %v2618_v43  ;;  %v5744_v47 = vcombine.high %v2627_v52, %v2635_v53  ;;  %v2596_v42 = vld [vmem:[%s7887_s5 + $0x1a0] sm:$0xff] }
0x1125   : > { %3525 = vmatprep.subr.bf16.mxu1 %v5664_v59  ;;  %v2650_v59 = vld [vmem:[%s7887_s5 + $0x350] sm:$0xff]  ;;  %v2604_v43 = vld [vmem:[%s7887_s5 + $0x1e0] sm:$0xff] }
0x11af   : > { %v2516_v60 = vpop.xlane.xlu0 %2515 }
0x11b0   : > { %v2519_v61 = vmul.f32 0.0078125, %v2516_v60  ;;  %v2643_v60 = vld [vmem:[%s7887_s5 + $0x318] sm:$0xff] }
0x11b1   : > { %v2518_v37 = vpop.xlane.xlu1 %2517 }
0x11b2   : > { %v2521_v62 = vadd.f32 1e-05, %v2519_v61  ;;  %v2520_v63 = vmul.f32 0.0078125, %v2518_v37  ;;  %v2651_v61 = vld [vmem:[%s7887_s5 + $0x358] sm:$0xff]  ;;  %v5741_v37 = vcombine.low %v2626_v38, %v2634_v51  ;;  %v2612_v38 = vld [vmem:[%s7887_s5 + $0x220] sm:$0xff] }
0x11b3   : > { %v2620_v51 = vld [vmem:[%s7887_s5 + $0x260] sm:$0xff] }
0x11b4   : > { %6703 = vrsqrt.f32 %v2521_v62  ;;  %v2522_v0 = vadd.f32 1e-05, %v2520_v63  ;;  %v5743_v62 = vcombine.low %v2627_v52, %v2635_v53  ;;  %v2613_v52 = vld [vmem:[%s7887_s5 + $0x228] sm:$0xff] }
0x11b5   : > { %v2621_v53 = vld [vmem:[%s7887_s5 + $0x268] sm:$0xff] }
0x11b6   : > { %6705 = vrsqrt.f32 %v2522_v0  ;;  %v5760_v0 = vcombine.high %v2643_v60, %v2651_v61 }
0x11be   : > { %v6704_v1 = vpop.eup %6703 }
0x11bf   : > { %v2525_v2 = vmul.f32 %v6704_v1, %v8185_v56  ;;  %v5680_v56 = vcombine.high %v2563_v14, %v2571_v36  ;;  %v2658_v1 = vld [vmem:[%s7887_s5 + $0x390] sm:$0xff]  ;;  %v2549_v14 = vld [vmem:[%s7887_s5 + $0x28] sm:$0xff] }
0x11c0   : > { %v6706_v3 = vpop.eup %6705  ;;  %v2557_v36 = vld [vmem:[%s7887_s5 + $0x68] sm:$0xff] }
0x11c1   : > { %v2533_v4 = vmul.f32 %v5655_v34, %v2525_v2  ;;  %v2526_v5 = vmul.f32 %v6706_v3, %v8188_v58  ;;  %v2579_v58 = vld [vmem:[%s7887_s5 + $0x118] sm:$0xff] }
0x11c2   : > { %v5696_v26 = vcombine.high %v2579_v58, %v2587_v21  ;;  %v5695_v39 = vcombine.low %v2579_v58, %v2587_v21  ;;  %v2659_v2 = vld [vmem:[%s7887_s5 + $0x398] sm:$0xff]  ;;  %v2565_v58 = vld [vmem:[%s7887_s5 + $0xa8] sm:$0xff] }
0x11c3   : > { %v2534_v11 = vmul.f32 %v5655_v34, %v2526_v5  ;;  %v2541_v15 = vadd.f32 %v5656_v8, %v2533_v4  ;;  %v2666_v34 = vld [vmem:[%s7887_s5 + $0x3d0] sm:$0xff]  ;;  %v2667_v3 = vld [vmem:[%s7887_s5 + $0x3d8] sm:$0xff]  ;;  %v5759_v5 = vcombine.low %v2643_v60, %v2651_v61  ;;  %v2573_v21 = vld [vmem:[%s7887_s5 + $0xe8] sm:$0xff] }
0x11c4   : > { %v2629_v60 = vld [vmem:[%s7887_s5 + $0x2a8] sm:$0xff] }
0x11c5   : > { %v2542_v16 = vadd.f32 %v5656_v8, %v2534_v11  ;;  %v5774_v8 = vcombine.high %v2658_v1, %v2666_v34  ;;  %v5776_v11 = vcombine.high %v2659_v2, %v2667_v3  ;;  %v2637_v61 = vld [vmem:[%s7887_s5 + $0x2e8] sm:$0xff] }
0x11c7   : > { %v8232_v17 = vpack.c.bf16 %v2542_v16, %v2541_v15  ;;  %v5773_v15 = vcombine.low %v2658_v1, %v2666_v34  ;;  %v5775_v16 = vcombine.low %v2659_v2, %v2667_v3  ;;  %v2644_v1 = vld [vmem:[%s7887_s5 + $0x320] sm:$0xff]  ;;  %v2645_v2 = vld [vmem:[%s7887_s5 + $0x328] sm:$0xff] }
0x11c8   : > { %v2652_v34 = vld [vmem:[%s7887_s5 + $0x360] sm:$0xff]  ;;  %v2653_v3 = vld [vmem:[%s7887_s5 + $0x368] sm:$0xff] }
0x11c9   : > { %3429 = vmatmul.mubr.bf16.vlgmr.msra.gmra.mrb[44].mxu0 %v8232_v17  ;;  %3472 = vmatmul.mubr.bf16.vlgmr.msra.gmra.mrb[44].mxu1 %v8232_v17 }
0x11ca   : > { %3483 = vmatpush1.bf16.msra.mxu0 %v5661_v55  ;;  %3526 = vmatpush1.bf16.msra.mxu1 %v5663_v49  ;;  %v5727_v55 = vcombine.low %v2611_v44, %v2619_v45  ;;  %v2642_v49 = vld [vmem:[%s7887_s5 + $0x310] sm:$0xff]  ;;  %v2597_v44 = vld [vmem:[%s7887_s5 + $0x1a8] sm:$0xff] }
0x11cb   : > { %3484 = vmatprep.subr.bf16.mxu0 %v5678_v18  ;;  %3527 = vmatprep.subr.bf16.mxu1 %v5680_v56  ;;  %v5758_v63 = vcombine.high %v2642_v49, %v2650_v59  ;;  %v5757_v4 = vcombine.low %v2642_v49, %v2650_v59  ;;  %v5666_v18 = vcombine.high %v2548_v12, %v2556_v13  ;;  %v2605_v45 = vld [vmem:[%s7887_s5 + $0x1e8] sm:$0xff]  ;;  %v2628_v49 = vld [vmem:[%s7887_s5 + $0x2a0] sm:$0xff] }
0x11cc   : > { %3514 = vmatprep.mubr.bf16.mxu0 %v7262_v46  ;;  %3557 = vmatprep.mubr.bf16.mxu1 %v7262_v46  ;;  %v5668_v56 = vcombine.high %v2549_v14, %v2557_v36  ;;  %v2636_v59 = vld [vmem:[%s7887_s5 + $0x2e0] sm:$0xff] }
0x11ce   : > { %3485 = vmatpush1.bf16.msra.mxu0 %v5677_v22  ;;  %3528 = vmatpush1.bf16.msra.mxu1 %v5679_v23  ;;  %v5665_v22 = vcombine.low %v2548_v12, %v2556_v13  ;;  %v5667_v23 = vcombine.low %v2549_v14, %v2557_v36  ;;  %v2660_v12 = vld [vmem:[%s7887_s5 + $0x3a0] sm:$0xff]  ;;  %v2661_v14 = vld [vmem:[%s7887_s5 + $0x3a8] sm:$0xff] }
0x11cf   : > { %3486 = vmatprep.subr.bf16.mxu0 %v5694_v24  ;;  %3529 = vmatprep.subr.bf16.mxu1 %v5696_v26  ;;  %v5682_v24 = vcombine.high %v2564_v20, %v2572_v19  ;;  %v5684_v26 = vcombine.high %v2565_v58, %v2573_v21  ;;  %v2668_v13 = vld [vmem:[%s7887_s5 + $0x3e0] sm:$0xff]  ;;  %v2669_v36 = vld [vmem:[%s7887_s5 + $0x3e8] sm:$0xff] }
0x11d2   : > { %3487 = vmatpush1.bf16.msra.mxu0 %v5693_v35  ;;  %3530 = vmatpush1.bf16.msra.mxu1 %v5695_v39  ;;  %v5681_v35 = vcombine.low %v2564_v20, %v2572_v19  ;;  %v5683_v39 = vcombine.low %v2565_v58, %v2573_v21  ;;  %v2550_v20 = vld [vmem:[%s7887_s5 + $0x30] sm:$0xff]  ;;  %v2551_v58 = vld [vmem:[%s7887_s5 + $0x38] sm:$0xff] }
0x11d3   : > { %3488 = vmatprep.subr.bf16.mxu0 %v5710_v40  ;;  %3531 = vmatprep.subr.bf16.mxu1 %v5712_v41  ;;  %v5698_v40 = vcombine.high %v2580_v27, %v2588_v28  ;;  %v5700_v41 = vcombine.high %v2581_v30, %v2589_v33  ;;  %v2558_v19 = vld [vmem:[%s7887_s5 + $0x70] sm:$0xff]  ;;  %v2559_v21 = vld [vmem:[%s7887_s5 + $0x78] sm:$0xff] }
0x11d6   : > { %3489 = vmatpush1.bf16.msra.mxu0 %v5709_v25  ;;  %3532 = vmatpush1.bf16.msra.mxu1 %v5711_v48  ;;  %v5697_v25 = vcombine.low %v2580_v27, %v2588_v28  ;;  %v5699_v48 = vcombine.low %v2581_v30, %v2589_v33  ;;  %v2566_v27 = vld [vmem:[%s7887_s5 + $0xb0] sm:$0xff]  ;;  %v2567_v30 = vld [vmem:[%s7887_s5 + $0xb8] sm:$0xff] }
0x11d7   : > { %3490 = vmatprep.subr.bf16.mxu0 %v5726_v29  ;;  %3533 = vmatprep.subr.bf16.mxu1 %v5728_v50  ;;  %v5714_v29 = vcombine.high %v2596_v42, %v2604_v43  ;;  %v5716_v50 = vcombine.high %v2597_v44, %v2605_v45  ;;  %v2574_v28 = vld [vmem:[%s7887_s5 + $0xf0] sm:$0xff]  ;;  %v2575_v33 = vld [vmem:[%s7887_s5 + $0xf8] sm:$0xff] }
0x11da   : > { %3491 = vmatpush1.bf16.msra.mxu0 %v5725_v54  ;;  %3534 = vmatpush1.bf16.msra.mxu1 %v5727_v55  ;;  %v5713_v54 = vcombine.low %v2596_v42, %v2604_v43  ;;  %v5715_v55 = vcombine.low %v2597_v44, %v2605_v45  ;;  %v2582_v42 = vld [vmem:[%s7887_s5 + $0x130] sm:$0xff]  ;;  %v2583_v44 = vld [vmem:[%s7887_s5 + $0x138] sm:$0xff] }
0x11db   : > { %3492 = vmatprep.subr.bf16.mxu0 %v5742_v57  ;;  %3535 = vmatprep.subr.bf16.mxu1 %v5744_v47  ;;  %v5730_v57 = vcombine.high %v2612_v38, %v2620_v51  ;;  %v5732_v47 = vcombine.high %v2613_v52, %v2621_v53  ;;  %v2590_v43 = vld [vmem:[%s7887_s5 + $0x170] sm:$0xff]  ;;  %v2591_v45 = vld [vmem:[%s7887_s5 + $0x178] sm:$0xff] }
0x11de   : > { %3493 = vmatpush1.bf16.msra.mxu0 %v5741_v37  ;;  %3536 = vmatpush1.bf16.msra.mxu1 %v5743_v62  ;;  %v5729_v37 = vcombine.low %v2612_v38, %v2620_v51  ;;  %v5731_v62 = vcombine.low %v2613_v52, %v2621_v53  ;;  %v2598_v38 = vld [vmem:[%s7887_s5 + $0x1b0] sm:$0xff]  ;;  %v2599_v52 = vld [vmem:[%s7887_s5 + $0x1b8] sm:$0xff] }
0x11df   : > { %3494 = vmatprep.subr.bf16.mxu0 %v5758_v63  ;;  %3537 = vmatprep.subr.bf16.mxu1 %v5760_v0  ;;  %v5746_v63 = vcombine.high %v2628_v49, %v2636_v59  ;;  %v5748_v0 = vcombine.high %v2629_v60, %v2637_v61  ;;  %v2606_v51 = vld [vmem:[%s7887_s5 + $0x1f0] sm:$0xff]  ;;  %v2607_v53 = vld [vmem:[%s7887_s5 + $0x1f8] sm:$0xff] }
0x11e2   : > { %3495 = vmatpush1.bf16.msra.mxu0 %v5757_v4  ;;  %3538 = vmatpush1.bf16.msra.mxu1 %v5759_v5  ;;  %v5745_v4 = vcombine.low %v2628_v49, %v2636_v59  ;;  %v5747_v5 = vcombine.low %v2629_v60, %v2637_v61  ;;  %v2614_v49 = vld [vmem:[%s7887_s5 + $0x230] sm:$0xff]  ;;  %v2615_v60 = vld [vmem:[%s7887_s5 + $0x238] sm:$0xff] }
0x11e3   : > { %3496 = vmatprep.subr.bf16.mxu0 %v5774_v8  ;;  %3539 = vmatprep.subr.bf16.mxu1 %v5776_v11  ;;  %v5762_v8 = vcombine.high %v2644_v1, %v2652_v34  ;;  %v5764_v11 = vcombine.high %v2645_v2, %v2653_v3  ;;  %v2622_v59 = vld [vmem:[%s7887_s5 + $0x270] sm:$0xff]  ;;  %v2623_v61 = vld [vmem:[%s7887_s5 + $0x278] sm:$0xff] }
0x11e6   : > { %3497 = vmatpush1.bf16.msra.mxu0 %v5773_v15  ;;  %3540 = vmatpush1.bf16.msra.mxu1 %v5775_v16  ;;  %v5761_v15 = vcombine.low %v2644_v1, %v2652_v34  ;;  %v5763_v16 = vcombine.low %v2645_v2, %v2653_v3  ;;  %v2638_v1 = vld [vmem:[%s7887_s5 + $0x2f0] sm:$0xff]  ;;  %v2631_v34 = vld [vmem:[%s7887_s5 + $0x2b8] sm:$0xff]  ;;  %v5733_v3 = vcombine.low %v2614_v49, %v2622_v59 }
0x11e7   : > { %3568 = vmatprep.subr.bf16.mxu0 %v5666_v18  ;;  %3611 = vmatprep.subr.bf16.mxu1 %v5668_v56  ;;  %v5778_v18 = vcombine.high %v2660_v12, %v2668_v13  ;;  %v5780_v56 = vcombine.high %v2661_v14, %v2669_v36  ;;  %v2639_v2 = vld [vmem:[%s7887_s5 + $0x2f8] sm:$0xff] }
0x11e9   : > { %3515 = vmatmul.mubr.bf16.vlgmr.msra.gmra.mrb[48].mxu0 %v8232_v17  ;;  %3558 = vmatmul.mubr.bf16.vlgmr.msra.gmra.mrb[48].mxu1 %v8232_v17 }
0x11ea   : > { %3569 = vmatpush1.bf16.msra.mxu0 %v5665_v22  ;;  %3612 = vmatpush1.bf16.msra.mxu1 %v5667_v23  ;;  %v5777_v22 = vcombine.low %v2660_v12, %v2668_v13  ;;  %v5779_v23 = vcombine.low %v2661_v14, %v2669_v36  ;;  %v2654_v12 = vld [vmem:[%s7887_s5 + $0x370] sm:$0xff]  ;;  %v2647_v13 = vld [vmem:[%s7887_s5 + $0x338] sm:$0xff] }
0x11eb   : > { %3570 = vmatprep.subr.bf16.mxu0 %v5682_v24  ;;  %3613 = vmatprep.subr.bf16.mxu1 %v5684_v26  ;;  %v5670_v24 = vcombine.high %v2550_v20, %v2558_v19  ;;  %v5672_v26 = vcombine.high %v2551_v58, %v2559_v21  ;;  %v2655_v14 = vld [vmem:[%s7887_s5 + $0x378] sm:$0xff] }
0x11ec   : > { %3600 = vmatprep.mubr.bf16.mxu0 %v7262_v46  ;;  %3643 = vmatprep.mubr.bf16.mxu1 %v7262_v46 }
0x11ee   : > { %3571 = vmatpush1.bf16.msra.mxu0 %v5681_v35  ;;  %3614 = vmatpush1.bf16.msra.mxu1 %v5683_v39  ;;  %v5669_v35 = vcombine.low %v2550_v20, %v2558_v19  ;;  %v5671_v39 = vcombine.low %v2551_v58, %v2559_v21  ;;  %v2670_v20 = vld [vmem:[%s7887_s5 + $0x3f0] sm:$0xff]  ;;  %v2663_v19 = vld [vmem:[%s7887_s5 + $0x3b8] sm:$0xff] }
0x11ef   : > { %3572 = vmatprep.subr.bf16.mxu0 %v5698_v40  ;;  %3615 = vmatprep.subr.bf16.mxu1 %v5700_v41  ;;  %v5686_v40 = vcombine.high %v2566_v27, %v2574_v28  ;;  %v5688_v41 = vcombine.high %v2567_v30, %v2575_v33  ;;  %v2671_v58 = vld [vmem:[%s7887_s5 + $0x3f8] sm:$0xff] }
0x11f2   : > { %3573 = vmatpush1.bf16.msra.mxu0 %v5697_v25  ;;  %3616 = vmatpush1.bf16.msra.mxu1 %v5699_v48  ;;  %v5685_v25 = vcombine.low %v2566_v27, %v2574_v28  ;;  %v5687_v48 = vcombine.low %v2567_v30, %v2575_v33  ;;  %v5783_v27 = vcombine.low %v2663_v19, %v2671_v58  ;;  %v6539_v28 = vld [vmem:[%s7891_s20 + $0x40] sm:$0xff]  }
0x11f3   : > { %3574 = vmatprep.subr.bf16.mxu0 %v5714_v29  ;;  %3617 = vmatprep.subr.bf16.mxu1 %v5716_v50  ;;  %v5702_v29 = vcombine.high %v2582_v42, %v2590_v43  ;;  %v5704_v50 = vcombine.high %v2583_v44, %v2591_v45  ;;  %v6540_v30 = vld [vmem:[%s7891_s20 + $0xc0] sm:$0xff]  }
0x11f4   : > { %v6541_v33 = vld [vmem:[%s7891_s20] sm:$0xff]  }
0x11f6   : > { %3575 = vmatpush1.bf16.msra.mxu0 %v5713_v54  ;;  %3618 = vmatpush1.bf16.msra.mxu1 %v5715_v55  ;;  %v5701_v54 = vcombine.low %v2582_v42, %v2590_v43  ;;  %v5703_v55 = vcombine.low %v2583_v44, %v2591_v45  ;;  %v6546_v42 = vld [vmem:[%s7891_s20 + $0x88] sm:$0xff]   ;;  %v6547_v43 = vld [vmem:[%s7891_s20 + $0x50] sm:$0xff]  }
0x11f7   : > { %3576 = vmatprep.subr.bf16.mxu0 %v5730_v57  ;;  %3619 = vmatprep.subr.bf16.mxu1 %v5732_v47  ;;  %v5718_v57 = vcombine.high %v2598_v38, %v2606_v51  ;;  %v5720_v47 = vcombine.high %v2599_v52, %v2607_v53  ;;  %v6548_v44 = vld [vmem:[%s7891_s20 + $0xd0] sm:$0xff]  }
0x11f8   : > { %v6549_v45 = vld [vmem:[%s7891_s20 + $0x10] sm:$0xff]  }
0x11fa   : > { %3577 = vmatpush1.bf16.msra.mxu0 %v5729_v37  ;;  %3620 = vmatpush1.bf16.msra.mxu1 %v5731_v62  ;;  %v5717_v37 = vcombine.low %v2598_v38, %v2606_v51  ;;  %v5734_v62 = vcombine.high %v2614_v49, %v2622_v59  ;;  %v6555_v38 = vld [vmem:[%s7891_s20 + $0x60] sm:$0xff]   ;;  %v6563_v49 = vld [vmem:[%s7891_s20 + $0x70] sm:$0xff]  }
0x11fb   : > { %3578 = vmatprep.subr.bf16.mxu0 %v5746_v63  ;;  %3621 = vmatprep.subr.bf16.mxu1 %v5748_v0  ;;  %v5736_v63 = vcombine.high %v2615_v60, %v2623_v61  ;;  %v2630_v0 = vld [vmem:[%s7887_s5 + $0x2b0] sm:$0xff]  ;;  %v6556_v51 = vld [vmem:[%s7891_s20 + $0xe0] sm:$0xff]  }
0x11fc   : > { %v5749_v36 = vcombine.low %v2630_v0, %v2638_v1  ;;  %v6564_v59 = vld [vmem:[%s7891_s20 + $0xf0] sm:$0xff]  }
0x11fe   : > { %3579 = vmatpush1.bf16.msra.mxu0 %v5745_v4  ;;  %3622 = vmatpush1.bf16.msra.mxu1 %v5747_v5  ;;  %v5735_v4 = vcombine.low %v2615_v60, %v2623_v61  ;;  %v5750_v5 = vcombine.high %v2630_v0, %v2638_v1  ;;  %v6565_v60 = vld [vmem:[%s7891_s20 + $0x30] sm:$0xff]   ;;  %v6571_v0 = vld [vmem:[%s7891_s20 + $0x140] sm:$0xff]  }
0x11ff   : > { %3580 = vmatprep.subr.bf16.mxu0 %v5762_v8  ;;  %3623 = vmatprep.subr.bf16.mxu1 %v5764_v11  ;;  %v5752_v8 = vcombine.high %v2631_v34, %v2639_v2  ;;  %v2646_v11 = vld [vmem:[%s7887_s5 + $0x330] sm:$0xff]  ;;  %v6572_v1 = vld [vmem:[%s7891_s20 + $0x1c0] sm:$0xff]  }
0x1200   : > { %v5765_v21 = vcombine.low %v2646_v11, %v2654_v12  ;;  %v6566_v61 = vld [vmem:[%s7891_s20 + $0xb0] sm:$0xff]  }
0x1202   : > { %3581 = vmatpush1.bf16.msra.mxu0 %v5761_v15  ;;  %3624 = vmatpush1.bf16.msra.mxu1 %v5763_v16  ;;  %v5751_v15 = vcombine.low %v2631_v34, %v2639_v2  ;;  %v5766_v16 = vcombine.high %v2646_v11, %v2654_v12  ;;  %v8371_v34 = vld [vmem:[%s7889_s23] sm:$0xff]  ;;  %v2690_v2 = vsub.s32 3, %v7964_v6 }
0x1203   : > { %3582 = vmatprep.subr.bf16.mxu0 %v5778_v18  ;;  %3625 = vmatprep.subr.bf16.mxu1 %v5780_v56  ;;  %v5768_v18 = vcombine.high %v2647_v13, %v2655_v14  ;;  %v2662_v56 = vld [vmem:[%s7887_s5 + $0x3b0] sm:$0xff] }
0x1206   : > { %3583 = vmatpush1.bf16.msra.mxu0 %v5777_v22  ;;  %3626 = vmatpush1.bf16.msra.mxu1 %v5779_v23  ;;  %v5767_v22 = vcombine.low %v2647_v13, %v2655_v14  ;;  %v5782_v23 = vcombine.high %v2662_v56, %v2670_v20 }
0x1207   : > { %3654 = vmatprep.subr.bf16.mxu0 %v5670_v24  ;;  %3697 = vmatprep.subr.bf16.mxu1 %v5672_v26  ;;  %v5784_v24 = vcombine.high %v2663_v19, %v2671_v58  ;;  %v5781_v26 = vcombine.low %v2662_v56, %v2670_v20 }
0x1209   : > { %3601 = vmatmul.mubr.bf16.vlgmr.msra.gmra.mrb[52].mxu0 %v8232_v17  ;;  %3644 = vmatmul.mubr.bf16.vlgmr.msra.gmra.mrb[52].mxu1 %v8232_v17 }
0x120a   : > { %3655 = vmatpush1.bf16.msra.mxu0 %v5669_v35  ;;  %3698 = vmatpush1.bf16.msra.mxu1 %v5671_v39  ;;  %v6542_v35 = vld [vmem:[%s7891_s20 + $0x80] sm:$0xff]   ;;  %v6543_v39 = vld [vmem:[%s7891_s20 + $0x48] sm:$0xff]  }
0x120b   : > { %3656 = vmatprep.subr.bf16.mxu0 %v5686_v40  ;;  %3699 = vmatprep.subr.bf16.mxu1 %v5688_v41  ;;  %v6544_v40 = vld [vmem:[%s7891_s20 + $0xc8] sm:$0xff]  }
0x120c   : > { %3686 = vmatprep.mubr.bf16.mxu0 %v7262_v46  ;;  %3729 = vmatprep.mubr.bf16.mxu1 %v7262_v46  ;;  %v5719_v46 = vcombine.low %v2599_v52, %v2607_v53  ;;  %v6545_v41 = vld [vmem:[%s7891_s20 + $0x8] sm:$0xff]   ;;  %v6557_v52 = vld [vmem:[%s7891_s20 + $0x20] sm:$0xff]  }
0x120d   : > { %v6558_v53 = vld [vmem:[%s7891_s20 + $0xa0] sm:$0xff]  }
0x120e   : > { %3657 = vmatpush1.bf16.msra.mxu0 %v5685_v25  ;;  %3700 = vmatpush1.bf16.msra.mxu1 %v5687_v48  ;;  %v6550_v25 = vld [vmem:[%s7891_s20 + $0x90] sm:$0xff]   ;;  %v6552_v48 = vld [vmem:[%s7891_s20 + $0xd8] sm:$0xff]  }
0x120f   : > { %3658 = vmatprep.subr.bf16.mxu0 %v5702_v29  ;;  %3701 = vmatprep.subr.bf16.mxu1 %v5704_v50  ;;  %v6553_v29 = vld [vmem:[%s7891_s20 + $0x18] sm:$0xff]  }
0x1210   : > { %v6554_v50 = vld [vmem:[%s7891_s20 + $0x98] sm:$0xff]  }
0x1212   : > { %3659 = vmatpush1.bf16.msra.mxu0 %v5701_v54  ;;  %3702 = vmatpush1.bf16.msra.mxu1 %v5703_v55  ;;  %v6559_v54 = vld [vmem:[%s7891_s20 + $0x68] sm:$0xff]  }
0x1213   : > { %3660 = vmatprep.subr.bf16.mxu0 %v5718_v57  ;;  %3703 = vmatprep.subr.bf16.mxu1 %v5720_v47  ;;  %v6560_v55 = vld [vmem:[%s7891_s20 + $0xe8] sm:$0xff]  }
0x1214   : > { %v6561_v57 = vld [vmem:[%s7891_s20 + $0x28] sm:$0xff]  }
0x1215   : > { %v6562_v47 = vld [vmem:[%s7891_s20 + $0xa8] sm:$0xff]  }
0x1216   : > { %3661 = vmatpush1.bf16.msra.mxu0 %v5717_v37  ;;  %3704 = vmatpush1.bf16.msra.mxu1 %v5719_v46  ;;  %v6567_v37 = vld [vmem:[%s7891_s20 + $0x78] sm:$0xff]  }
0x1217   : > { %3662 = vmatprep.subr.bf16.mxu0 %v5734_v62  ;;  %3705 = vmatprep.subr.bf16.mxu1 %v5736_v63  ;;  %v6568_v46 = vld [vmem:[%s7891_s20 + $0xf8] sm:$0xff]  }
0x1218   : > { %v6569_v62 = vld [vmem:[%s7891_s20 + $0x38] sm:$0xff]  }
0x1219   : > { %v6570_v63 = vld [vmem:[%s7891_s20 + $0xb8] sm:$0xff]  }
0x121a   : > { %3663 = vmatpush1.bf16.msra.mxu0 %v5733_v3  ;;  %3706 = vmatpush1.bf16.msra.mxu1 %v5735_v4  ;;  %v2679_v3 = vrot.slane %v8371_v34, %v7971_v9  ;;  %v2687_v4 = vrot.slane %v8371_v34, %v7974_v10 }
0x121b   : > { %3664 = vmatprep.subr.bf16.mxu0 %v5750_v5  ;;  %3707 = vmatprep.subr.bf16.mxu1 %v5752_v8  ;;  %v2683_v5 = vrot.slane %v8371_v34, %v7967_v7  ;;  %v2691_v8 = vrot.slane %v8371_v34, %v2690_v2 }
0x121e   : > { %3665 = vmatpush1.bf16.msra.mxu0 %v5749_v36  ;;  %3708 = vmatpush1.bf16.msra.mxu1 %v5751_v15 }
0x121f   : > { %3666 = vmatprep.subr.bf16.mxu0 %v5766_v16  ;;  %3709 = vmatprep.subr.bf16.mxu1 %v5768_v18 }
0x1222   : > { %3667 = vmatpush1.bf16.msra.mxu0 %v5765_v21  ;;  %3710 = vmatpush1.bf16.msra.mxu1 %v5767_v22 }
0x1223   : > { %3668 = vmatprep.subr.bf16.mxu0 %v5782_v23  ;;  %3711 = vmatprep.subr.bf16.mxu1 %v5784_v24 }
0x1226   : > { %3669 = vmatpush1.bf16.msra.mxu0 %v5781_v26  ;;  %3712 = vmatpush1.bf16.msra.mxu1 %v5783_v27 }
0x1227   : > { %5987 = vmatprep.subr.bf16.mxu0 %v6539_v28  ;;  %6009 = vmatprep.subr.bf16.mxu1 %v6540_v30 }
0x1229   : > { %3687 = vmatmul.mubr.bf16.vlgmr.msra.gmra.mrb[56].mxu0 %v8232_v17  ;;  %3730 = vmatmul.mubr.bf16.vlgmr.msra.gmra.mrb[56].mxu1 %v8232_v17  ;;  %v6551_v17 = vld [vmem:[%s7891_s20 + $0x58] sm:$0xff]  }
0x122a   : > { %5988 = vmatpush3.bf16.msra.mxu0 %v6541_v33  ;;  %6010 = vmatpush3.bf16.msra.mxu1 %v6542_v35 }
0x122b   : > { %5989 = vmatprep.subr.bf16.mxu0 %v6543_v39  ;;  %6011 = vmatprep.subr.bf16.mxu1 %v6544_v40 }
0x122e   : > { %5990 = vmatpush3.bf16.msra.mxu0 %v6545_v41  ;;  %6012 = vmatpush3.bf16.msra.mxu1 %v6546_v42 }
0x122f   : > { %5991 = vmatprep.subr.bf16.mxu0 %v6547_v43  ;;  %6013 = vmatprep.subr.bf16.mxu1 %v6548_v44 }
0x1232   : > { %5992 = vmatpush3.bf16.msra.mxu0 %v6549_v45  ;;  %6014 = vmatpush3.bf16.msra.mxu1 %v6550_v25  ;;  %v6573_v45 = vld [vmem:[%s7891_s20 + $0x100] sm:$0xff]  }
0x1233   : > { %5993 = vmatprep.subr.bf16.mxu0 %v6551_v17  ;;  %6015 = vmatprep.subr.bf16.mxu1 %v6552_v48  ;;  %v6574_v25 = vld [vmem:[%s7891_s20 + $0x180] sm:$0xff]   ;;  %v6575_v17 = vld [vmem:[%s7891_s20 + $0x148] sm:$0xff]  }
0x1234   : > { %v6576_v48 = vld [vmem:[%s7891_s20 + $0x1c8] sm:$0xff]  }
0x1236   : > { %5994 = vmatpush3.bf16.msra.mxu0 %v6553_v29  ;;  %6016 = vmatpush3.bf16.msra.mxu1 %v6554_v50  ;;  %v6577_v29 = vld [vmem:[%s7891_s20 + $0x108] sm:$0xff]  }
0x1237   : > { %5995 = vmatprep.subr.bf16.mxu0 %v6555_v38  ;;  %6017 = vmatprep.subr.bf16.mxu1 %v6556_v51  ;;  %v6578_v50 = vld [vmem:[%s7891_s20 + $0x188] sm:$0xff]   ;;  %v6579_v38 = vld [vmem:[%s7891_s20 + $0x150] sm:$0xff]  }
0x1238   : > { %v6580_v51 = vld [vmem:[%s7891_s20 + $0x1d0] sm:$0xff]  }
0x123a   : > { %5996 = vmatpush3.bf16.msra.mxu0 %v6557_v52  ;;  %6018 = vmatpush3.bf16.msra.mxu1 %v6558_v53  ;;  %v6581_v52 = vld [vmem:[%s7891_s20 + $0x110] sm:$0xff]  }
0x123b   : > { %5997 = vmatprep.subr.bf16.mxu0 %v6559_v54  ;;  %6019 = vmatprep.subr.bf16.mxu1 %v6560_v55  ;;  %v6582_v53 = vld [vmem:[%s7891_s20 + $0x190] sm:$0xff]   ;;  %v6583_v54 = vld [vmem:[%s7891_s20 + $0x158] sm:$0xff]  }
0x123c   : > { %v6584_v55 = vld [vmem:[%s7891_s20 + $0x1d8] sm:$0xff]  }
0x123e   : > { %5998 = vmatpush3.bf16.msra.mxu0 %v6561_v57  ;;  %6020 = vmatpush3.bf16.msra.mxu1 %v6562_v47  ;;  %v6585_v57 = vld [vmem:[%s7891_s20 + $0x118] sm:$0xff]  }
0x123f   : > { %5999 = vmatprep.subr.bf16.mxu0 %v6563_v49  ;;  %6021 = vmatprep.subr.bf16.mxu1 %v6564_v59  ;;  %v6586_v47 = vld [vmem:[%s7891_s20 + $0x198] sm:$0xff]   ;;  %v6587_v49 = vld [vmem:[%s7891_s20 + $0x160] sm:$0xff]  }
0x1240   : > { %v6588_v59 = vld [vmem:[%s7891_s20 + $0x1e0] sm:$0xff]  }
0x1242   : > { %6000 = vmatpush3.bf16.msra.mxu0 %v6565_v60  ;;  %6022 = vmatpush3.bf16.msra.mxu1 %v6566_v61  ;;  %v6589_v60 = vld [vmem:[%s7891_s20 + $0x120] sm:$0xff]  }
0x1243   : > { %6001 = vmatprep.subr.bf16.mxu0 %v6567_v37  ;;  %6023 = vmatprep.subr.bf16.mxu1 %v6568_v46  ;;  %v6590_v61 = vld [vmem:[%s7891_s20 + $0x1a0] sm:$0xff]   ;;  %v6591_v37 = vld [vmem:[%s7891_s20 + $0x168] sm:$0xff]  }
0x1244   : > { %v6592_v46 = vld [vmem:[%s7891_s20 + $0x1e8] sm:$0xff]  }
0x1246   : > { %6002 = vmatpush3.bf16.msra.mxu0 %v6569_v62  ;;  %6024 = vmatpush3.bf16.msra.mxu1 %v6570_v63  ;;  %v2694_v62 = vsub.s32 4, %v7964_v6  ;;  %v2702_v63 = vsub.s32 6, %v7964_v6 }
0x1247   : > { %6031 = vmatprep.subr.bf16.mxu0 %v6571_v0  ;;  %6053 = vmatprep.subr.bf16.mxu1 %v6572_v1  ;;  %v2698_v0 = vsub.s32 5, %v7964_v6  ;;  %v2706_v1 = vsub.s32 7, %v7964_v6 }
0x129c   : > { %v3430_v11 = vpop.f32.mrb[44].mxu0  ;;  %v3473_v12 = vpop.f32.mrb[44].mxu1 }
0x129d   : > { %v3431_v13 = vadd.f32 %v3430_v11, %v2679_v3  ;;  %v3474_v14 = vadd.f32 %v3473_v12, %v2687_v4  ;;  %v3432_v36 = vpop.f32.mrb[45].mxu0  ;;  %v3475_v15 = vpop.f32.mrb[45].mxu1  ;;  %v6595_v11 = vld [vmem:[%s7891_s20 + $0x170] sm:$0xff]  }
0x129e   : > { %v3433_v16 = vadd.f32 %v3432_v36, %v2683_v5  ;;  %v3476_v18 = vadd.f32 %v3475_v15, %v2691_v8  ;;  %v3434_v56 = vpop.f32.mrb[46].mxu0  ;;  %v3477_v20 = vpop.f32.mrb[46].mxu1  ;;  %v6596_v12 = vld [vmem:[%s7891_s20 + $0x1f0] sm:$0xff]  }
0x129f   : > { %v3435_v19 = vadd.f32 %v3434_v56, %v2679_v3  ;;  %v3478_v58 = vadd.f32 %v3477_v20, %v2687_v4  ;;  %v3436_v21 = vpop.f32.mrb[47].mxu0  ;;  %v3479_v22 = vpop.f32.mrb[47].mxu1  ;;  %v3740_v26 = vmax.f32 %v3431_v13, 0.0  ;;  %v3742_v27 = vmax.f32 %v3474_v14, 0.0  ;;  %v6593_v3 = vld [vmem:[%s7891_s20 + $0x128] sm:$0xff]  }
0x12a0   : > { %v3437_v23 = vadd.f32 %v3436_v21, %v2683_v5  ;;  %v3480_v24 = vadd.f32 %v3479_v22, %v2691_v8  ;;  %v3741_v33 = vmax.f32 %v3433_v16, 0.0  ;;  %v3743_v35 = vmax.f32 %v3476_v18, 0.0  ;;  %v6594_v4 = vld [vmem:[%s7891_s20 + $0x1a8] sm:$0xff]   ;;  %v6597_v16 = vld [vmem:[%s7891_s20 + $0x130] sm:$0xff]   ;;  %v6599_v21 = vld [vmem:[%s7891_s20 + $0x178] sm:$0xff]  }
0x12a1   : > { %v3756_v28 = vmax.f32 %v3435_v19, 0.0  ;;  %v3758_v30 = vmax.f32 %v3478_v58, 0.0  ;;  %v2695_v5 = vrot.slane %v8371_v34, %v2694_v62  ;;  %v2703_v8 = vrot.slane %v8371_v34, %v2702_v63  ;;  %v6598_v18 = vld [vmem:[%s7891_s20 + $0x1b0] sm:$0xff]   ;;  %v6600_v22 = vld [vmem:[%s7891_s20 + $0x1f8] sm:$0xff]  }
0x12a2   : > { %v3757_v39 = vmax.f32 %v3437_v23, 0.0  ;;  %v3759_v40 = vmax.f32 %v3480_v24, 0.0  ;;  %v2699_v13 = vrot.slane %v8371_v34, %v2698_v0  ;;  %v2707_v14 = vrot.slane %v8371_v34, %v2706_v1 }
0x12a3   : > { %v3772_v41 = vpack.c.bf16 %v3756_v28, %v3740_v26  ;;  %v3774_v42 = vpack.c.bf16 %v3758_v30, %v3742_v27 }
0x12a4   : > { %v3773_v43 = vpack.c.bf16 %v3757_v39, %v3741_v33  ;;  %v3775_v44 = vpack.c.bf16 %v3759_v40, %v3743_v35  ;;  %v6601_v40 = vld [vmem:[%s7891_s20 + $0x138] sm:$0xff]  }
0x12a6   : > { %4851 = vmatprep.mubr.bf16.mxu0 %v3773_v43  ;;  %4892 = vmatprep.mubr.bf16.mxu1 %v3775_v44 }
0x12a7   : > { %4852 = vmatmul.mubr.bf16.vlgmr.msra.gmra.mrb[60].mxu0 %v3772_v41  ;;  %4893 = vmatmul.mubr.bf16.vlgmr.msra.gmra.mrb[60].mxu1 %v3774_v42  ;;  %v6602_v41 = vld [vmem:[%s7891_s20 + $0x1b8] sm:$0xff]  }
0x12a8   : > { %6032 = vmatpush3.bf16.msra.mxu0 %v6573_v45  ;;  %6054 = vmatpush3.bf16.msra.mxu1 %v6574_v25  ;;  %v6603_v25 = vld [vmem:[%s7891_s20 + $0x240] sm:$0xff]  }
0x12a9   : > { %6033 = vmatprep.subr.bf16.mxu0 %v6575_v17  ;;  %6055 = vmatprep.subr.bf16.mxu1 %v6576_v48  ;;  %v6604_v17 = vld [vmem:[%s7891_s20 + $0x2c0] sm:$0xff]  }
0x12ac   : > { %6034 = vmatpush3.bf16.msra.mxu0 %v6577_v29  ;;  %6056 = vmatpush3.bf16.msra.mxu1 %v6578_v50 }
0x12ad   : > { %6035 = vmatprep.subr.bf16.mxu0 %v6579_v38  ;;  %6057 = vmatprep.subr.bf16.mxu1 %v6580_v51 }
0x12b0   : > { %6036 = vmatpush3.bf16.msra.mxu0 %v6581_v52  ;;  %6058 = vmatpush3.bf16.msra.mxu1 %v6582_v53 }
0x12b1   : > { %6037 = vmatprep.subr.bf16.mxu0 %v6583_v54  ;;  %6059 = vmatprep.subr.bf16.mxu1 %v6584_v55  ;;  %v6605_v55 = vld [vmem:[%s7891_s20 + $0x200] sm:$0xff]  }
0x12b4   : > { %6038 = vmatpush3.bf16.msra.mxu0 %v6585_v57  ;;  %6060 = vmatpush3.bf16.msra.mxu1 %v6586_v47  ;;  %v6606_v57 = vld [vmem:[%s7891_s20 + $0x280] sm:$0xff]   ;;  %v6607_v47 = vld [vmem:[%s7891_s20 + $0x248] sm:$0xff]  }
0x12b5   : > { %6039 = vmatprep.subr.bf16.mxu0 %v6587_v49  ;;  %6061 = vmatprep.subr.bf16.mxu1 %v6588_v59  ;;  %v6608_v49 = vld [vmem:[%s7891_s20 + $0x2c8] sm:$0xff]  }
0x12b6   : > { %v6609_v59 = vld [vmem:[%s7891_s20 + $0x208] sm:$0xff]  }
0x12b8   : > { %6040 = vmatpush3.bf16.msra.mxu0 %v6589_v60  ;;  %6062 = vmatpush3.bf16.msra.mxu1 %v6590_v61  ;;  %v6610_v60 = vld [vmem:[%s7891_s20 + $0x288] sm:$0xff]   ;;  %v6611_v61 = vld [vmem:[%s7891_s20 + $0x250] sm:$0xff]  }
0x12b9   : > { %6041 = vmatprep.subr.bf16.mxu0 %v6591_v37  ;;  %6063 = vmatprep.subr.bf16.mxu1 %v6592_v46  ;;  %v6612_v37 = vld [vmem:[%s7891_s20 + $0x2d0] sm:$0xff]  }
0x12ba   : > { %v6613_v46 = vld [vmem:[%s7891_s20 + $0x210] sm:$0xff]  }
0x12bc   : > { %v3516_v36 = vpop.f32.mrb[48].mxu0  ;;  %v3559_v15 = vpop.f32.mrb[48].mxu1  ;;  %6042 = vmatpush3.bf16.msra.mxu0 %v6593_v3  ;;  %6064 = vmatpush3.bf16.msra.mxu1 %v6594_v4  ;;  %v6614_v3 = vld [vmem:[%s7891_s20 + $0x290] sm:$0xff]   ;;  %v6615_v4 = vld [vmem:[%s7891_s20 + $0x258] sm:$0xff]  }
0x12bd   : > { %v3517_v56 = vadd.f32 %v3516_v36, %v2695_v5  ;;  %v3560_v20 = vadd.f32 %v3559_v15, %v2703_v8  ;;  %v3518_v19 = vpop.f32.mrb[49].mxu0  ;;  %v3561_v58 = vpop.f32.mrb[49].mxu1  ;;  %6043 = vmatprep.subr.bf16.mxu0 %v6595_v11  ;;  %6065 = vmatprep.subr.bf16.mxu1 %v6596_v12  ;;  %v6618_v11 = vld [vmem:[%s7891_s20 + $0x298] sm:$0xff]   ;;  %v6619_v12 = vld [vmem:[%s7891_s20 + $0x260] sm:$0xff]   ;;  %v6623_v15 = vld [vmem:[%s7891_s20 + $0x268] sm:$0xff]  }
0x12be   : > { %v3519_v23 = vadd.f32 %v3518_v19, %v2699_v13  ;;  %v3562_v24 = vadd.f32 %v3561_v58, %v2707_v14  ;;  %v3520_v26 = vpop.f32.mrb[50].mxu0  ;;  %v3563_v34 = vpop.f32.mrb[50].mxu1  ;;  %v6622_v36 = vld [vmem:[%s7891_s20 + $0x2a0] sm:$0xff]  }
0x12bf   : > { %v3521_v27 = vadd.f32 %v3520_v26, %v2695_v5  ;;  %v3564_v28 = vadd.f32 %v3563_v34, %v2703_v8  ;;  %v3522_v30 = vpop.f32.mrb[51].mxu0  ;;  %v3565_v33 = vpop.f32.mrb[51].mxu1  ;;  %v3744_v42 = vmax.f32 %v3517_v56, 0.0  ;;  %v3746_v43 = vmax.f32 %v3560_v20, 0.0  ;;  %v6616_v5 = vld [vmem:[%s7891_s20 + $0x2d8] sm:$0xff]   ;;  %v6625_v56 = vld [vmem:[%s7891_s20 + $0x228] sm:$0xff]  }
0x12c0   : > { %v3523_v35 = vadd.f32 %v3522_v30, %v2699_v13  ;;  %v3566_v39 = vadd.f32 %v3565_v33, %v2707_v14  ;;  %6044 = vmatpush3.bf16.msra.mxu0 %v6597_v16  ;;  %6066 = vmatpush3.bf16.msra.mxu1 %v6598_v18  ;;  %v3745_v48 = vmax.f32 %v3519_v23, 0.0  ;;  %v3747_v29 = vmax.f32 %v3562_v24, 0.0  ;;  %v6617_v8 = vld [vmem:[%s7891_s20 + $0x218] sm:$0xff]   ;;  %v6620_v13 = vld [vmem:[%s7891_s20 + $0x2e0] sm:$0xff]   ;;  %v6624_v16 = vld [vmem:[%s7891_s20 + $0x2e8] sm:$0xff]  }
0x12c1   : > { %v3760_v44 = vmax.f32 %v3521_v27, 0.0  ;;  %v3762_v45 = vmax.f32 %v3564_v28, 0.0  ;;  %6045 = vmatprep.subr.bf16.mxu0 %v6599_v21  ;;  %6067 = vmatprep.subr.bf16.mxu1 %v6600_v22  ;;  %v6621_v14 = vld [vmem:[%s7891_s20 + $0x220] sm:$0xff]   ;;  %v8452_v18 = vld [vmem:[%s7889_s23 + $0x8] sm:$0xff]  ;;  %v6627_v21 = vld [vmem:[%s7891_s20 + $0x270] sm:$0xff]  }
0x12c2   : > { %v3761_v50 = vmax.f32 %v3523_v35, 0.0  ;;  %v3763_v38 = vmax.f32 %v3566_v39, 0.0  ;;  %v6626_v20 = vld [vmem:[%s7891_s20 + $0x2a8] sm:$0xff]   ;;  %v2711_v19 = vrot.slane %v8452_v18, %v7971_v9  ;;  %v2719_v58 = vrot.slane %v8452_v18, %v7974_v10  ;;  %v6628_v22 = vld [vmem:[%s7891_s20 + $0x2f0] sm:$0xff]   ;;  %v6631_v35 = vld [vmem:[%s7891_s20 + $0x278] sm:$0xff]  }
0x12c3   : > { %v3776_v51 = vpack.c.bf16 %v3760_v44, %v3744_v42  ;;  %v3778_v52 = vpack.c.bf16 %v3762_v45, %v3746_v43  ;;  %v2715_v23 = vrot.slane %v8452_v18, %v7967_v7  ;;  %v2723_v24 = vrot.slane %v8452_v18, %v2690_v2  ;;  %v6629_v27 = vld [vmem:[%s7891_s20 + $0x230] sm:$0xff]   ;;  %v6632_v7 = vld [vmem:[%s7891_s20 + $0x2f8] sm:$0xff]  }
0x12c4   : > { %v3777_v53 = vpack.c.bf16 %v3761_v50, %v3745_v48  ;;  %v3779_v54 = vpack.c.bf16 %v3763_v38, %v3747_v29  ;;  %6046 = vmatpush3.bf16.msra.mxu0 %v6601_v40  ;;  %6068 = vmatpush3.bf16.msra.mxu1 %v6602_v41  ;;  %v6630_v9 = vld [vmem:[%s7891_s20 + $0x2b0] sm:$0xff]   ;;  %v6633_v48 = vld [vmem:[%s7891_s20 + $0x238] sm:$0xff]  }
0x12c5   : > { %6075 = vmatprep.subr.bf16.mxu0 %v6603_v25  ;;  %6097 = vmatprep.subr.bf16.mxu1 %v6604_v17  ;;  %v6634_v29 = vld [vmem:[%s7891_s20 + $0x2b8] sm:$0xff]  }
0x12c6   : > { %4933 = vmatprep.mubr.bf16.mxu0 %v3777_v53  ;;  %4974 = vmatprep.mubr.bf16.mxu1 %v3779_v54  ;;  %v6635_v53 = vld [vmem:[%s7891_s20 + $0x340] sm:$0xff]  }
0x12c7   : > { %4934 = vmatmul.mubr.bf16.vlgmr.msra.gmra.mrb[64].mxu0 %v3776_v51  ;;  %4975 = vmatmul.mubr.bf16.vlgmr.msra.gmra.mrb[64].mxu1 %v3778_v52  ;;  %v6636_v54 = vld [vmem:[%s7891_s20 + $0x3c0] sm:$0xff]  }
0x12c8   : > { %6076 = vmatpush3.bf16.msra.mxu0 %v6605_v55  ;;  %6098 = vmatpush3.bf16.msra.mxu1 %v6606_v57 }
0x12c9   : > { %6077 = vmatprep.subr.bf16.mxu0 %v6607_v47  ;;  %6099 = vmatprep.subr.bf16.mxu1 %v6608_v49 }
0x12cc   : > { %6078 = vmatpush3.bf16.msra.mxu0 %v6609_v59  ;;  %6100 = vmatpush3.bf16.msra.mxu1 %v6610_v60 }
0x12cd   : > { %6079 = vmatprep.subr.bf16.mxu0 %v6611_v61  ;;  %6101 = vmatprep.subr.bf16.mxu1 %v6612_v37 }
0x12d0   : > { %6080 = vmatpush3.bf16.msra.mxu0 %v6613_v46  ;;  %6102 = vmatpush3.bf16.msra.mxu1 %v6614_v3  ;;  %v6637_v46 = vld [vmem:[%s7891_s20 + $0x300] sm:$0xff]  }
0x12d1   : > { %6081 = vmatprep.subr.bf16.mxu0 %v6615_v4  ;;  %6103 = vmatprep.subr.bf16.mxu1 %v6616_v5  ;;  %v6638_v3 = vld [vmem:[%s7891_s20 + $0x380] sm:$0xff]   ;;  %v6639_v4 = vld [vmem:[%s7891_s20 + $0x348] sm:$0xff]  }
0x12d2   : > { %v6640_v5 = vld [vmem:[%s7891_s20 + $0x3c8] sm:$0xff]  }
0x12d4   : > { %6082 = vmatpush3.bf16.msra.mxu0 %v6617_v8  ;;  %6104 = vmatpush3.bf16.msra.mxu1 %v6618_v11  ;;  %v6641_v8 = vld [vmem:[%s7891_s20 + $0x308] sm:$0xff]  }
0x12d5   : > { %6083 = vmatprep.subr.bf16.mxu0 %v6619_v12  ;;  %6105 = vmatprep.subr.bf16.mxu1 %v6620_v13  ;;  %v6642_v11 = vld [vmem:[%s7891_s20 + $0x388] sm:$0xff]   ;;  %v6643_v12 = vld [vmem:[%s7891_s20 + $0x350] sm:$0xff]  }
0x12d6   : > { %v6644_v13 = vld [vmem:[%s7891_s20 + $0x3d0] sm:$0xff]  }
0x12d8   : > { %6084 = vmatpush3.bf16.msra.mxu0 %v6621_v14  ;;  %6106 = vmatpush3.bf16.msra.mxu1 %v6622_v36  ;;  %v6645_v14 = vld [vmem:[%s7891_s20 + $0x310] sm:$0xff]  }
0x12d9   : > { %6085 = vmatprep.subr.bf16.mxu0 %v6623_v15  ;;  %6107 = vmatprep.subr.bf16.mxu1 %v6624_v16  ;;  %v6646_v36 = vld [vmem:[%s7891_s20 + $0x390] sm:$0xff]   ;;  %v6647_v15 = vld [vmem:[%s7891_s20 + $0x358] sm:$0xff]  }
0x12da   : > { %v6648_v16 = vld [vmem:[%s7891_s20 + $0x3d8] sm:$0xff]  }
0x12dc   : > { %v3602_v26 = vpop.f32.mrb[52].mxu0  ;;  %v3645_v34 = vpop.f32.mrb[52].mxu1  ;;  %6086 = vmatpush3.bf16.msra.mxu0 %v6625_v56  ;;  %6108 = vmatpush3.bf16.msra.mxu1 %v6626_v20  ;;  %v6649_v56 = vld [vmem:[%s7891_s20 + $0x318] sm:$0xff]  }
0x12dd   : > { %v3603_v28 = vadd.f32 %v3602_v26, %v2711_v19  ;;  %v3646_v30 = vadd.f32 %v3645_v34, %v2719_v58  ;;  %v3604_v10 = vpop.f32.mrb[53].mxu0  ;;  %v3647_v33 = vpop.f32.mrb[53].mxu1  ;;  %6087 = vmatprep.subr.bf16.mxu0 %v6627_v21  ;;  %6109 = vmatprep.subr.bf16.mxu1 %v6628_v22  ;;  %v6650_v20 = vld [vmem:[%s7891_s20 + $0x398] sm:$0xff]   ;;  %v6653_v21 = vld [vmem:[%s7891_s20 + $0x320] sm:$0xff]   ;;  %v6657_v26 = vld [vmem:[%s7891_s20 + $0x328] sm:$0xff]  }
0x12de   : > { %v3605_v39 = vadd.f32 %v3604_v10, %v2715_v23  ;;  %v3648_v40 = vadd.f32 %v3647_v33, %v2723_v24  ;;  %v3606_v41 = vpop.f32.mrb[54].mxu0  ;;  %v3649_v2 = vpop.f32.mrb[54].mxu1  ;;  %v6654_v22 = vld [vmem:[%s7891_s20 + $0x3a0] sm:$0xff]   ;;  %v6658_v34 = vld [vmem:[%s7891_s20 + $0x3a8] sm:$0xff]   ;;  %v2731_v10 = vrot.slane %v8452_v18, %v2698_v0  ;;  %v2739_v33 = vrot.slane %v8452_v18, %v2706_v1  ;;  %v6664_v0 = vld [vmem:[%s7891_s20 + $0x3f8] sm:$0xff]  }
0x12df   : > { %v3607_v42 = vadd.f32 %v3606_v41, %v2711_v19  ;;  %v3650_v43 = vadd.f32 %v3649_v2, %v2719_v58  ;;  %v3608_v44 = vpop.f32.mrb[55].mxu0  ;;  %v3651_v45 = vpop.f32.mrb[55].mxu1  ;;  %v3748_v50 = vmax.f32 %v3603_v28, 0.0  ;;  %v3750_v38 = vmax.f32 %v3646_v30, 0.0  ;;  %v6651_v19 = vld [vmem:[%s7891_s20 + $0x360] sm:$0xff]   ;;  %v6659_v28 = vld [vmem:[%s7891_s20 + $0x370] sm:$0xff]  }
0x12e0   : > { %v3609_v25 = vadd.f32 %v3608_v44, %v2715_v23  ;;  %v3652_v17 = vadd.f32 %v3651_v45, %v2723_v24  ;;  %6088 = vmatpush3.bf16.msra.mxu0 %v6629_v27  ;;  %6110 = vmatpush3.bf16.msra.mxu1 %v6630_v9  ;;  %v3749_v55 = vmax.f32 %v3605_v39, 0.0  ;;  %v3751_v57 = vmax.f32 %v3648_v40, 0.0  ;;  %v6652_v58 = vld [vmem:[%s7891_s20 + $0x3e0] sm:$0xff]   ;;  %v6655_v23 = vld [vmem:[%s7891_s20 + $0x368] sm:$0xff]   ;;  %v6660_v30 = vld [vmem:[%s7891_s20 + $0x3f0] sm:$0xff]  }
0x12e1   : > { %v3764_v51 = vmax.f32 %v3607_v42, 0.0  ;;  %v3766_v52 = vmax.f32 %v3650_v43, 0.0  ;;  %6089 = vmatprep.subr.bf16.mxu0 %v6631_v35  ;;  %6111 = vmatprep.subr.bf16.mxu1 %v6632_v7  ;;  %v6656_v24 = vld [vmem:[%s7891_s20 + $0x3e8] sm:$0xff]   ;;  %v2727_v27 = vrot.slane %v8452_v18, %v2694_v62  ;;  %v2735_v9 = vrot.slane %v8452_v18, %v2702_v63  ;;  %v6661_v62 = vld [vmem:[%s7891_s20 + $0x330] sm:$0xff]   ;;  %v6663_v42 = vld [vmem:[%s7891_s20 + $0x378] sm:$0xff]  }
0x12e2   : > { %v3765_v47 = vmax.f32 %v3609_v25, 0.0  ;;  %v3767_v49 = vmax.f32 %v3652_v17, 0.0  ;;  %v6662_v39 = vld [vmem:[%s7891_s20 + $0x3b0] sm:$0xff]  }
0x12e3   : > { %v3780_v59 = vpack.c.bf16 %v3764_v51, %v3748_v50  ;;  %v3782_v60 = vpack.c.bf16 %v3766_v52, %v3750_v38  ;;  %v6665_v50 = vld [vmem:[%s7891_s20 + $0x338] sm:$0xff]  }
0x12e4   : > { %v3781_v61 = vpack.c.bf16 %v3765_v47, %v3749_v55  ;;  %v3783_v37 = vpack.c.bf16 %v3767_v49, %v3751_v57  ;;  %6090 = vmatpush3.bf16.msra.mxu0 %v6633_v48  ;;  %6112 = vmatpush3.bf16.msra.mxu1 %v6634_v29  ;;  %v6666_v38 = vld [vmem:[%s7891_s20 + $0x3b8] sm:$0xff]  }
0x12e5   : > { %6119 = vmatprep.subr.bf16.mxu0 %v6635_v53  ;;  %6141 = vmatprep.subr.bf16.mxu1 %v6636_v54 }
0x12e6   : > { %5015 = vmatprep.mubr.bf16.mxu0 %v3781_v61  ;;  %5056 = vmatprep.mubr.bf16.mxu1 %v3783_v37 }
0x12e7   : > { %5016 = vmatmul.mubr.bf16.vlgmr.msra.gmra.mrb[68].mxu0 %v3780_v59  ;;  %5057 = vmatmul.mubr.bf16.vlgmr.msra.gmra.mrb[68].mxu1 %v3782_v60 }
0x12e8   : > { %6120 = vmatpush3.bf16.msra.mxu0 %v6637_v46  ;;  %6142 = vmatpush3.bf16.msra.mxu1 %v6638_v3 }
0x12e9   : > { %6121 = vmatprep.subr.bf16.mxu0 %v6639_v4  ;;  %6143 = vmatprep.subr.bf16.mxu1 %v6640_v5  ;;  %v5785_v4 = vld [vmem:[%s883_s24] ss:$0 sm:$0xff] }
0x12ec   : > { %6122 = vmatpush3.bf16.msra.mxu0 %v6641_v8  ;;  %6144 = vmatpush3.bf16.msra.mxu1 %v6642_v11 }
0x12ed   : > { %6123 = vmatprep.subr.bf16.mxu0 %v6643_v12  ;;  %6145 = vmatprep.subr.bf16.mxu1 %v6644_v13 }
0x12f0   : > { %6124 = vmatpush3.bf16.msra.mxu0 %v6645_v14  ;;  %6146 = vmatpush3.bf16.msra.mxu1 %v6646_v36 }
0x12f1   : > { %6125 = vmatprep.subr.bf16.mxu0 %v6647_v15  ;;  %6147 = vmatprep.subr.bf16.mxu1 %v6648_v16 }
0x12f4   : > { %6126 = vmatpush3.bf16.msra.mxu0 %v6649_v56  ;;  %6148 = vmatpush3.bf16.msra.mxu1 %v6650_v20 }
0x12f5   : > { %6127 = vmatprep.subr.bf16.mxu0 %v6651_v19  ;;  %6149 = vmatprep.subr.bf16.mxu1 %v6652_v58 }
0x12f8   : > { %6128 = vmatpush3.bf16.msra.mxu0 %v6653_v21  ;;  %6150 = vmatpush3.bf16.msra.mxu1 %v6654_v22 }
0x12f9   : > { %6129 = vmatprep.subr.bf16.mxu0 %v6655_v23  ;;  %6151 = vmatprep.subr.bf16.mxu1 %v6656_v24 }
0x12fc   : > { %v3688_v35 = vpop.f32.mrb[56].mxu0  ;;  %v3731_v7 = vpop.f32.mrb[56].mxu1  ;;  %6130 = vmatpush3.bf16.msra.mxu0 %v6657_v26  ;;  %6152 = vmatpush3.bf16.msra.mxu1 %v6658_v34 }
0x12fd   : > { %v3689_v40 = vadd.f32 %v3688_v35, %v2727_v27  ;;  %v3732_v63 = vadd.f32 %v3731_v7, %v2735_v9  ;;  %v3690_v41 = vpop.f32.mrb[57].mxu0  ;;  %v3733_v2 = vpop.f32.mrb[57].mxu1  ;;  %6131 = vmatprep.subr.bf16.mxu0 %v6659_v28  ;;  %6153 = vmatprep.subr.bf16.mxu1 %v6660_v30 }
0x12fe   : > { %v3691_v43 = vadd.f32 %v3690_v41, %v2731_v10  ;;  %v3734_v6 = vadd.f32 %v3733_v2, %v2739_v33  ;;  %v3692_v44 = vpop.f32.mrb[58].mxu0  ;;  %v3735_v1 = vpop.f32.mrb[58].mxu1 }
0x12ff   : > { %v3693_v18 = vadd.f32 %v3692_v44, %v2727_v27  ;;  %v3736_v45 = vadd.f32 %v3735_v1, %v2735_v9  ;;  %v3694_v25 = vpop.f32.mrb[59].mxu0  ;;  %v3737_v17 = vpop.f32.mrb[59].mxu1  ;;  %v3752_v51 = vmax.f32 %v3689_v40, 0.0  ;;  %v3754_v52 = vmax.f32 %v3732_v63, 0.0 }
0x1300   : > { %v3695_v48 = vadd.f32 %v3694_v25, %v2731_v10  ;;  %v3738_v29 = vadd.f32 %v3737_v17, %v2739_v33  ;;  %6132 = vmatpush3.bf16.msra.mxu0 %v6661_v62  ;;  %6154 = vmatpush3.bf16.msra.mxu1 %v6662_v39  ;;  %v3753_v55 = vmax.f32 %v3691_v43, 0.0  ;;  %v3755_v57 = vmax.f32 %v3734_v6, 0.0 }
0x1301   : > { %v3768_v53 = vmax.f32 %v3693_v18, 0.0  ;;  %v3770_v54 = vmax.f32 %v3736_v45, 0.0  ;;  %6133 = vmatprep.subr.bf16.mxu0 %v6663_v42  ;;  %6155 = vmatprep.subr.bf16.mxu1 %v6664_v0 }
0x1302   : > { %v3769_v47 = vmax.f32 %v3695_v48, 0.0  ;;  %v3771_v49 = vmax.f32 %v3738_v29, 0.0 }
0x1303   : > { %v3784_v59 = vpack.c.bf16 %v3768_v53, %v3752_v51  ;;  %v3786_v60 = vpack.c.bf16 %v3770_v54, %v3754_v52 }
0x1304   : > { %v3785_v61 = vpack.c.bf16 %v3769_v47, %v3753_v55  ;;  %v3787_v37 = vpack.c.bf16 %v3771_v49, %v3755_v57  ;;  %6134 = vmatpush3.bf16.msra.mxu0 %v6665_v50  ;;  %6156 = vmatpush3.bf16.msra.mxu1 %v6666_v38 }
0x1306   : > { %5097 = vmatprep.mubr.bf16.mxu0 %v3785_v61  ;;  %5138 = vmatprep.mubr.bf16.mxu1 %v3787_v37 }
0x1307   : > { %5098 = vmatmul.mubr.bf16.vlgmr.msra.gmra.mrb[72].mxu0 %v3784_v59  ;;  %5139 = vmatmul.mubr.bf16.vlgmr.msra.gmra.mrb[72].mxu1 %v3786_v60 }
0x137a   : > { %v6003_v46 = vpop.f32.mrb[60].mxu0  ;;  %v6025_v3 = vpop.f32.mrb[60].mxu1 }
0x137b   : > { %v6004_v5 = vpop.f32.mrb[61].mxu0  ;;  %v6026_v8 = vpop.f32.mrb[61].mxu1 }
0x137c   : > { %v6005_v11 = vadd.f32 %v6004_v5, %v6003_v46  ;;  %v6027_v12 = vadd.f32 %v6026_v8, %v6025_v3  ;;  %v6006_v13 = vpop.f32.mrb[62].mxu0  ;;  %v6028_v14 = vpop.f32.mrb[62].mxu1 }
0x137d   : > { %v6007_v36 = vpop.f32.mrb[63].mxu0  ;;  %v6029_v15 = vpop.f32.mrb[63].mxu1 }
0x137e   : > { %v4854_v16 = vadd.f32 %v6005_v11, %v5785_v4  ;;  %v6008_v56 = vadd.f32 %v6007_v36, %v6006_v13  ;;  %v6030_v20 = vadd.f32 %v6029_v15, %v6028_v14  ;;  %v6709_v11 = vld [vmem:[%s8701_s4] sm:$0xff] (!%p5914_p3)   ;;  %v6710_v13 = vld [vmem:[%s8701_s4 + $0x8] sm:$0xff] (!%p5914_p3)  }
0x137f   : > { %v6713_v14 = vld [vmem:[%s8701_s4 + $0x20] sm:$0xff] (!%p5914_p3)   ;;  %v6714_v36 = vld [vmem:[%s8701_s4 + $0x28] sm:$0xff] (!%p5914_p3)  }
0x1380   : > { %v4895_v19 = vadd.f32 %v6027_v12, %v4854_v16  ;;  %v4857_v58 = vadd.f32 %v6008_v56, %v5785_v4  ;;  %v7267_v12 = vmov (!%p5914_p3), 0.0   ;;  %v6715_v16 = vld [vmem:[%s8701_s4 + $0x30] sm:$0xff] (!%p5914_p3)  }
0x1381   : > { %6326 = vmatprep.subr.bf16.mxu0 (!%p5914_p3), %v7267_v12  ;;  %6342 = vmatprep.mubr.msk.bf16.mxu0 (!%p5914_p3), %vm7268_vm7, %v7267_v12 }
0x1382   : > { %v4898_v21 = vadd.f32 %v6030_v20, %v4857_v58  ;;  %6327 = vmatpush3.bf16.msra.mxu0 (!%p5914_p3), %v6709_v11 }
0x1383   : > { %6328 = vmatprep.subr.bf16.mxu0 (!%p5914_p3), %v7267_v12 }
0x1386   : > { %6329 = vmatpush3.bf16.msra.mxu0 (!%p5914_p3), %v6710_v13 }
0x1387   : > { %6330 = vmatprep.subr.bf16.mxu0 (!%p5914_p3), %v7267_v12 }
0x139a   : > { %v6047_v22 = vpop.f32.mrb[64].mxu0  ;;  %v6069_v23 = vpop.f32.mrb[64].mxu1 }
0x139b   : > { %v6048_v24 = vpop.f32.mrb[65].mxu0  ;;  %v6070_v26 = vpop.f32.mrb[65].mxu1 }
0x139c   : > { %v6049_v34 = vadd.f32 %v6048_v24, %v6047_v22  ;;  %v6071_v27 = vadd.f32 %v6070_v26, %v6069_v23  ;;  %v6050_v9 = vpop.f32.mrb[66].mxu0  ;;  %v6072_v28 = vpop.f32.mrb[66].mxu1  ;;  %v5915_v22 = vld [vmem:[#allocation20] ss:$0 sm:$0xff] (!%p5914_p3) }
0x139d   : > { %v6051_v30 = vpop.f32.mrb[67].mxu0  ;;  %v6073_v10 = vpop.f32.mrb[67].mxu1 }
0x139e   : > { %v4936_v33 = vadd.f32 %v6049_v34, %v4895_v19  ;;  %v6052_v35 = vadd.f32 %v6051_v30, %v6050_v9  ;;  %v6074_v7 = vadd.f32 %v6073_v10, %v6072_v28  ;;  %v6716_v19 = vld [vmem:[%s8701_s4 + $0x38] sm:$0xff] (!%p5914_p3)  }
0x13a0   : > { %v4977_v62 = vadd.f32 %v6071_v27, %v4936_v33  ;;  %v4939_v39 = vadd.f32 %v6052_v35, %v4898_v21 }
0x13a2   : > { %v4980_v40 = vadd.f32 %v6074_v7, %v4939_v39 }
0x13ba   : > { %v6091_v63 = vpop.f32.mrb[68].mxu0  ;;  %v6113_v41 = vpop.f32.mrb[68].mxu1 }
0x13bb   : > { %v6092_v2 = vpop.f32.mrb[69].mxu0  ;;  %v6114_v42 = vpop.f32.mrb[69].mxu1 }
0x13bc   : > { %v6093_v0 = vadd.f32 %v6092_v2, %v6091_v63  ;;  %v6115_v43 = vadd.f32 %v6114_v42, %v6113_v41  ;;  %v6094_v6 = vpop.f32.mrb[70].mxu0  ;;  %v6116_v44 = vpop.f32.mrb[70].mxu1 }
0x13bd   : > { %v6095_v1 = vpop.f32.mrb[71].mxu0  ;;  %v6117_v18 = vpop.f32.mrb[71].mxu1 }
0x13be   : > { %v5018_v45 = vadd.f32 %v6093_v0, %v4977_v62  ;;  %v6096_v25 = vadd.f32 %v6095_v1, %v6094_v6  ;;  %v6118_v17 = vadd.f32 %v6117_v18, %v6116_v44 }
0x13c0   : > { %v5059_v48 = vadd.f32 %v6115_v43, %v5018_v45  ;;  %v5021_v29 = vadd.f32 %v6096_v25, %v4980_v40 }
0x13c2   : > { %v5062_v50 = vadd.f32 %v6118_v17, %v5021_v29 }
0x13da   : > { %v6135_v38 = vpop.f32.mrb[72].mxu0  ;;  %v6157_v51 = vpop.f32.mrb[72].mxu1 }
0x13db   : > { %v6136_v52 = vpop.f32.mrb[73].mxu0  ;;  %v6158_v53 = vpop.f32.mrb[73].mxu1 }
0x13dc   : > { %v6137_v54 = vadd.f32 %v6136_v52, %v6135_v38  ;;  %v6159_v55 = vadd.f32 %v6158_v53, %v6157_v51  ;;  %v6138_v57 = vpop.f32.mrb[74].mxu0  ;;  %v6160_v47 = vpop.f32.mrb[74].mxu1 }
0x13dd   : > { %v6139_v49 = vpop.f32.mrb[75].mxu0  ;;  %v6161_v59 = vpop.f32.mrb[75].mxu1 }
0x13de   : > { %v5100_v60 = vadd.f32 %v6137_v54, %v5059_v48  ;;  %v6140_v61 = vadd.f32 %v6139_v49, %v6138_v57  ;;  %v6162_v37 = vadd.f32 %v6161_v59, %v6160_v47 }
0x13e0   : > { %v5141_v46 = vadd.f32 %v6159_v55, %v5100_v60  ;;  %v5103_v3 = vadd.f32 %v6140_v61, %v5062_v50  ;;  %5154 = sbr.rel (%p5914_p3) target bundleno = 5329 (0x14d1), region = 160 }
0x13e2   : > { %v5147_v4 = vadd.f32 %v5141_v46, %v8170_v31  ;;  %v5144_v5 = vadd.f32 %v6162_v37, %v5103_v3  ;;  %v6711_v31 = vld [vmem:[%s8701_s4 + $0x10] sm:$0xff] (!%p5914_p3)  }
0x13e3   : > { %6331 = vmatpush3.bf16.msra.mxu0 (!%p5914_p3), %v6711_v31 }
0x13e4   : > { %5149 = vst [vmem:[#allocation2] sm:$0xff] %v5147_v4  ;;  %v5148_v8 = vadd.f32 %v5144_v5, %v8173_v32  ;;  %v6712_v32 = vld [vmem:[%s8701_s4 + $0x18] sm:$0xff] (!%p5914_p3)   ;;  %6332 = vmatprep.subr.bf16.mxu0 (!%p5914_p3), %v7267_v12 }
0x13e6   : > { %5150 = vst [vmem:[#allocation2 + $0x8] sm:$0xff] %v5148_v8 }
0x13e7   : > { %6333 = vmatpush3.bf16.msra.mxu0 %v6712_v32 }
0x13e8   : > { %6334 = vmatprep.subr.bf16.mxu0 %v7267_v12 }
0x13eb   : > { %6335 = vmatpush3.bf16.msra.mxu0 %v6713_v14  ;;  %v5155_v20 = vld [vmem:[#allocation2 + $0x7] sm:$0x1] }
0x13ec   : > { %6336 = vmatprep.subr.bf16.mxu0 %v7267_v12 }
0x13ed   : > { %v5156_v15 = vld [vmem:[#allocation2 + $0xf] sm:$0x1] }
0x13ee   : > { %v5158_v56 = vrot.slane %v5156_v15, 7 }
0x13ef   : > { %6337 = vmatpush3.bf16.msra.mxu0 %v6714_v36 }
0x13f0   : > { %6338 = vmatprep.subr.bf16.mxu0 %v7267_v12  ;;  %v5161_v58 = vsel %vm5160_vm8, %v5155_v20, %v5158_v56 }
0x13f1   : > { %v5162_v21 = vpack.c.bf16 %v5161_v58, %v5161_v58 }
0x13f3   : > { %6339 = vmatpush3.bf16.msra.mxu0 %v6715_v16 }
0x13f4   : > { %6340 = vmatprep.subr.bf16.mxu0 %v7267_v12 }
0x13f7   : > { %6341 = vmatpush3.bf16.msra.mxu0 %v6716_v19 }
0x13fa   : > { %6343 = vmatmul.mubr.bf16.vlgmr.msra.gmra.mrb[0].mxu0 %v5162_v21 }
0x14cd   : > { %v5268_v23 = vpop.f32.mrb[0].mxu0 }
0x14ce   : > { %v5269_v24 = vadd.f32 %v5915_v22, %v5268_v23  ;;  %v6344_v26 = vpop.f32.mrb[1].mxu0 }
0x14cf   : > { %v5271_v34 = vpop.f32.mrb[2].mxu0 }
0x14d0   : > { %5275 = vst.msk [vmem:[#allocation21] sm:$0x3] %vm5274_vm9, %v5269_v24  ;;  %v6345_v27 = vpop.f32.mrb[3].mxu0 }
0x14d1 PF: > { %s8702_s2 = sld [smem:[#allocation29_spill]]  ;;  %s7269_s17 = smov [#allocation21]  }
0x14d2   : > { %s5283_s16 = sshll.u32 %s7269_s17, 4  ;;  %s5284_s16 = int_to_ptr.vmem [resolvable:$true] %s5283_s16 }
0x14d3   : > { %s7161_s14 = scalar_lea.vmem %s5284_s16, 32  ;;  %p7168_p2 = scmp.lt.s32.totalorder %s5284_s16, %s5284_s16 }
0x14d4   : > { %p7162_p13 = scmp.ne.s32.totalorder %s5284_s16, %s7161_s14  ;;  %p7169_p9 = scmp.lt.s32.totalorder %s7161_s14, %s7161_s14 }
0x14d6   : > { %p7170_p11 = por %p7169_p9, %p7168_p2 }
0x14d7   : > { %p6446_p12 = scmp.eq.s32.totalorder %s8702_s2, 3 }
0x14d9   : > { %p7163_p4 = pnand %p7162_p13, %p6446_p12 }
0x14db   : > { %p7164_p8 = pneg %p7163_p4 }
0x14dd   : > { %p7171_p0 = pnand %p7170_p11, %p7164_p8 }
0x14df   : > { %7174 = shalt.err (!%p7171_p0)
}
0x14e0   : > { %s8703_s23 = sld [smem:[#allocation46_spill]] }
0x14e6   : > { %s7175_s20 = scalar_lea.hbm %s8703_s23, 32 }
0x14e7   : > { %p7176_p1 = scmp.ne.s32.totalorder %s8703_s23, %s7175_s20  ;;  %p7181_p5 = scmp.lt.u32.totalorder %s7175_s20, %s8703_s23 }
0x14e9   : > { %p7177_p10 = pnand %p7176_p1, %p6446_p12 }
0x14eb   : > { %p7178_p7 = pneg %p7177_p10 }
0x14ed   : > { %p7183_p6 = pnand %p7181_p5, %p7178_p7 }
0x14ef   : > { %7186 = shalt.err (!%p7183_p6)
}
0x14f0   : > { %6389 = dma.vmem_to_hbm [thread:$0]  (%p6446_p12), %s5284_s16, 32, %s8703_s23, [#allocation5]  }
0x14f1   : > { %7220 = dma.done.wait (%p6446_p12), [#allocation5], 32  }
0x14f2   : > { %7222 = vsyncadd (%p6446_p12), [#allocation5], 4294967264 }
0x14f3 PF: > { %s8704_s30 = sld [smem:[#allocation30_spill]]  ;;  %s8705_s27 = sld [smem:[#allocation27_spill]] }
0x14f4   : > { %s8706_s28 = sld [smem:[#allocation28_spill]]  ;;  %s8707_s29 = sld [smem:[#allocation31_spill]] }
0x14f9   : > { %p28_p3 = scmp.ge.s32.totalorder %s8704_s30, 6  }
0x14fb   :  { %30 = sbr.rel (!%p28_p3) target bundleno = 17 (0x11), region = 269 }
0x1502   :  { %5296 = vsyncpa [#allocation4], 1 }
0x1503   :  { %5298 = vsyncpa [#allocation4 + $0x1], 1 }
0x1504   :  { %5299 = vsyncpa [#allocation7], 1 }
0x1505   :  { %5300 = vsyncpa [#allocation5], 1 }
0x1506   :  { %5302 = vsyncpa [#allocation5 + $0x1], 1 }

</bundles_post_ra>
